<compile_context>
chip_gen: v7x
topology: tpu7x:2x2x1
jax: 0.10.0
libtpu: 0.0.40
codegen_flags: <defaults>
</compile_context>

<pallas_src>
import jax
import jax.numpy as jnp
from jax import lax
from jax.experimental import pallas as pl
from jax.experimental.pallas import tpu as pltpu


def abmil_kernel(n_ref, bw_ref, x_ref, wm_ref, bm_ref, wvu_ref, bvu_ref,
                 ww_ref, wc_ref, bc_ref,
                 logits_ref, a_ref, h_ref,
                 m_scr, l_scr, acc_scr, s_scr):
    i = pl.program_id(0)
    tn = x_ref.shape[0]          # instance-tile size
    d = ww_ref.shape[1]          # attention dim D

    @pl.when(i == 0)
    def _init():
        m_scr[...] = jnp.full(m_scr.shape, -jnp.inf, m_scr.dtype)
        l_scr[...] = jnp.zeros(l_scr.shape, l_scr.dtype)
        acc_scr[...] = jnp.zeros(acc_scr.shape, acc_scr.dtype)

    # ---- MLP: H = relu(x @ Wm + bm)  (bf16 MXU inputs, f32 accumulation)
    h = jnp.dot(x_ref[...], wm_ref[...],
                preferred_element_type=jnp.float32) + bm_ref[...]
    h = jnp.maximum(h, 0.0)                                    # (TN, L) f32
    h_ref[...] = h.astype(h_ref.dtype)                         # bf16 stream out

    # ---- gated attention: V and U fused into one (L, 2D) projection
    vu = jnp.dot(h.astype(jnp.bfloat16), wvu_ref[...],
                 preferred_element_type=jnp.float32) + bvu_ref[...]
    g = jnp.tanh(vu[:, :d]) * jax.nn.sigmoid(vu[:, d:])        # (TN, D) f32

    # ---- per-instance score, lane-dense: s has shape (1, TN)
    #      s[0, j] = g[j, :] . ww + bw   (contract on D without explicit .T)
    s = lax.dot_general(ww_ref[...], g, (((1,), (1,)), ((), ())),
                        preferred_element_type=jnp.float32) + bw_ref[0]
    col = lax.broadcasted_iota(jnp.int32, s.shape, 1)
    s = jnp.where(i * tn + col < n_ref[0], s, -jnp.inf)        # mask pad rows

    # ---- online softmax over instances (f32 accumulators in VMEM scratch)
    m_prev = m_scr[...]                                        # (1, 1)
    m_new = jnp.maximum(m_prev, jnp.max(s, axis=-1, keepdims=True))
    alpha = jnp.exp(m_prev - m_new)
    p = jnp.exp(s - m_new)                                     # (1, TN); pads -> 0
    l_new = alpha * l_scr[...] + jnp.sum(p, axis=-1, keepdims=True)
    acc_scr[...] = alpha * acc_scr[...] + jnp.dot(
        p, h, preferred_element_type=jnp.float32)              # (1, L)
    m_scr[...] = m_new
    l_scr[...] = l_new

    # stash this tile's raw scores in the persistent score scratch
    # (lane-offset store; offset is a multiple of the 128-aligned tile size)
    off = pl.multiple_of(i * tn, tn)
    s_scr[:, pl.ds(off, tn)] = s

    # ---- finalize on the last tile
    @pl.when(i == pl.num_programs(0) - 1)
    def _finalize():
        inv_l = 1.0 / l_new                                    # exact; runs once
        # normalized attention weights over instances (pads become exactly 0)
        a_ref[...] = jnp.exp(s_scr[...] - m_new) * inv_l
        # bag embedding M = A @ H, accumulated online in f32
        m_bag = acc_scr[...] * inv_l                           # (1, L)
        logits_ref[...] = jnp.dot(m_bag, wc_ref[...],
                                  preferred_element_type=jnp.float32) + bc_ref[...]


def _round_up(v, m):
    return (v + m - 1) // m * m


def attention_mil_forward(x, params, *, block_n=256, h_dtype=jnp.bfloat16):
    """Returns (logits (1,C) f32, A (1,N) f32, H (N,L) h_dtype)."""
    N, F = x.shape
    L = params["wm"].shape[1]
    D = params["wv"].shape[1]
    C = params["wc"].shape[1]

    T = pl.cdiv(N, block_n)          # grid steps over the instance axis
    Np = T * block_n                 # padded bag size
    Fp = _round_up(F, 128)           # lane-aligned feature dim

    f32, bf16 = jnp.float32, jnp.bfloat16
    # zero-pad features (cols of x / rows of wm): preserves x @ wm exactly
    x_p = jnp.zeros((Np, Fp), bf16).at[:N, :F].set(x.astype(bf16))
    wm = jnp.zeros((Fp, L), bf16).at[:F, :].set(params["wm"].astype(bf16))
    bm = params["bm"].astype(f32)
    # fuse attention_V / attention_U into one (L, 2D) projection
    wvu = jnp.concatenate([params["wv"], params["wu"]], axis=1).astype(bf16)
    bvu = jnp.concatenate([params["bv"], params["bu"]], axis=1).astype(f32)
    ww = params["ww"].reshape(1, D).astype(f32)    # (D, 1) -> lane-dense row
    wc = params["wc"].astype(f32)
    bc = params["bc"].astype(f32)
    n_true = jnp.array([N], jnp.int32)
    bw = params["bw"].reshape(1).astype(f32)

    const = lambda i: (0, 0)
    smem = pl.BlockSpec(memory_space=pltpu.MemorySpace.SMEM)

    flops = 2 * Np * (Fp * L + L * 2 * D + 2 * D + L) + 2 * L * C
    cost = pl.CostEstimate(
        flops=int(flops),
        transcendentals=int(Np * (2 * D + 2)),
        bytes_accessed=int(2 * Np * Fp + 2 * Np * L + 2 * Fp * L
                           + 4 * L * D + 4 * (Np + L * C)),
    )

    logits, a_row, h_pad = pl.pallas_call(
        abmil_kernel,
        grid=(T,),
        in_specs=[
            smem,                                              # true bag size N
            smem,                                              # scalar bias bw
            pl.BlockSpec((block_n, Fp), lambda i: (i, 0)),     # x tile (stream)
            pl.BlockSpec((Fp, L), const),                      # Wm (resident)
            pl.BlockSpec((1, L), const),                       # bm
            pl.BlockSpec((L, 2 * D), const),                   # Wv||Wu fused
            pl.BlockSpec((1, 2 * D), const),                   # bv||bu
            pl.BlockSpec((1, D), const),                       # ww row
            pl.BlockSpec((L, C), const),                       # Wc
            pl.BlockSpec((1, C), const),                       # bc
        ],
        out_specs=(
            pl.BlockSpec((1, C), const),                       # logits (resident)
            pl.BlockSpec((1, Np), const),                      # A row (resident)
            pl.BlockSpec((block_n, L), lambda i: (i, 0)),      # H tile (stream)
        ),
        out_shape=(
            jax.ShapeDtypeStruct((1, C), f32),
            jax.ShapeDtypeStruct((1, Np), f32),
            jax.ShapeDtypeStruct((Np, L), h_dtype),
        ),
        scratch_shapes=[
            pltpu.VMEM((1, 1), f32),       # running max
            pltpu.VMEM((1, 1), f32),       # running sum
            pltpu.VMEM((1, L), f32),       # running weighted sum of H (-> M)
            pltpu.VMEM((1, Np), f32),      # raw scores (persist across steps)
        ],
        compiler_params=pltpu.CompilerParams(
            dimension_semantics=("arbitrary",)),   # N axis is a reduction
        cost_estimate=cost,
    )(n_true, bw, x_p, wm, bm, wvu, bvu, ww, wc, bc)

    A = a_row[:, :N]                  # drop padded instances (exact zeros)
    H = h_pad[:N]
    return logits, A, H


def init_params(key, in_features, L, D, num_classes):
    ks = jax.random.split(key, 10)

    def lin(kw, kb, fan_in, fan_out):
        bound = 1.0 / jnp.sqrt(fan_in)
        w = jax.random.uniform(kw, (fan_in, fan_out), jnp.float32, -bound, bound)
        b = jax.random.uniform(kb, (1, fan_out), jnp.float32, -bound, bound)
        return w, b

    wm, bm = lin(ks[0], ks[1], in_features, L)   # MLP Linear
    wv, bv = lin(ks[2], ks[3], L, D)             # attention_V Linear
    wu, bu = lin(ks[4], ks[5], L, D)             # attention_U Linear
    ww, bw = lin(ks[6], ks[7], D, 1)             # attention_weights (K=1)
    wc, bc = lin(ks[8], ks[9], L, num_classes)   # classifier Linear
    return dict(wm=wm, bm=bm, wv=wv, bv=bv, wu=wu, bu=bu,
                ww=ww, bw=bw, wc=wc, bc=bc)


def reference_forward(x, params):
    """Pure-JAX f32 replica of the PyTorch module (gated attention)."""
    h = jnp.maximum(x @ params["wm"] + params["bm"], 0.0)
    a_v = jnp.tanh(h @ params["wv"] + params["bv"])
    a_u = jax.nn.sigmoid(h @ params["wu"] + params["bu"])
    s = (a_v * a_u) @ params["ww"] + params["bw"]      # (N, 1)
    A = jax.nn.softmax(s.T, axis=1)                    # (1, N)
    M = A @ h
    logits = M @ params["wc"] + params["bc"]
    return logits, A, h


if __name__ == "__main__":
    # Small shapes consistent with the module: a bag of N=300 instances with
    # 200-dim backbone features; module defaults L=512, D=128, 2 classes.
    N, F, L, D, C = 300, 200, 512, 128, 2

    key = jax.random.PRNGKey(0)
    k_x, k_p = jax.random.split(key)
    x = jax.random.normal(k_x, (N, F), jnp.float32)
    params = init_params(k_p, F, L, D, C)

    logits, A, H = attention_mil_forward(x, params, block_n=256)
    jax.block_until_ready((logits, A, H))

    # shape checks (match the PyTorch module's (logits, A, H))
    assert logits.shape == (1, C)
    assert A.shape == (1, N)
    assert H.shape == (N, L)

    # numerical checks vs the f32 reference (kernel uses bf16 MXU inputs)
    ref_logits, ref_A, ref_H = reference_forward(x, params)
    assert jnp.isclose(jnp.sum(A), 1.0, atol=1e-4)
    assert jnp.allclose(A, ref_A, atol=2e-4, rtol=2e-2)
    assert jnp.allclose(logits, ref_logits, atol=2e-2, rtol=2e-2)
    assert jnp.allclose(H.astype(jnp.float32), ref_H, atol=6e-2, rtol=6e-2)

    print("KERNEL_OK")
</pallas_src>

<mosaic_0001>
module attributes {stable_mosaic.version = 11 : i64} {
  func.func @abmil_kernel(%arg0: i32, %arg1: memref<1xi32, #tpu.memory_space<smem>>, %arg2: memref<1xf32, #tpu.memory_space<smem>>, %arg3: memref<256x256xbf16, #tpu.memory_space<vmem>>, %arg4: memref<256x512xbf16, #tpu.memory_space<vmem>>, %arg5: memref<1x512xf32, #tpu.memory_space<vmem>>, %arg6: memref<512x256xbf16, #tpu.memory_space<vmem>>, %arg7: memref<1x256xf32, #tpu.memory_space<vmem>>, %arg8: memref<1x128xf32, #tpu.memory_space<vmem>>, %arg9: memref<512x2xf32, #tpu.memory_space<vmem>>, %arg10: memref<1x2xf32, #tpu.memory_space<vmem>>, %arg11: memref<1x2xf32, #tpu.memory_space<vmem>>, %arg12: memref<1x512xf32, #tpu.memory_space<vmem>>, %arg13: memref<256x512xbf16, #tpu.memory_space<vmem>>, %arg14: memref<1x1xf32, #tpu.memory_space<vmem>>, %arg15: memref<1x1xf32, #tpu.memory_space<vmem>>, %arg16: memref<1x512xf32, #tpu.memory_space<vmem>>, %arg17: memref<1x512xf32, #tpu.memory_space<vmem>>) attributes {dimension_semantics = [#tpu.dimension_semantics<arbitrary>], iteration_bounds = array<i64: 2>, scalar_prefetch = 0 : i64, scratch_operands = 4 : i64, tpu.core_type = #tpu.core_type<tc>, window_params = [{transform_indices = @transform_0, window_bounds = array<i64: 1>}, {transform_indices = @transform_1, window_bounds = array<i64: 1>}, {transform_indices = @transform_2, window_bounds = array<i64: 256, 256>}, {pipeline_mode = #tpu.pipeline_mode<synchronous>, transform_indices = @transform_3, window_bounds = array<i64: 256, 512>}, {pipeline_mode = #tpu.pipeline_mode<synchronous>, transform_indices = @transform_4, window_bounds = array<i64: 1, 512>}, {pipeline_mode = #tpu.pipeline_mode<synchronous>, transform_indices = @transform_5, window_bounds = array<i64: 512, 256>}, {pipeline_mode = #tpu.pipeline_mode<synchronous>, transform_indices = @transform_6, window_bounds = array<i64: 1, 256>}, {pipeline_mode = #tpu.pipeline_mode<synchronous>, transform_indices = @transform_7, window_bounds = array<i64: 1, 128>}, {pipeline_mode = #tpu.pipeline_mode<synchronous>, transform_indices = @transform_8, window_bounds = array<i64: 512, 2>}, {pipeline_mode = #tpu.pipeline_mode<synchronous>, transform_indices = @transform_9, window_bounds = array<i64: 1, 2>}, {pipeline_mode = #tpu.pipeline_mode<synchronous>, transform_indices = @transform_10, window_bounds = array<i64: 1, 2>}, {pipeline_mode = #tpu.pipeline_mode<synchronous>, transform_indices = @transform_11, window_bounds = array<i64: 1, 512>}, {transform_indices = @transform_12, window_bounds = array<i64: 256, 512>}]} {
    %c0_i32 = arith.constant 0 : i32
    %0 = arith.cmpi eq, %arg0, %c0_i32 : i32
    %1 = arith.extui %0 : i1 to i32
    %c0_i32_0 = arith.constant 0 : i32
    %2 = arith.cmpi ne, %1, %c0_i32_0 : i32
    scf.if %2 {
      %cst_39 = arith.constant 0xFF800000 : f32
      %71 = vector.broadcast %cst_39 : f32 to vector<1x1xf32>
      %c0_40 = arith.constant 0 : index
      %c0_41 = arith.constant 0 : index
      %72 = vector.load %arg14[%c0_40, %c0_41] : memref<1x1xf32, #tpu.memory_space<vmem>>, vector<1x1xf32>
      tpu.vector_store %arg14[%c0_40, %c0_41], %71 {strides = array<i32>} : memref<1x1xf32, #tpu.memory_space<vmem>>, vector<1x1xf32>,
      %cst_42 = arith.constant 0.000000e+00 : f32
      %73 = vector.broadcast %cst_42 : f32 to vector<1x1xf32>
      %c0_43 = arith.constant 0 : index
      %c0_44 = arith.constant 0 : index
      %74 = vector.load %arg15[%c0_43, %c0_44] : memref<1x1xf32, #tpu.memory_space<vmem>>, vector<1x1xf32>
      tpu.vector_store %arg15[%c0_43, %c0_44], %73 {strides = array<i32>} : memref<1x1xf32, #tpu.memory_space<vmem>>, vector<1x1xf32>,
      %cst_45 = arith.constant 0.000000e+00 : f32
      %75 = vector.broadcast %cst_45 : f32 to vector<1x512xf32>
      %c0_46 = arith.constant 0 : index
      %c0_47 = arith.constant 0 : index
      %76 = vector.load %arg16[%c0_46, %c0_47] : memref<1x512xf32, #tpu.memory_space<vmem>>, vector<1x512xf32>
      tpu.vector_store %arg16[%c0_46, %c0_47], %75 {strides = array<i32>} : memref<1x512xf32, #tpu.memory_space<vmem>>, vector<1x512xf32>,
    } else {
    }
    %c0 = arith.constant 0 : index
    %c0_1 = arith.constant 0 : index
    %3 = vector.load %arg3[%c0, %c0_1] : memref<256x256xbf16, #tpu.memory_space<vmem>>, vector<256x256xbf16>
    %c0_2 = arith.constant 0 : index
    %c0_3 = arith.constant 0 : index
    %4 = vector.load %arg4[%c0_2, %c0_3] : memref<256x512xbf16, #tpu.memory_space<vmem>>, vector<256x512xbf16>
    %cst = arith.constant dense<0.000000e+00> : vector<256x512xf32>
    %5 = tpu.matmul %3, %4, %cst {dimension_numbers = #tpu.dot_dimension_numbers<[1], [0], [0], [1], [0, 0, 1, 1], [], []>} : vector<256x256xbf16>, vector<256x512xbf16>, vector<256x512xf32> -> vector<256x512xf32>
    %c0_4 = arith.constant 0 : index
    %c0_5 = arith.constant 0 : index
    %6 = vector.load %arg5[%c0_4, %c0_5] : memref<1x512xf32, #tpu.memory_space<vmem>>, vector<1x512xf32>
    %7 = vector.broadcast %6 : vector<1x512xf32> to vector<256x512xf32>
    %8 = arith.addf %5, %7 : vector<256x512xf32>
    %cst_6 = arith.constant 0.000000e+00 : f32
    %9 = vector.broadcast %cst_6 : f32 to vector<256x512xf32>
    %10 = arith.maximumf %8, %9 : vector<256x512xf32>
    %11 = arith.truncf %10 : vector<256x512xf32> to vector<256x512xbf16>
    %c0_7 = arith.constant 0 : index
    %c0_8 = arith.constant 0 : index
    %12 = vector.load %arg13[%c0_7, %c0_8] : memref<256x512xbf16, #tpu.memory_space<vmem>>, vector<256x512xbf16>
    tpu.vector_store %arg13[%c0_7, %c0_8], %11 {strides = array<i32>} : memref<256x512xbf16, #tpu.memory_space<vmem>>, vector<256x512xbf16>,
    %13 = arith.truncf %10 : vector<256x512xf32> to vector<256x512xbf16>
    %c0_9 = arith.constant 0 : index
    %c0_10 = arith.constant 0 : index
    %14 = vector.load %arg6[%c0_9, %c0_10] : memref<512x256xbf16, #tpu.memory_space<vmem>>, vector<512x256xbf16>
    %cst_11 = arith.constant dense<0.000000e+00> : vector<256x256xf32>
    %15 = tpu.matmul %13, %14, %cst_11 {dimension_numbers = #tpu.dot_dimension_numbers<[1], [0], [0], [1], [0, 0, 1, 1], [], []>} : vector<256x512xbf16>, vector<512x256xbf16>, vector<256x256xf32> -> vector<256x256xf32>
    %c0_12 = arith.constant 0 : index
    %c0_13 = arith.constant 0 : index
    %16 = vector.load %arg7[%c0_12, %c0_13] : memref<1x256xf32, #tpu.memory_space<vmem>>, vector<1x256xf32>
    %17 = vector.broadcast %16 : vector<1x256xf32> to vector<256x256xf32>
    %18 = arith.addf %15, %17 : vector<256x256xf32>
    %19 = vector.extract_strided_slice %18 {offsets = [0, 0], sizes = [256, 128], strides = [1, 1]} : vector<256x256xf32> to vector<256x128xf32>
    %20 = math.tanh %19 : vector<256x128xf32>
    %21 = vector.extract_strided_slice %18 {offsets = [0, 128], sizes = [256, 128], strides = [1, 1]} : vector<256x256xf32> to vector<256x128xf32>
    %22 = arith.negf %21 : vector<256x128xf32>
    %23 = math.exp %22 : vector<256x128xf32>
    %cst_14 = arith.constant 1.000000e+00 : f32
    %24 = vector.broadcast %cst_14 : f32 to vector<256x128xf32>
    %25 = arith.addf %24, %23 : vector<256x128xf32>
    %26 = arith.divf %24, %25 : vector<256x128xf32>
    %27 = arith.mulf %20, %26 : vector<256x128xf32>
    %c0_15 = arith.constant 0 : index
    %c0_16 = arith.constant 0 : index
    %28 = vector.load %arg8[%c0_15, %c0_16] : memref<1x128xf32, #tpu.memory_space<vmem>>, vector<1x128xf32>
    %cst_17 = arith.constant dense<0.000000e+00> : vector<1x256xf32>
    %29 = tpu.matmul %28, %27, %cst_17 {dimension_numbers = #tpu.dot_dimension_numbers<[1], [1], [0], [0], [0, 0, 1, 0], [], []>} : vector<1x128xf32>, vector<256x128xf32>, vector<1x256xf32> -> vector<1x256xf32>
    %c0_18 = arith.constant 0 : index
    %30 = memref.load %arg2[%c0_18] : memref<1xf32, #tpu.memory_space<smem>>
    %31 = vector.broadcast %30 : f32 to vector<1x256xf32>
    %32 = arith.addf %29, %31 : vector<1x256xf32>
    %33 = tpu.iota {dimensions = array<i32: 1>} : vector<1x256xi32>
    %c256_i32 = arith.constant 256 : i32
    %34 = arith.muli %arg0, %c256_i32 : i32
    %35 = vector.broadcast %34 : i32 to vector<1x256xi32>
    %36 = arith.addi %35, %33 : vector<1x256xi32>
    %c0_19 = arith.constant 0 : index
    %37 = memref.load %arg1[%c0_19] : memref<1xi32, #tpu.memory_space<smem>>
    %38 = vector.broadcast %37 : i32 to vector<1x256xi32>
    %39 = arith.cmpi slt, %36, %38 : vector<1x256xi32>
    %cst_20 = arith.constant 0xFF800000 : f32
    %40 = vector.broadcast %cst_20 : f32 to vector<1x256xf32>
    %41 = arith.select %39, %32, %40 : vector<1x256xi1>, vector<1x256xf32>
    %c0_21 = arith.constant 0 : index
    %c0_22 = arith.constant 0 : index
    %42 = vector.load %arg14[%c0_21, %c0_22] : memref<1x1xf32, #tpu.memory_space<vmem>>, vector<1x1xf32>
    %cst_23 = arith.constant dense<0xFF800000> : vector<1xf32>
    %43 = vector.multi_reduction <maximumf>, %41, %cst_23 [1] : vector<1x256xf32> to vector<1xf32>
    %44 = vector.shape_cast %43 : vector<1xf32> to vector<1x1xf32>
    %45 = arith.maximumf %42, %44 : vector<1x1xf32>
    %46 = arith.subf %42, %45 : vector<1x1xf32>
    %47 = math.exp %46 : vector<1x1xf32>
    %48 = vector.broadcast %45 : vector<1x1xf32> to vector<1x256xf32>
    %49 = arith.subf %41, %48 : vector<1x256xf32>
    %50 = math.exp %49 : vector<1x256xf32>
    %c0_24 = arith.constant 0 : index
    %c0_25 = arith.constant 0 : index
    %51 = vector.load %arg15[%c0_24, %c0_25] : memref<1x1xf32, #tpu.memory_space<vmem>>, vector<1x1xf32>
    %52 = arith.mulf %47, %51 : vector<1x1xf32>
    %cst_26 = arith.constant dense<0.000000e+00> : vector<1xf32>
    %53 = vector.multi_reduction <add>, %50, %cst_26 [1] : vector<1x256xf32> to vector<1xf32>
    %54 = vector.shape_cast %53 : vector<1xf32> to vector<1x1xf32>
    %55 = arith.addf %52, %54 : vector<1x1xf32>
    %c0_27 = arith.constant 0 : index
    %c0_28 = arith.constant 0 : index
    %56 = vector.load %arg16[%c0_27, %c0_28] : memref<1x512xf32, #tpu.memory_space<vmem>>, vector<1x512xf32>
    %57 = vector.broadcast %47 : vector<1x1xf32> to vector<1x512xf32>
    %58 = arith.mulf %57, %56 : vector<1x512xf32>
    %cst_29 = arith.constant dense<0.000000e+00> : vector<1x512xf32>
    %59 = tpu.matmul %50, %10, %cst_29 {dimension_numbers = #tpu.dot_dimension_numbers<[1], [0], [0], [1], [0, 0, 1, 1], [], []>} : vector<1x256xf32>, vector<256x512xf32>, vector<1x512xf32> -> vector<1x512xf32>
    %60 = arith.addf %58, %59 : vector<1x512xf32>
    %c0_30 = arith.constant 0 : index
    %c0_31 = arith.constant 0 : index
    %61 = vector.load %arg16[%c0_30, %c0_31] : memref<1x512xf32, #tpu.memory_space<vmem>>, vector<1x512xf32>
    tpu.vector_store %arg16[%c0_30, %c0_31], %60 {strides = array<i32>} : memref<1x512xf32, #tpu.memory_space<vmem>>, vector<1x512xf32>,
    %c0_32 = arith.constant 0 : index
    %c0_33 = arith.constant 0 : index
    %62 = vector.load %arg14[%c0_32, %c0_33] : memref<1x1xf32, #tpu.memory_space<vmem>>, vector<1x1xf32>
    tpu.vector_store %arg14[%c0_32, %c0_33], %45 {strides = array<i32>} : memref<1x1xf32, #tpu.memory_space<vmem>>, vector<1x1xf32>,
    %c0_34 = arith.constant 0 : index
    %c0_35 = arith.constant 0 : index
    %63 = vector.load %arg15[%c0_34, %c0_35] : memref<1x1xf32, #tpu.memory_space<vmem>>, vector<1x1xf32>
    tpu.vector_store %arg15[%c0_34, %c0_35], %55 {strides = array<i32>} : memref<1x1xf32, #tpu.memory_space<vmem>>, vector<1x1xf32>,
    %c256_i32_36 = arith.constant 256 : i32
    %64 = arith.muli %arg0, %c256_i32_36 : i32
    %65 = tpu.assume_multiple %64, 256 : i32
    %c0_37 = arith.constant 0 : index
    %66 = arith.index_cast %65 : i32 to index
    %67 = vector.load %arg17[%c0_37, %66] : memref<1x512xf32, #tpu.memory_space<vmem>>, vector<1x256xf32>
    tpu.vector_store %arg17[%c0_37, %66], %41 {strides = array<i32>} : memref<1x512xf32, #tpu.memory_space<vmem>>, vector<1x256xf32>,
    %c1_i32 = arith.constant 1 : i32
    %68 = arith.cmpi eq, %arg0, %c1_i32 : i32
    %69 = arith.extui %68 : i1 to i32
    %c0_i32_38 = arith.constant 0 : i32
    %70 = arith.cmpi ne, %69, %c0_i32_38 : i32
    scf.if %70 {
      %cst_39 = arith.constant 1.000000e+00 : f32
      %71 = vector.broadcast %cst_39 : f32 to vector<1x1xf32>
      %72 = arith.divf %71, %55 : vector<1x1xf32>
      %c0_40 = arith.constant 0 : index
      %c0_41 = arith.constant 0 : index
      %73 = vector.load %arg17[%c0_40, %c0_41] : memref<1x512xf32, #tpu.memory_space<vmem>>, vector<1x512xf32>
      %74 = vector.broadcast %45 : vector<1x1xf32> to vector<1x512xf32>
      %75 = arith.subf %73, %74 : vector<1x512xf32>
      %76 = math.exp %75 : vector<1x512xf32>
      %77 = vector.broadcast %72 : vector<1x1xf32> to vector<1x512xf32>
      %78 = arith.mulf %76, %77 : vector<1x512xf32>
      %c0_42 = arith.constant 0 : index
      %c0_43 = arith.constant 0 : index
      %79 = vector.load %arg12[%c0_42, %c0_43] : memref<1x512xf32, #tpu.memory_space<vmem>>, vector<1x512xf32>
      tpu.vector_store %arg12[%c0_42, %c0_43], %78 {strides = array<i32>} : memref<1x512xf32, #tpu.memory_space<vmem>>, vector<1x512xf32>,
      %c0_44 = arith.constant 0 : index
      %c0_45 = arith.constant 0 : index
      %80 = vector.load %arg16[%c0_44, %c0_45] : memref<1x512xf32, #tpu.memory_space<vmem>>, vector<1x512xf32>
      %81 = vector.broadcast %72 : vector<1x1xf32> to vector<1x512xf32>
      %82 = arith.mulf %80, %81 : vector<1x512xf32>
      %c0_46 = arith.constant 0 : index
      %c0_47 = arith.constant 0 : index
      %83 = vector.load %arg9[%c0_46, %c0_47] : memref<512x2xf32, #tpu.memory_space<vmem>>, vector<512x2xf32>
      %cst_48 = arith.constant dense<0.000000e+00> : vector<1x2xf32>
      %84 = tpu.matmul %82, %83, %cst_48 {dimension_numbers = #tpu.dot_dimension_numbers<[1], [0], [0], [1], [0, 0, 1, 1], [], []>} : vector<1x512xf32>, vector<512x2xf32>, vector<1x2xf32> -> vector<1x2xf32>
      %c0_49 = arith.constant 0 : index
      %c0_50 = arith.constant 0 : index
      %85 = vector.load %arg10[%c0_49, %c0_50] : memref<1x2xf32, #tpu.memory_space<vmem>>, vector<1x2xf32>
      %86 = arith.addf %84, %85 : vector<1x2xf32>
      %c0_51 = arith.constant 0 : index
      %c0_52 = arith.constant 0 : index
      %87 = vector.load %arg11[%c0_51, %c0_52] : memref<1x2xf32, #tpu.memory_space<vmem>>, vector<1x2xf32>
      tpu.vector_store %arg11[%c0_51, %c0_52], %86 {strides = array<i32>} : memref<1x2xf32, #tpu.memory_space<vmem>>, vector<1x2xf32>,
    } else {
    }
    return
  }
  func.func @transform_0(%arg0: i32) -> i32 {
    %c0_i32 = arith.constant 0 : i32
    %c0_i32_0 = arith.constant 0 : i32
    return %c0_i32 : i32
  }
  func.func @transform_1(%arg0: i32) -> i32 {
    %c0_i32 = arith.constant 0 : i32
    %c0_i32_0 = arith.constant 0 : i32
    return %c0_i32 : i32
  }
  func.func @transform_2(%arg0: i32) -> (i32, i32) {
    %c0_i32 = arith.constant 0 : i32
    %c0_i32_0 = arith.constant 0 : i32
    return %arg0, %c0_i32 : i32, i32
  }
  func.func @transform_3(%arg0: i32) -> (i32, i32) {
    %c0_i32 = arith.constant 0 : i32
    %c0_i32_0 = arith.constant 0 : i32
    %c0_i32_1 = arith.constant 0 : i32
    return %c0_i32, %c0_i32_0 : i32, i32
  }
  func.func @transform_4(%arg0: i32) -> (i32, i32) {
    %c0_i32 = arith.constant 0 : i32
    %c0_i32_0 = arith.constant 0 : i32
    %c0_i32_1 = arith.constant 0 : i32
    return %c0_i32, %c0_i32_0 : i32, i32
  }
  func.func @transform_5(%arg0: i32) -> (i32, i32) {
    %c0_i32 = arith.constant 0 : i32
    %c0_i32_0 = arith.constant 0 : i32
    %c0_i32_1 = arith.constant 0 : i32
    return %c0_i32, %c0_i32_0 : i32, i32
  }
  func.func @transform_6(%arg0: i32) -> (i32, i32) {
    %c0_i32 = arith.constant 0 : i32
    %c0_i32_0 = arith.constant 0 : i32
    %c0_i32_1 = arith.constant 0 : i32
    return %c0_i32, %c0_i32_0 : i32, i32
  }
  func.func @transform_7(%arg0: i32) -> (i32, i32) {
    %c0_i32 = arith.constant 0 : i32
    %c0_i32_0 = arith.constant 0 : i32
    %c0_i32_1 = arith.constant 0 : i32
    return %c0_i32, %c0_i32_0 : i32, i32
  }
  func.func @transform_8(%arg0: i32) -> (i32, i32) {
    %c0_i32 = arith.constant 0 : i32
    %c0_i32_0 = arith.constant 0 : i32
    %c0_i32_1 = arith.constant 0 : i32
    return %c0_i32, %c0_i32_0 : i32, i32
  }
  func.func @transform_9(%arg0: i32) -> (i32, i32) {
    %c0_i32 = arith.constant 0 : i32
    %c0_i32_0 = arith.constant 0 : i32
    %c0_i32_1 = arith.constant 0 : i32
    return %c0_i32, %c0_i32_0 : i32, i32
  }
  func.func @transform_10(%arg0: i32) -> (i32, i32) {
    %c0_i32 = arith.constant 0 : i32
    %c0_i32_0 = arith.constant 0 : i32
    %c0_i32_1 = arith.constant 0 : i32
    return %c0_i32, %c0_i32_0 : i32, i32
  }
  func.func @transform_11(%arg0: i32) -> (i32, i32) {
    %c0_i32 = arith.constant 0 : i32
    %c0_i32_0 = arith.constant 0 : i32
    %c0_i32_1 = arith.constant 0 : i32
    return %c0_i32, %c0_i32_0 : i32, i32
  }
  func.func @transform_12(%arg0: i32) -> (i32, i32) {
    %c0_i32 = arith.constant 0 : i32
    %c0_i32_0 = arith.constant 0 : i32
    return %arg0, %c0_i32 : i32, i32
  }
}

</mosaic_0001>

<bundles_post_ra>
// kernel: tpu_custom_call.1
= control target key start
LH: loop header
LB: loop body
LE: loop exit
PB: predicated region body
PF: predicated region fallthrough
CT: control target
= control target key end

     0   :  { %s6687_s0 = inlined_call_operand.<no memory space> [shape: s32[1], index: 0, kind: input, shape index: {}]   ;;  %s6688_s1 = inlined_call_operand.<no memory space> [shape: f32[1], index: 1, kind: input, shape index: {}]   ;;  %s6689_s2 = inlined_call_operand.vmem [shape: bf16[512,256], index: 2, kind: input, shape index: {}]   ;;  %s6690_s3 = inlined_call_operand.hbm [shape: bf16[256,512], index: 3, kind: input, shape index: {}]   ;;  %s6691_s4 = inlined_call_operand.vmem [shape: f32[1,512], index: 4, kind: input, shape index: {}]   ;;  %s6692_s5 = inlined_call_operand.hbm [shape: bf16[512,256], index: 5, kind: input, shape index: {}]   ;;  %s6693_s6 = inlined_call_operand.vmem [shape: f32[1,256], index: 6, kind: input, shape index: {}]   ;;  %s6694_s7 = inlined_call_operand.vmem [shape: f32[1,128], index: 7, kind: input, shape index: {}]   ;;  %s6695_s8 = inlined_call_operand.vmem [shape: f32[512,2], index: 8, kind: input, shape index: {}]   ;;  %s6696_s9 = inlined_call_operand.vmem [shape: f32[1,2], index: 9, kind: input, shape index: {}]   ;;  %s6697_s10 = inlined_call_operand.hbm [shape: f32[1,2], index: 10, kind: output, shape index: {0}]   ;;  %s6698_s11 = inlined_call_operand.hbm [shape: f32[1,512], index: 11, kind: output, shape index: {1}]   ;;  %s6699_s12 = inlined_call_operand.hbm [shape: bf16[512,512], index: 12, kind: output, shape index: {2}]  }
   0x1   :  { %18 = sst [smem:[#allocation6]] %s6687_s0 }
   0x2   :  { %19 = sst [smem:[#allocation7]] %s6688_s1 }
   0x3   :  { %20 = vsyncpa [#allocation9], 0 }
   0x4   :  { %21 = vsyncpa [#allocation12], 0 }
   0x5   :  { %22 = vsyncpa [#allocation10], 0 }
   0x6   :  { %23 = vsyncpa [#allocation15], 0  ;;  %s5425_s25 = smov 0   ;;  %s5427_s26 = smov 0  }
   0x7   :  { %s5429_s27 = smov 0   ;;  %s5431_s28 = smov 0  }
   0x8 LB: > { %6760 = sst [smem:[#allocation22_spill]] %s5332_s27  ;;  %s5444_s0 = sadd.s32 4294967295, %s5336_s28   ;;  %s5336_s28 = sphi %s5431_s28, %s6891_s28   ;;  %s5332_s27 = sphi %s5429_s27, %s6893_s27   ;;  %s5328_s26 = sphi %s5427_s26, %s6895_s26   ;;  %s5324_s25 = sphi %s5425_s25, %s6894_s25  }
   0x9   : > { %s6700_s1 = sadd.s32 4294967294, %s5336_s28   ;;  %s5448_s29 = sadd.s32 1, %s5336_s28  }
   0xa   : > { %6761 = sst [smem:[#allocation23_spill]] %s5448_s29  ;;  %s293_s30 = sadd.s32 1, %s5332_s27 }
   0xb   : > { %s290_s13 = ssub.s32 %s5336_s28, %s5448_s29  ;;  %p303_p0 = scmp.ne.s32.totalorder %s5332_s27, %s5328_s26 }
   0xc   : > { %p291_p1 = scmp.eq.s32.totalorder %s290_s13, 0  ;;  %p6701_p2 = scmp.eq.s32.totalorder %s5444_s0, 1 }
   0xd   : > { %p309_p3 = scmp.ne.s32.totalorder %s5328_s26, %s5324_s25  ;;  %p310_p4 = scmp.eq.s32.totalorder %s6700_s1, 1 }
   0xe   : > { %s5460_s14 = scalar_select %p291_p1, %s5332_s27, %s293_s30  }
   0xf   : > { %p5464_p5 = por %p6701_p2, %p303_p0  ;;  %p5468_p6 = por %p310_p4, %p309_p3 }
  0x10   : > { %6762 = sst [smem:[#allocation24_spill]] %s5460_s14  ;;  %p3785_p7 = scmp.ge.s32.totalorder %s5336_s28, 1 }
  0x11   : > { %s6763_s15 = scalar_select %p5464_p5, 1, 0 }
  0x12   : > { %s6764_s16 = scalar_select %p5468_p6, 1, 0 }
  0x13   : > { %p317_p8 = scmp.lt.s32.totalorder %s5336_s28, 3  ;;  %p6702_p10 = scmp.eq.s32.totalorder %s5444_s0, 0 }
  0x14   : > { %s5338_s18 = smov [#allocation8]   ;;  %s5339_s21 = smov [#allocation11]  }
  0x15   : > { %p5476_p11 = pnand %p3785_p7, %p317_p8  ;;  %s335_s19 = sshll.u32 %s5338_s18, 4  ;;  %s336_s19 = int_to_ptr.vmem [resolvable:$true] %s335_s19 }
  0x16   : > { %s351_s22 = sshll.u32 %s5339_s21, 4  ;;  %s5150_s25 = scalar_lea.hbm %s6690_s3, 8192  ;;  %s5488_s22 = int_to_ptr.vmem [resolvable:$true] %s351_s22 }
  0x17   : > { %s6765_s17 = scalar_select %p5476_p11, 1, 0 }
  0x18   : > { %p4638_p12 = pneg %p5476_p11  ;;  %p5151_p0 = scmp.ne.s32.totalorder %s6690_s3, %s5150_s25 }
  0x19   : > { %p5157_p7 = scmp.lt.u32.totalorder %s5150_s25, %s6690_s3 }
  0x1a   : > { %p5484_p13 = pnand %p6702_p10, %p4638_p12 }
  0x1c   : > { %p5152_p1 = pneg %p5484_p13 }
  0x1e   : > { %p5153_p3 = pnand %p5152_p1, %p5151_p0 }
  0x20   : > { %p5154_p4 = pneg %p5153_p3 }
  0x22   : > { %p5159_p8 = pnand %p5157_p7, %p5154_p4 }
  0x24   : > { %5162 = shalt.err (!%p5159_p8)
}
  0x25   : > { %s5163_s21 = scalar_lea.vmem %s336_s19, 8192  ;;  %p5171_p10 = scmp.lt.s32.totalorder %s336_s19, %s336_s19 }
  0x26   : > { %p5164_p12 = scmp.ne.s32.totalorder %s336_s19, %s5163_s21  ;;  %p5172_p6 = scmp.lt.s32.totalorder %s5163_s21, %s5163_s21 }
  0x28   : > { %p5166_p2 = pnand %p5164_p12, %p5152_p1  ;;  %p5173_p5 = por %p5172_p6, %p5171_p10 }
  0x2a   : > { %p5167_p9 = pneg %p5166_p2 }
  0x2c   : > { %p5174_p11 = pnand %p5173_p5, %p5167_p9 }
  0x2e   : > { %5177 = shalt.err (!%p5174_p11)
}
  0x2f   : > { %s5340_s23 = smov 256   ;;  %s5341_s24 = smov 16  }
  0x30   : > { %4641 = dma.hbm_to_vmem [thread:$0]  (!%p5484_p13), %s6690_s3, 8192, %s336_s19, [#allocation9], %s5340_s23, %s5340_s23, %s5341_s24  }
  0x31   : > { %s5178_s18 = scalar_lea.hbm %s6692_s5, 8192 }
  0x32   : > { %p5179_p2 = scmp.ne.s32.totalorder %s6692_s5, %s5178_s18  ;;  %p5185_p9 = scmp.lt.u32.totalorder %s5178_s18, %s6692_s5 }
  0x34   : > { %p5181_p5 = pnand %p5179_p2, %p5152_p1 }
  0x36   : > { %p5182_p6 = pneg %p5181_p5 }
  0x38   : > { %p5187_p10 = pnand %p5185_p9, %p5182_p6 }
  0x3a   : > { %5190 = shalt.err (!%p5187_p10)
}
  0x3b   : > { %s5191_s19 = scalar_lea.vmem %s5488_s22, 8192  ;;  %p5199_p4 = scmp.lt.s32.totalorder %s5488_s22, %s5488_s22 }
  0x3c   : > { %p5192_p11 = scmp.ne.s32.totalorder %s5488_s22, %s5191_s19  ;;  %p5200_p7 = scmp.lt.s32.totalorder %s5191_s19, %s5191_s19 }
  0x3e   : > { %p5194_p0 = pnand %p5192_p11, %p5152_p1  ;;  %p5201_p8 = por %p5200_p7, %p5199_p4 }
  0x40   : > { %p5195_p3 = pneg %p5194_p0 }
  0x42   : > { %p5202_p12 = pnand %p5201_p8, %p5195_p3 }
  0x44   : > { %5205 = shalt.err (!%p5202_p12)
}
  0x45   : > { %s5342_s27 = smov 128   ;;  %s5343_s29 = smov 8  }
  0x46   : > { %4644 = dma.hbm_to_vmem [thread:$0]  (!%p5484_p13), %s6692_s5, 8192, %s5488_s22, [#allocation12], %s5342_s27, %s5342_s27, %s5343_s29  }
  0x47   : > { %p6767_p2 = scmp.ne.s32.totalorder %s6765_s17, 0 }
  0x49   : > { %389 = sbr.rel (%p6767_p2) target bundleno = 2015 (0x7df), region = 60 }
  0x50   : > { %p6768_p1 = scmp.eq.s32.totalorder %s5444_s0, 0 }
  0x52   : > { %5303 = dma.done.wait (%p6768_p1), [#allocation9], 8192   ;;  %p6769_p5 = pmov %p6768_p1 }
  0x53   : > { %p6770_p6 = pmov %p6768_p1 }
  0x54   : > { %5305 = vsyncadd (%p6769_p5), [#allocation9], 4294959104 }
  0x55   : > { %5307 = dma.done.wait (%p6770_p6), [#allocation12], 8192   ;;  %p6771_p9 = pmov %p6768_p1 }
  0x56   : > { %s433_s20 = sand.u32 1, %s5328_s26   ;;  %s3793_s24 = sshll.u32 %s5444_s0, 5 }
  0x57   : > { %5309 = vsyncadd (%p6771_p9), [#allocation12], 4294959104  ;;  %s3792_s22 = sshll.u32 %s433_s20, 9  ;;  %p437_p13 = scmp.lt.s32.totalorder %s3793_s24, 63 }
  0x58   : > { %s5554_s13 = scalar_lea.vmem [#allocation16], %s3792_s22  ;;  %p6772_p10 = scmp.ne.s32.totalorder %s5444_s0, 0 }
  0x59   : > { %s6897_s24 = smov (!%p437_p13, %s3793_s24), 63  ;;  %vm448_vm0 = vcmask (!%p6772_p10), 0   ;;  %v451_v0 = vlaneseq (!%p6772_p10)  ;;  %v5344_v1 = vmov (!%p6772_p10), -inf   ;;  %v5345_v2 = vmov (!%p6772_p10), 0.0  }
  0x5a   : > { %s4065_s17 = sshll.u32 %s6897_s24, 3  ;;  %447 = sbr.rel (%p6772_p10) target bundleno = 97 (0x61), region = 72  ;;  %449 = vst.msk [vmem:[#allocation2] sm:$0x1] (!%p6772_p10), %vm448_vm0, %v5344_v1  ;;  %450 = vst.msk [vmem:[#allocation3] sm:$0x1] (!%p6772_p10), %vm448_vm0, %v5345_v2 }
  0x5b   : > { %s5552_s30 = scalar_lea.vmem %s6689_s2, %s4065_s17  ;;  %vm453_vm1 = vcmp.lt.s32.totalorder (!%p6772_p10), %v451_v0, 512 }
  0x5c   : > { %455 = vst.msk [vmem:[#allocation4] sm:$0xf] (!%p6772_p10), %vm453_vm1, %v5345_v2 }
  0x61 PF: > { %v4707_v3 = vld [vmem:[#allocation8 + $0x4] ss:$16 sps:$4 sm:$0xff]   ;;  %v4709_v4 = vld [vmem:[#allocation8] ss:$16 sps:$4 sm:$0xff]   ;;  %v4784_v37 = vld [vmem:[#allocation8 + $0xc] ss:$16 sps:$4 sm:$0xff]  }
  0x62   : > { %1054 = vmatprep.subr.bf16.mxu0 %v4707_v3  ;;  %v4710_v5 = vld [vmem:[#allocation8 + $0x24] ss:$16 sps:$4 sm:$0xff]   ;;  %4460 = vmatprep.subr.bf16.mxu1 %v4707_v3  ;;  %v4712_v6 = vld [vmem:[#allocation8 + $0x20] ss:$16 sps:$4 sm:$0xff]   ;;  %v4782_v41 = vld [vmem:[#allocation8 + $0x8] ss:$16 sps:$4 sm:$0xff]  }
  0x63   : > { %1055 = vmatpush1.bf16.msra.mxu0 %v4709_v4  ;;  %4476 = vmatpush1.bf16.msra.mxu1 %v4709_v4  ;;  %v4713_v7 = vld [vmem:[#allocation8 + $0x44] ss:$16 sps:$4 sm:$0xff]   ;;  %v4715_v8 = vld [vmem:[#allocation8 + $0x40] ss:$16 sps:$4 sm:$0xff]   ;;  %v4787_v42 = vld [vmem:[#allocation8 + $0x2c] ss:$16 sps:$4 sm:$0xff]  }
  0x64   : > { %1056 = vmatprep.subr.bf16.mxu0 %v4710_v5  ;;  %4461 = vmatprep.subr.bf16.mxu1 %v4710_v5  ;;  %v4716_v9 = vld [vmem:[#allocation8 + $0x64] ss:$16 sps:$4 sm:$0xff]   ;;  %v4718_v10 = vld [vmem:[#allocation8 + $0x60] ss:$16 sps:$4 sm:$0xff]   ;;  %v4785_v46 = vld [vmem:[#allocation8 + $0x28] ss:$16 sps:$4 sm:$0xff]  }
  0x65   : > { %v4719_v11 = vld [vmem:[#allocation8 + $0x84] ss:$16 sps:$4 sm:$0xff]   ;;  %v4721_v12 = vld [vmem:[#allocation8 + $0x80] ss:$16 sps:$4 sm:$0xff]   ;;  %v4793_v48 = vld [vmem:[#allocation8 + $0x4c] ss:$16 sps:$4 sm:$0xff]  }
  0x66   : > { %v4722_v13 = vld [vmem:[#allocation8 + $0xa4] ss:$16 sps:$4 sm:$0xff]   ;;  %v4724_v14 = vld [vmem:[#allocation8 + $0xa0] ss:$16 sps:$4 sm:$0xff]   ;;  %v4791_v52 = vld [vmem:[#allocation8 + $0x48] ss:$16 sps:$4 sm:$0xff]  }
  0x67   : > { %1057 = vmatpush1.bf16.msra.mxu0 %v4712_v6  ;;  %4477 = vmatpush1.bf16.msra.mxu1 %v4712_v6  ;;  %v4725_v15 = vld [vmem:[#allocation8 + $0xc4] ss:$16 sps:$4 sm:$0xff]   ;;  %v4727_v17 = vld [vmem:[#allocation8 + $0xc0] ss:$16 sps:$4 sm:$0xff]   ;;  %v4796_v53 = vld [vmem:[#allocation8 + $0x6c] ss:$16 sps:$4 sm:$0xff]  }
  0x68   : > { %1058 = vmatprep.subr.bf16.mxu0 %v4713_v7  ;;  %4462 = vmatprep.subr.bf16.mxu1 %v4713_v7  ;;  %v5559_v16 = vld [vmem:[%s5552_s30 + $0x4] ss:$8 sps:$4 sm:$0xff]   ;;  %v5567_v38 = vld [vmem:[%s5552_s30] ss:$8 sps:$4 sm:$0xff]   ;;  %v5570_v39 = vld [vmem:[%s5552_s30 + $0x14] ss:$8 sps:$4 sm:$0xff]  }
  0x69   : > { %v4728_v18 = vld [vmem:[#allocation8 + $0xe4] ss:$16 sps:$4 sm:$0xff]   ;;  %1086 = vmatprep.mubr.bf16.mxu0 %v5559_v16  ;;  %v4730_v19 = vld [vmem:[#allocation8 + $0xe0] ss:$16 sps:$4 sm:$0xff]   ;;  %v4794_v57 = vld [vmem:[#allocation8 + $0x68] ss:$16 sps:$4 sm:$0xff]  }
  0x6a   : > { %v4731_v20 = vld [vmem:[#allocation8 + $0x104] ss:$16 sps:$4 sm:$0xff]   ;;  %v4733_v21 = vld [vmem:[#allocation8 + $0x100] ss:$16 sps:$4 sm:$0xff]   ;;  %v4802_v59 = vld [vmem:[#allocation8 + $0x8c] ss:$16 sps:$4 sm:$0xff]  }
  0x6b   : > { %1059 = vmatpush1.bf16.msra.mxu0 %v4715_v8  ;;  %4478 = vmatpush1.bf16.msra.mxu1 %v4715_v8  ;;  %v4734_v22 = vld [vmem:[#allocation8 + $0x124] ss:$16 sps:$4 sm:$0xff]   ;;  %v4736_v24 = vld [vmem:[#allocation8 + $0x120] ss:$16 sps:$4 sm:$0xff]   ;;  %v4800_v63 = vld [vmem:[#allocation8 + $0x88] ss:$16 sps:$4 sm:$0xff]  }
  0x6c   : > { %1060 = vmatprep.subr.bf16.mxu0 %v4716_v9  ;;  %4463 = vmatprep.subr.bf16.mxu1 %v4716_v9  ;;  %v5563_v23 = vld [vmem:[%s5552_s30 + $0x84] ss:$8 sps:$4 sm:$0xff]   ;;  %v5573_v40 = vld [vmem:[%s5552_s30 + $0x80] ss:$8 sps:$4 sm:$0xff]   ;;  %v5576_v43 = vld [vmem:[%s5552_s30 + $0x94] ss:$8 sps:$4 sm:$0xff]  }
  0x6d   : > { %v4737_v25 = vld [vmem:[#allocation8 + $0x144] ss:$16 sps:$4 sm:$0xff]   ;;  %1166 = vmatprep.mubr.bf16.mxu1 %v5563_v23  ;;  %v4739_v26 = vld [vmem:[#allocation8 + $0x140] ss:$16 sps:$4 sm:$0xff]   ;;  %v4805_v0 = vld [vmem:[#allocation8 + $0xac] ss:$16 sps:$4 sm:$0xff]  }
  0x6e   : > { %v4740_v27 = vld [vmem:[#allocation8 + $0x164] ss:$16 sps:$4 sm:$0xff]   ;;  %v4742_v28 = vld [vmem:[#allocation8 + $0x160] ss:$16 sps:$4 sm:$0xff]   ;;  %v4803_v2 = vld [vmem:[#allocation8 + $0xa8] ss:$16 sps:$4 sm:$0xff]  }
  0x6f   : > { %1061 = vmatpush1.bf16.msra.mxu0 %v4718_v10  ;;  %4479 = vmatpush1.bf16.msra.mxu1 %v4718_v10  ;;  %v4743_v29 = vld [vmem:[#allocation8 + $0x184] ss:$16 sps:$4 sm:$0xff]   ;;  %v4745_v30 = vld [vmem:[#allocation8 + $0x180] ss:$16 sps:$4 sm:$0xff]   ;;  %v4811_v4 = vld [vmem:[#allocation8 + $0xcc] ss:$16 sps:$4 sm:$0xff]  }
  0x70   : > { %1062 = vmatprep.subr.bf16.mxu0 %v4719_v11  ;;  %4464 = vmatprep.subr.bf16.mxu1 %v4719_v11  ;;  %v4746_v31 = vld [vmem:[#allocation8 + $0x1a4] ss:$16 sps:$4 sm:$0xff]   ;;  %v4748_v32 = vld [vmem:[#allocation8 + $0x1a0] ss:$16 sps:$4 sm:$0xff]   ;;  %v4809_v10 = vld [vmem:[#allocation8 + $0xc8] ss:$16 sps:$4 sm:$0xff]  }
  0x71   : > { %v4749_v33 = vld [vmem:[#allocation8 + $0x1c4] ss:$16 sps:$4 sm:$0xff]   ;;  %v4751_v34 = vld [vmem:[#allocation8 + $0x1c0] ss:$16 sps:$4 sm:$0xff]   ;;  %v4814_v11 = vld [vmem:[#allocation8 + $0xec] ss:$16 sps:$4 sm:$0xff]  }
  0x72   : > { %v4752_v35 = vld [vmem:[#allocation8 + $0x1e4] ss:$16 sps:$4 sm:$0xff]   ;;  %v4754_v36 = vld [vmem:[#allocation8 + $0x1e0] ss:$16 sps:$4 sm:$0xff]   ;;  %s3135_s23 = sld [smem:[#allocation6]]  ;;  %s4053_s24 = sshll.u32 %s5444_s0, 8 }
  0x73   : > { %1063 = vmatpush1.bf16.msra.mxu0 %v4721_v12  ;;  %4480 = vmatpush1.bf16.msra.mxu1 %v4721_v12  ;;  %v4853_v44 = vld [vmem:[#allocation11 + $0x4] ss:$8 sps:$4 sm:$0xff]   ;;  %v4851_v45 = vld [vmem:[#allocation11] ss:$8 sps:$4 sm:$0xff]   ;;  %v4856_v47 = vld [vmem:[#allocation11 + $0x14] ss:$8 sps:$4 sm:$0xff]  }
  0x74   : > { %1064 = vmatprep.subr.bf16.mxu0 %v4722_v13  ;;  %4465 = vmatprep.subr.bf16.mxu1 %v4722_v13  ;;  %v5583_v49 = vld [vmem:[%s5552_s30 + $0x10] ss:$8 sps:$4 sm:$0xff]   ;;  %v5586_v50 = vld [vmem:[%s5552_s30 + $0x24] ss:$8 sps:$4 sm:$0xff]   ;;  %v5598_v58 = vld [vmem:[%s5552_s30 + $0x20] ss:$8 sps:$4 sm:$0xff]  }
  0x75   : > { %v5589_v51 = vld [vmem:[%s5552_s30 + $0x90] ss:$8 sps:$4 sm:$0xff]   ;;  %v5592_v54 = vld [vmem:[%s5552_s30 + $0xa4] ss:$8 sps:$4 sm:$0xff]   ;;  %v5602_v61 = vld [vmem:[%s5552_s30 + $0x34] ss:$8 sps:$4 sm:$0xff]  }
  0x76   : > { %v4854_v55 = vld [vmem:[#allocation11 + $0x10] ss:$8 sps:$4 sm:$0xff]   ;;  %v4859_v56 = vld [vmem:[#allocation11 + $0x24] ss:$8 sps:$4 sm:$0xff]   ;;  %v4857_v60 = vld [vmem:[#allocation11 + $0x20] ss:$8 sps:$4 sm:$0xff]  }
  0x77   : > { %1065 = vmatpush1.bf16.msra.mxu0 %v4724_v14  ;;  %4481 = vmatpush1.bf16.msra.mxu1 %v4724_v14  ;;  %v5605_v62 = vld [vmem:[%s5552_s30 + $0xa0] ss:$8 sps:$4 sm:$0xff]   ;;  %v5608_v1 = vld [vmem:[%s5552_s30 + $0xb4] ss:$8 sps:$4 sm:$0xff]   ;;  %v5614_v7 = vld [vmem:[%s5552_s30 + $0x30] ss:$8 sps:$4 sm:$0xff]  }
  0x78   : > { %1066 = vmatprep.subr.bf16.mxu0 %v4725_v15  ;;  %4466 = vmatprep.subr.bf16.mxu1 %v4725_v15  ;;  %v4862_v3 = vld [vmem:[#allocation11 + $0x34] ss:$8 sps:$4 sm:$0xff]   ;;  %v4860_v5 = vld [vmem:[#allocation11 + $0x30] ss:$8 sps:$4 sm:$0xff]   ;;  %v4865_v6 = vld [vmem:[#allocation11 + $0x44] ss:$8 sps:$4 sm:$0xff]  }
  0x79   : > { %v5618_v8 = vld [vmem:[%s5552_s30 + $0xb0] ss:$8 sps:$4 sm:$0xff]   ;;  %v5621_v9 = vld [vmem:[%s5552_s30 + $0x44] ss:$8 sps:$4 sm:$0xff]   ;;  %s3055_s20 = sld [smem:[#allocation7]]  ;;  %vm3142_vm4 = vcmask 1040384  }
  0x7a   : > { %v5624_v12 = vld [vmem:[%s5552_s30 + $0xc4] ss:$8 sps:$4 sm:$0xff]   ;;  %s3384_s22 = sshra.s32 %s4053_s24, 7  ;;  %vm3363_vm6 = vcmask 0   ;;  %p4054_p11 = scmp.ne.s32.totalorder %s5444_s0, 1 }
  0x7b   : > { %1067 = vmatpush1.bf16.msra.mxu0 %v4727_v17  ;;  %4482 = vmatpush1.bf16.msra.mxu1 %v4727_v17  ;;  %v4863_v13 = vld [vmem:[#allocation11 + $0x40] ss:$8 sps:$4 sm:$0xff]   ;;  %v4868_v14 = vld [vmem:[#allocation11 + $0x54] ss:$8 sps:$4 sm:$0xff]   ;;  %s3386_s17 = scalar_lea.vmem [#allocation5], %s3384_s22  ;;  %vm3639_vm8 = vcmask (!%p4054_p11), 8192  }
  0x7c   : > { %1068 = vmatprep.subr.bf16.mxu0 %v4728_v18  ;;  %4467 = vmatprep.subr.bf16.mxu1 %v4728_v18  ;;  %v4812_v15 = vld [vmem:[#allocation8 + $0xe8] ss:$16 sps:$4 sm:$0xff]   ;;  %v4820_v17 = vld [vmem:[#allocation8 + $0x10c] ss:$16 sps:$4 sm:$0xff]  }
  0x7d   : > { %v4866_v18 = vld [vmem:[#allocation11 + $0x50] ss:$8 sps:$4 sm:$0xff]  }
  0x7f   : > { %1069 = vmatpush1.bf16.msra.mxu0 %v4730_v19  ;;  %4483 = vmatpush1.bf16.msra.mxu1 %v4730_v19  ;;  %v5630_v19 = vld [vmem:[%s5552_s30 + $0x40] ss:$8 sps:$4 sm:$0xff]  }
  0x80   : > { %1070 = vmatprep.subr.bf16.mxu0 %v4731_v20  ;;  %4468 = vmatprep.subr.bf16.mxu1 %v4731_v20  ;;  %v5634_v20 = vld [vmem:[%s5552_s30 + $0xc0] ss:$8 sps:$4 sm:$0xff]  }
  0x83   : > { %1071 = vmatpush1.bf16.msra.mxu0 %v4733_v21  ;;  %4484 = vmatpush1.bf16.msra.mxu1 %v4733_v21  ;;  %v5637_v21 = vld [vmem:[%s5552_s30 + $0x54] ss:$8 sps:$4 sm:$0xff]  }
  0x84   : > { %1072 = vmatprep.subr.bf16.mxu0 %v4734_v22  ;;  %4469 = vmatprep.subr.bf16.mxu1 %v4734_v22  ;;  %v4818_v22 = vld [vmem:[#allocation8 + $0x108] ss:$16 sps:$4 sm:$0xff]  }
  0x87   : > { %1073 = vmatpush1.bf16.msra.mxu0 %v4736_v24  ;;  %4485 = vmatpush1.bf16.msra.mxu1 %v4736_v24  ;;  %v4823_v24 = vld [vmem:[#allocation8 + $0x12c] ss:$16 sps:$4 sm:$0xff]  }
  0x88   : > { %1074 = vmatprep.subr.bf16.mxu0 %v4737_v25  ;;  %4470 = vmatprep.subr.bf16.mxu1 %v4737_v25  ;;  %v5640_v25 = vld [vmem:[%s5552_s30 + $0xd4] ss:$8 sps:$4 sm:$0xff]  }
  0x8b   : > { %1075 = vmatpush1.bf16.msra.mxu0 %v4739_v26  ;;  %4486 = vmatpush1.bf16.msra.mxu1 %v4739_v26  ;;  %v4871_v26 = vld [vmem:[#allocation11 + $0x64] ss:$8 sps:$4 sm:$0xff]  }
  0x8c   : > { %1076 = vmatprep.subr.bf16.mxu0 %v4740_v27  ;;  %4471 = vmatprep.subr.bf16.mxu1 %v4740_v27  ;;  %v4869_v27 = vld [vmem:[#allocation11 + $0x60] ss:$8 sps:$4 sm:$0xff]  }
  0x8f   : > { %1077 = vmatpush1.bf16.msra.mxu0 %v4742_v28  ;;  %4487 = vmatpush1.bf16.msra.mxu1 %v4742_v28  ;;  %v4821_v28 = vld [vmem:[#allocation8 + $0x128] ss:$16 sps:$4 sm:$0xff]  }
  0x90   : > { %1078 = vmatprep.subr.bf16.mxu0 %v4743_v29  ;;  %4472 = vmatprep.subr.bf16.mxu1 %v4743_v29  ;;  %v4874_v29 = vld [vmem:[#allocation11 + $0x74] ss:$8 sps:$4 sm:$0xff]  }
  0x93   : > { %1079 = vmatpush1.bf16.msra.mxu0 %v4745_v30  ;;  %4488 = vmatpush1.bf16.msra.mxu1 %v4745_v30  ;;  %v4829_v30 = vld [vmem:[#allocation8 + $0x14c] ss:$16 sps:$4 sm:$0xff]  }
  0x94   : > { %1080 = vmatprep.subr.bf16.mxu0 %v4746_v31  ;;  %4473 = vmatprep.subr.bf16.mxu1 %v4746_v31  ;;  %v5647_v31 = vld [vmem:[%s5552_s30 + $0x50] ss:$8 sps:$4 sm:$0xff]  }
  0x97   : > { %1081 = vmatpush1.bf16.msra.mxu0 %v4748_v32  ;;  %4489 = vmatpush1.bf16.msra.mxu1 %v4748_v32  ;;  %v5650_v32 = vld [vmem:[%s5552_s30 + $0xd0] ss:$8 sps:$4 sm:$0xff]  }
  0x98   : > { %1082 = vmatprep.subr.bf16.mxu0 %v4749_v33  ;;  %4474 = vmatprep.subr.bf16.mxu1 %v4749_v33  ;;  %v5653_v33 = vld [vmem:[%s5552_s30 + $0x64] ss:$8 sps:$4 sm:$0xff]  }
  0x9b   : > { %1083 = vmatpush1.bf16.msra.mxu0 %v4751_v34  ;;  %4490 = vmatpush1.bf16.msra.mxu1 %v4751_v34  ;;  %v4827_v34 = vld [vmem:[#allocation8 + $0x148] ss:$16 sps:$4 sm:$0xff]  }
  0x9c   : > { %1084 = vmatprep.subr.bf16.mxu0 %v4752_v35  ;;  %4475 = vmatprep.subr.bf16.mxu1 %v4752_v35  ;;  %v4832_v35 = vld [vmem:[#allocation8 + $0x16c] ss:$16 sps:$4 sm:$0xff]  }
  0x9f   : > { %1085 = vmatpush1.bf16.msra.mxu0 %v4754_v36  ;;  %4491 = vmatpush1.bf16.msra.mxu1 %v4754_v36  ;;  %v5656_v36 = vld [vmem:[%s5552_s30 + $0xe4] ss:$8 sps:$4 sm:$0xff]  }
  0xa0   : > { %1247 = vmatprep.subr.bf16.mxu1 %v4784_v37  ;;  %2412 = vmatprep.subr.bf16.mxu0 %v4853_v44  ;;  %v4872_v37 = vld [vmem:[#allocation11 + $0x70] ss:$8 sps:$4 sm:$0xff]   ;;  %v4838_v44 = vld [vmem:[#allocation8 + $0x18c] ss:$16 sps:$4 sm:$0xff]  }
  0xa2   : > { %1087 = vmatmul.mubr.bf16.vlgmr.msra.gmra.mrb[0].mxu0 %v5567_v38  ;;  %1167 = vmatmul.mubr.bf16.vlgmr.msra.gmra.mrb[0].mxu1 %v5573_v40 }
  0xa3   : > { %1096 = vmatprep.mubr.bf16.mxu0 %v5570_v39  ;;  %1248 = vmatpush1.bf16.msra.mxu1 %v4782_v41  ;;  %v4877_v41 = vld [vmem:[#allocation11 + $0x84] ss:$8 sps:$4 sm:$0xff]  }
  0xa4   : > { %1249 = vmatprep.subr.bf16.mxu1 %v4787_v42  ;;  %1176 = vmatprep.mubr.bf16.mxu1 %v5576_v43  ;;  %v4830_v42 = vld [vmem:[#allocation8 + $0x168] ss:$16 sps:$4 sm:$0xff]  }
  0xa5   : > { %2413 = vmatpush1.bf16.msra.mxu0 %v4851_v45  ;;  %v4875_v45 = vld [vmem:[#allocation11 + $0x80] ss:$8 sps:$4 sm:$0xff]  }
  0xa6   : > { %2414 = vmatprep.subr.bf16.mxu0 %v4856_v47  ;;  %v5666_v47 = vld [vmem:[%s5552_s30 + $0xe0] ss:$8 sps:$4 sm:$0xff]  }
  0xa7   : > { %1250 = vmatpush1.bf16.msra.mxu1 %v4785_v46  ;;  %v5663_v46 = vld [vmem:[%s5552_s30 + $0x60] ss:$8 sps:$4 sm:$0xff]  }
  0xa8   : > { %1251 = vmatprep.subr.bf16.mxu1 %v4793_v48  ;;  %v5669_v48 = vld [vmem:[%s5552_s30 + $0x74] ss:$8 sps:$4 sm:$0xff]  }
  0xa9   : > { %2415 = vmatpush1.bf16.msra.mxu0 %v4854_v55  ;;  %v5672_v55 = vld [vmem:[%s5552_s30 + $0xf4] ss:$8 sps:$4 sm:$0xff]  }
  0xaa   : > { %1097 = vmatmul.mubr.bf16.gmra.mrb[4].mxu0 %v5583_v49  ;;  %1177 = vmatmul.mubr.bf16.gmra.mrb[4].mxu1 %v5589_v51 }
  0xab   : > { %1106 = vmatprep.mubr.bf16.mxu0 %v5586_v50  ;;  %1252 = vmatpush1.bf16.msra.mxu1 %v4791_v52  ;;  %v4836_v52 = vld [vmem:[#allocation8 + $0x188] ss:$16 sps:$4 sm:$0xff]  }
  0xac   : > { %1253 = vmatprep.subr.bf16.mxu1 %v4796_v53  ;;  %1186 = vmatprep.mubr.bf16.mxu1 %v5592_v54  ;;  %v4841_v53 = vld [vmem:[#allocation8 + $0x1ac] ss:$16 sps:$4 sm:$0xff]  }
  0xad   : > { %2416 = vmatprep.subr.bf16.mxu0 %v4859_v56  ;;  %v4880_v56 = vld [vmem:[#allocation11 + $0x94] ss:$8 sps:$4 sm:$0xff]  }
  0xae   : > { %2417 = vmatpush1.bf16.msra.mxu0 %v4857_v60  ;;  %v4883_v60 = vld [vmem:[#allocation11 + $0xa4] ss:$8 sps:$4 sm:$0xff]  }
  0xaf   : > { %1254 = vmatpush1.bf16.msra.mxu1 %v4794_v57  ;;  %2418 = vmatprep.subr.bf16.mxu0 %v4862_v3  ;;  %v4878_v57 = vld [vmem:[#allocation11 + $0x90] ss:$8 sps:$4 sm:$0xff]  }
  0xb0   : > { %1255 = vmatprep.subr.bf16.mxu1 %v4802_v59  ;;  %v4839_v59 = vld [vmem:[#allocation8 + $0x1a8] ss:$16 sps:$4 sm:$0xff]  }
  0xb1   : > { %v4845_v3 = vld [vmem:[#allocation8 + $0x1c8] ss:$16 sps:$4 sm:$0xff]  }
  0xb2   : > { %1107 = vmatmul.mubr.bf16.gmra.mrb[8].mxu0 %v5598_v58  ;;  %1187 = vmatmul.mubr.bf16.gmra.mrb[8].mxu1 %v5605_v62 }
  0xb3   : > { %1116 = vmatprep.mubr.bf16.mxu0 %v5602_v61  ;;  %1256 = vmatpush1.bf16.msra.mxu1 %v4800_v63  ;;  %v4847_v63 = vld [vmem:[#allocation8 + $0x1cc] ss:$16 sps:$4 sm:$0xff]  }
  0xb4   : > { %1257 = vmatprep.subr.bf16.mxu1 %v4805_v0  ;;  %1196 = vmatprep.mubr.bf16.mxu1 %v5608_v1  ;;  %v4778_v0 = vld [vmem:[%s5552_s30 + $0x70] ss:$8 sps:$4 sm:$0xff]  }
  0xb5   : > { %2419 = vmatpush1.bf16.msra.mxu0 %v4860_v5  ;;  %v4881_v5 = vld [vmem:[#allocation11 + $0xa0] ss:$8 sps:$4 sm:$0xff]  }
  0xb6   : > { %2420 = vmatprep.subr.bf16.mxu0 %v4865_v6  ;;  %v4886_v6 = vld [vmem:[#allocation11 + $0xb4] ss:$8 sps:$4 sm:$0xff]  }
  0xb7   : > { %1258 = vmatpush1.bf16.msra.mxu1 %v4803_v2  ;;  %v5680_v2 = vld [vmem:[%s5552_s30 + $0xf0] ss:$8 sps:$4 sm:$0xff]  }
  0xb8   : > { %1259 = vmatprep.subr.bf16.mxu1 %v4811_v4  ;;  %v4850_v4 = vld [vmem:[#allocation8 + $0x1ec] ss:$16 sps:$4 sm:$0xff]  }
  0xb9   : > { %2421 = vmatpush1.bf16.msra.mxu0 %v4863_v13  ;;  %v4889_v13 = vld [vmem:[#allocation11 + $0xc4] ss:$8 sps:$4 sm:$0xff]  }
  0xba   : > { %1117 = vmatmul.mubr.bf16.gmra.mrb[12].mxu0 %v5614_v7  ;;  %1197 = vmatmul.mubr.bf16.gmra.mrb[12].mxu1 %v5618_v8 }
  0xbb   : > { %1126 = vmatprep.mubr.bf16.mxu0 %v5621_v9  ;;  %1260 = vmatpush1.bf16.msra.mxu1 %v4809_v10  ;;  %v4848_v10 = vld [vmem:[#allocation8 + $0x1e8] ss:$16 sps:$4 sm:$0xff]  }
  0xbc   : > { %1261 = vmatprep.subr.bf16.mxu1 %v4814_v11  ;;  %1206 = vmatprep.mubr.bf16.mxu1 %v5624_v12  ;;  %v4884_v11 = vld [vmem:[#allocation11 + $0xb0] ss:$8 sps:$4 sm:$0xff]  }
  0xbd   : > { %2422 = vmatprep.subr.bf16.mxu0 %v4868_v14  ;;  %v4887_v14 = vld [vmem:[#allocation11 + $0xc0] ss:$8 sps:$4 sm:$0xff]  }
  0xbe   : > { %2423 = vmatpush1.bf16.msra.mxu0 %v4866_v18  ;;  %v4893_v18 = vld [vmem:[#allocation11 + $0xe0] ss:$8 sps:$4 sm:$0xff]  }
  0xbf   : > { %1262 = vmatpush1.bf16.msra.mxu1 %v4812_v15  ;;  %2424 = vmatprep.subr.bf16.mxu0 %v4871_v26  ;;  %v4892_v15 = vld [vmem:[#allocation11 + $0xd4] ss:$8 sps:$4 sm:$0xff]  }
  0xc0   : > { %1263 = vmatprep.subr.bf16.mxu1 %v4820_v17  ;;  %v4890_v17 = vld [vmem:[#allocation11 + $0xd0] ss:$8 sps:$4 sm:$0xff]  }
  0xc2   : > { %1127 = vmatmul.mubr.bf16.gmra.mrb[16].mxu0 %v5630_v19  ;;  %1207 = vmatmul.mubr.bf16.gmra.mrb[16].mxu1 %v5634_v20 }
  0xc3   : > { %1136 = vmatprep.mubr.bf16.mxu0 %v5637_v21  ;;  %1264 = vmatpush1.bf16.msra.mxu1 %v4818_v22 }
  0xc4   : > { %1265 = vmatprep.subr.bf16.mxu1 %v4823_v24  ;;  %1216 = vmatprep.mubr.bf16.mxu1 %v5640_v25 }
  0xc5   : > { %2425 = vmatpush1.bf16.msra.mxu0 %v4869_v27 }
  0xc6   : > { %2426 = vmatprep.subr.bf16.mxu0 %v4874_v29 }
  0xc7   : > { %1266 = vmatpush1.bf16.msra.mxu1 %v4821_v28 }
  0xc8   : > { %1267 = vmatprep.subr.bf16.mxu1 %v4829_v30 }
  0xc9   : > { %2427 = vmatpush1.bf16.msra.mxu0 %v4872_v37 }
  0xca   : > { %1137 = vmatmul.mubr.bf16.gmra.mrb[20].mxu0 %v5647_v31  ;;  %1217 = vmatmul.mubr.bf16.gmra.mrb[20].mxu1 %v5650_v32 }
  0xcb   : > { %1146 = vmatprep.mubr.bf16.mxu0 %v5653_v33  ;;  %1268 = vmatpush1.bf16.msra.mxu1 %v4827_v34 }
  0xcc   : > { %1269 = vmatprep.subr.bf16.mxu1 %v4832_v35  ;;  %1226 = vmatprep.mubr.bf16.mxu1 %v5656_v36 }
  0xcd   : > { %2428 = vmatprep.subr.bf16.mxu0 %v4877_v41 }
  0xce   : > { %2429 = vmatpush1.bf16.msra.mxu0 %v4875_v45 }
  0xcf   : > { %1270 = vmatpush1.bf16.msra.mxu1 %v4830_v42  ;;  %2430 = vmatprep.subr.bf16.mxu0 %v4880_v56 }
  0xd0   : > { %1271 = vmatprep.subr.bf16.mxu1 %v4838_v44 }
  0xd2   : > { %1147 = vmatmul.mubr.bf16.gmra.mrb[24].mxu0 %v5663_v46  ;;  %1227 = vmatmul.mubr.bf16.gmra.mrb[24].mxu1 %v5666_v47 }
  0xd3   : > { %1156 = vmatprep.mubr.bf16.mxu0 %v5669_v48  ;;  %1272 = vmatpush1.bf16.msra.mxu1 %v4836_v52 }
  0xd4   : > { %1273 = vmatprep.subr.bf16.mxu1 %v4841_v53  ;;  %1236 = vmatprep.mubr.bf16.mxu1 %v5672_v55 }
  0xd5   : > { %2431 = vmatpush1.bf16.msra.mxu0 %v4878_v57 }
  0xd6   : > { %2432 = vmatprep.subr.bf16.mxu0 %v4883_v60 }
  0xd7   : > { %1274 = vmatpush1.bf16.msra.mxu1 %v4839_v59 }
  0xd8   : > { %1275 = vmatprep.subr.bf16.mxu1 %v4847_v63  ;;  %v4904_v63 = vld [vmem:[#allocation11 + $0x114] ss:$8 sps:$4 sm:$0xff]  }
  0xd9   : > { %2433 = vmatpush1.bf16.msra.mxu0 %v4881_v5 }
  0xda   : > { %1157 = vmatmul.mubr.bf16.gmra.mrb[28].mxu0 %v4778_v0  ;;  %1237 = vmatmul.mubr.bf16.gmra.mrb[28].mxu1 %v5680_v2 }
  0xdb   : > { %1276 = vmatpush1.bf16.msra.mxu1 %v4845_v3  ;;  %1279 = vmatprep.mubr.bf16.mxu1 %v5559_v16  ;;  %v4895_v16 = vld [vmem:[#allocation11 + $0xe4] ss:$8 sps:$4 sm:$0xff]  }
  0xdc   : > { %1277 = vmatprep.subr.bf16.mxu1 %v4850_v4  ;;  %2434 = vmatprep.subr.bf16.mxu0 %v4886_v6 }
  0xdd   : > { %2435 = vmatpush1.bf16.msra.mxu0 %v4884_v11 }
  0xde   : > { %2436 = vmatprep.subr.bf16.mxu0 %v4889_v13 }
  0xdf   : > { %1278 = vmatpush1.bf16.msra.mxu1 %v4848_v10 }
  0xe1   : > { %2437 = vmatpush1.bf16.msra.mxu0 %v4887_v14 }
  0xe2   : > { %1280 = vmatmul.mubr.bf16.vlgmr.msra.gmra.mrb[32].mxu1 %v5567_v38  ;;  %2438 = vmatprep.subr.bf16.mxu0 %v4892_v15  ;;  %v4898_v38 = vld [vmem:[#allocation11 + $0xf4] ss:$8 sps:$4 sm:$0xff]  }
  0xe3   : > { %1289 = vmatprep.mubr.bf16.mxu1 %v5570_v39  ;;  %v4896_v39 = vld [vmem:[#allocation11 + $0xf0] ss:$8 sps:$4 sm:$0xff]  }
  0xe5   : > { %2439 = vmatpush1.bf16.msra.mxu0 %v4890_v17 }
  0xe6   : > { %2440 = vmatprep.subr.bf16.mxu0 %v4895_v16 }
  0xe9   : > { %2441 = vmatpush1.bf16.msra.mxu0 %v4893_v18 }
  0xea   : > { %1290 = vmatmul.mubr.bf16.gmra.mrb[36].mxu1 %v5583_v49  ;;  %2442 = vmatprep.subr.bf16.mxu0 %v4898_v38  ;;  %v4901_v49 = vld [vmem:[#allocation11 + $0x104] ss:$8 sps:$4 sm:$0xff]   ;;  %v4902_v38 = vld [vmem:[#allocation11 + $0x110] ss:$8 sps:$4 sm:$0xff]  }
  0xeb   : > { %1299 = vmatprep.mubr.bf16.mxu1 %v5586_v50  ;;  %v5723_v50 = vld [vmem:[%s6691_s4] sm:$0xf] }
  0xed   : > { %2443 = vmatpush1.bf16.msra.mxu0 %v4896_v39 }
  0xee   : > { %2605 = vmatprep.subr.bf16.mxu0 %v4901_v49 }
  0xf2   : > { %1300 = vmatmul.mubr.bf16.gmra.mrb[40].mxu1 %v5598_v58 }
  0xf3   : > { %1309 = vmatprep.mubr.bf16.mxu1 %v5602_v61 }
  0xfa   : > { %1310 = vmatmul.mubr.bf16.gmra.mrb[44].mxu1 %v5614_v7 }
  0xfb   : > { %1319 = vmatprep.mubr.bf16.mxu1 %v5621_v9 }
 0x102   : > { %1320 = vmatmul.mubr.bf16.gmra.mrb[48].mxu1 %v5630_v19 }
 0x103   : > { %1329 = vmatprep.mubr.bf16.mxu1 %v5637_v21 }
 0x10a   : > { %1330 = vmatmul.mubr.bf16.gmra.mrb[52].mxu1 %v5647_v31 }
 0x10b   : > { %1339 = vmatprep.mubr.bf16.mxu1 %v5653_v33 }
 0x112   : > { %1340 = vmatmul.mubr.bf16.gmra.mrb[56].mxu1 %v5663_v46 }
 0x113   : > { %1349 = vmatprep.mubr.bf16.mxu1 %v5669_v48 }
 0x11a   : > { %1350 = vmatmul.mubr.bf16.gmra.mrb[60].mxu1 %v4778_v0 }
 0x11b   : > { %1359 = vmatprep.mubr.bf16.mxu1 %v5563_v23  ;;  %v6710_v23 = vlaneseq }
 0x122   : > { %1360 = vmatmul.mubr.bf16.gmra.mrb[64].mxu1 %v5573_v40  ;;  %v5715_v40 = vshrl.u32 %v6710_v23, 7 }
 0x123   : > { %1369 = vmatprep.mubr.bf16.mxu1 %v5576_v43 }
 0x124   : > { %6773 = vst [vmem:[#allocation25_spill] sm:$0xff] %v5715_v40  ;;  %v5718_v43 = vsub.s32 0, %v5715_v40 }
 0x126   : > { %6774 = vst [vmem:[#allocation26_spill] sm:$0xff] %v5718_v43 }
 0x12a   : > { %1370 = vmatmul.mubr.bf16.gmra.mrb[68].mxu1 %v5589_v51  ;;  %v5726_v51 = vsub.s32 1, %v5715_v40 }
 0x12b   : > { %1379 = vmatprep.mubr.bf16.mxu1 %v5592_v54  ;;  %v5730_v54 = vrot.slane %v5723_v50, %v5718_v43 }
 0x12c   : > { %6775 = vst [vmem:[#allocation27_spill] sm:$0xff] %v5726_v51  ;;  %v5734_v58 = vrot.slane %v5723_v50, %v5726_v51 }
 0x132   : > { %1380 = vmatmul.mubr.bf16.gmra.mrb[72].mxu1 %v5605_v62 }
 0x133   : > { %1389 = vmatprep.mubr.bf16.mxu1 %v5608_v1 }
 0x13a   : > { %1390 = vmatmul.mubr.bf16.gmra.mrb[76].mxu1 %v5618_v8 }
 0x13b   : > { %1399 = vmatprep.mubr.bf16.mxu1 %v5624_v12 }
 0x142   : > { %1400 = vmatmul.mubr.bf16.gmra.mrb[80].mxu1 %v5634_v20 }
 0x143   : > { %1409 = vmatprep.mubr.bf16.mxu1 %v5640_v25 }
 0x14a   : > { %1410 = vmatmul.mubr.bf16.gmra.mrb[84].mxu1 %v5650_v32 }
 0x14b   : > { %1419 = vmatprep.mubr.bf16.mxu1 %v5656_v36 }
 0x152   : > { %1420 = vmatmul.mubr.bf16.gmra.mrb[88].mxu1 %v5666_v47 }
 0x153   : > { %1429 = vmatprep.mubr.bf16.mxu1 %v5672_v55  ;;  %v4899_v55 = vld [vmem:[#allocation11 + $0x100] ss:$8 sps:$4 sm:$0xff]  }
 0x15a   : > { %1430 = vmatmul.mubr.bf16.gmra.mrb[92].mxu1 %v5680_v2 }
 0x175   : > { %v1088_v61 = vpop.f32.mrb[0].mxu0  ;;  %v1168_v62 = vpop.f32.mrb[0].mxu1 }
 0x176   : > { %v1089_v1 = vadd.f32 %v1088_v61, %v5730_v54  ;;  %v1090_v7 = vpop.f32.mrb[1].mxu0  ;;  %v1169_v8 = vadd.f32 %v1168_v62, %v5730_v54  ;;  %v1170_v9 = vpop.f32.mrb[1].mxu1  ;;  %v4907_v61 = vld [vmem:[#allocation11 + $0x124] ss:$8 sps:$4 sm:$0xff]  }
 0x177   : > { %v1091_v12 = vadd.f32 %v1090_v7, %v5734_v58  ;;  %v1092_v19 = vpop.f32.mrb[2].mxu0  ;;  %v1171_v20 = vadd.f32 %v1170_v9, %v5734_v58  ;;  %v1172_v21 = vpop.f32.mrb[2].mxu1 }
 0x178   : > { %v1440_v22 = vmax.f32 %v1089_v1, 0.0  ;;  %v1093_v24 = vadd.f32 %v1092_v19, %v5730_v54  ;;  %v1094_v25 = vpop.f32.mrb[3].mxu0  ;;  %v1504_v26 = vmax.f32 %v1169_v8, 0.0  ;;  %v1173_v27 = vadd.f32 %v1172_v21, %v5730_v54  ;;  %v1174_v28 = vpop.f32.mrb[3].mxu1 }
 0x179   : > { %v1441_v29 = vmax.f32 %v1091_v12, 0.0  ;;  %v1095_v30 = vadd.f32 %v1094_v25, %v5734_v58  ;;  %v1505_v31 = vmax.f32 %v1171_v20, 0.0  ;;  %v1175_v32 = vadd.f32 %v1174_v28, %v5734_v58 }
 0x17a   : > { %v1444_v33 = vmax.f32 %v1093_v24, 0.0  ;;  %v1508_v34 = vmax.f32 %v1173_v27, 0.0 }
 0x17b   : > { %v4066_v35 = vpack.c.bf16 %v1441_v29, %v1440_v22  ;;  %v1445_v36 = vmax.f32 %v1095_v30, 0.0  ;;  %v4098_v37 = vpack.c.bf16 %v1505_v31, %v1504_v26  ;;  %v1509_v41 = vmax.f32 %v1175_v32, 0.0 }
 0x17c   : > { %v5744_v42 = vpack.c.bf16 %v1444_v33, %v1440_v22  ;;  %v5746_v44 = vpack.c.bf16 %v1508_v34, %v1504_v26  ;;  %v4905_v26 = vld [vmem:[#allocation11 + $0x120] ss:$8 sps:$4 sm:$0xff]  }
 0x17d   : > { %1952 = vst [vmem:[%s5554_s13] sm:$0xff] %v4066_v35  ;;  %v5749_v45 = vpack.c.bf16 %v1445_v36, %v1441_v29  ;;  %v4068_v46 = vpack.c.bf16 %v1445_v36, %v1444_v33  ;;  %v1098_v47 = vpop.f32.mrb[4].mxu0  ;;  %1984 = vst [vmem:[%s5554_s13 + $0x100] sm:$0xff] %v4098_v37  ;;  %v5752_v48 = vpack.c.bf16 %v1509_v41, %v1505_v31  ;;  %v1178_v53 = vpop.f32.mrb[4].mxu1  ;;  %v4910_v31 = vld [vmem:[#allocation11 + $0x134] ss:$8 sps:$4 sm:$0xff]  }
 0x17e   : > { %v4100_v52 = vpack.c.bf16 %v1509_v41, %v1508_v34  ;;  %v1099_v56 = vadd.f32 %v1098_v47, %v5730_v54  ;;  %v1100_v57 = vpop.f32.mrb[5].mxu0  ;;  %v1179_v59 = vadd.f32 %v1178_v53, %v5730_v54  ;;  %v1180_v60 = vpop.f32.mrb[5].mxu1 }
 0x17f   : > { %1954 = vst [vmem:[%s5554_s13 + $0x10] sm:$0xff] %v4068_v46  ;;  %v1101_v0 = vadd.f32 %v1100_v57, %v5734_v58  ;;  %v1102_v2 = vpop.f32.mrb[6].mxu0  ;;  %2444 = vmatprep.mubr.bf16.mxu0 %v5749_v45  ;;  %v1181_v3 = vadd.f32 %v1180_v60, %v5734_v58  ;;  %v1182_v4 = vpop.f32.mrb[6].mxu1 }
 0x180   : > { %1986 = vst [vmem:[%s5554_s13 + $0x110] sm:$0xff] %v4100_v52  ;;  %v1448_v5 = vmax.f32 %v1099_v56, 0.0  ;;  %v1103_v6 = vadd.f32 %v1102_v2, %v5730_v54  ;;  %v1104_v10 = vpop.f32.mrb[7].mxu0  ;;  %2445 = vmatmul.mubr.bf16.vlgmr.msra.gmra.mrb[32].mxu0 %v5744_v42  ;;  %v1512_v11 = vmax.f32 %v1179_v59, 0.0  ;;  %v1183_v13 = vadd.f32 %v1182_v4, %v5730_v54  ;;  %v1184_v14 = vpop.f32.mrb[7].mxu1 }
 0x181   : > { %v1449_v15 = vmax.f32 %v1101_v0, 0.0  ;;  %v1105_v17 = vadd.f32 %v1104_v10, %v5734_v58  ;;  %v1513_v16 = vmax.f32 %v1181_v3, 0.0  ;;  %v1185_v18 = vadd.f32 %v1184_v14, %v5734_v58  ;;  %2606 = vmatpush1.bf16.msra.mxu0 %v4899_v55  ;;  %v4908_v59 = vld [vmem:[#allocation11 + $0x130] ss:$8 sps:$4 sm:$0xff]   ;;  %v4913_v0 = vld [vmem:[#allocation11 + $0x144] ss:$8 sps:$4 sm:$0xff]  }
 0x182   : > { %v1452_v39 = vmax.f32 %v1103_v6, 0.0  ;;  %v1516_v49 = vmax.f32 %v1183_v13, 0.0  ;;  %2607 = vmatprep.subr.bf16.mxu0 %v4904_v63 }
 0x183   : > { %v4070_v62 = vpack.c.bf16 %v1449_v15, %v1448_v5  ;;  %v1453_v1 = vmax.f32 %v1105_v17, 0.0  ;;  %v4102_v7 = vpack.c.bf16 %v1513_v16, %v1512_v11  ;;  %v1517_v8 = vmax.f32 %v1185_v18, 0.0  ;;  %v4911_v18 = vld [vmem:[#allocation11 + $0x140] ss:$8 sps:$4 sm:$0xff]  }
 0x184   : > { %v5766_v9 = vpack.c.bf16 %v1452_v39, %v1448_v5  ;;  %v5768_v12 = vpack.c.bf16 %v1516_v49, %v1512_v11 }
 0x185   : > { %1956 = vst [vmem:[%s5554_s13 + $0x20] sm:$0xff] %v4070_v62  ;;  %v5771_v19 = vpack.c.bf16 %v1453_v1, %v1449_v15  ;;  %v4072_v20 = vpack.c.bf16 %v1453_v1, %v1452_v39  ;;  %v1108_v21 = vpop.f32.mrb[8].mxu0  ;;  %1988 = vst [vmem:[%s5554_s13 + $0x120] sm:$0xff] %v4102_v7  ;;  %v5774_v22 = vpack.c.bf16 %v1517_v8, %v1513_v16  ;;  %v1188_v25 = vpop.f32.mrb[8].mxu1  ;;  %2608 = vmatpush1.bf16.msra.mxu0 %v4902_v38  ;;  %v4916_v62 = vld [vmem:[#allocation11 + $0x154] ss:$8 sps:$4 sm:$0xff]  }
 0x186   : > { %v4104_v24 = vpack.c.bf16 %v1517_v8, %v1516_v49  ;;  %v1109_v27 = vadd.f32 %v1108_v21, %v5730_v54  ;;  %v1110_v28 = vpop.f32.mrb[9].mxu0  ;;  %v1189_v29 = vadd.f32 %v1188_v25, %v5730_v54  ;;  %v1190_v30 = vpop.f32.mrb[9].mxu1  ;;  %2609 = vmatprep.subr.bf16.mxu0 %v4907_v61 }
 0x187   : > { %1958 = vst [vmem:[%s5554_s13 + $0x30] sm:$0xff] %v4072_v20  ;;  %v1111_v32 = vadd.f32 %v1110_v28, %v5734_v58  ;;  %v1112_v33 = vpop.f32.mrb[10].mxu0  ;;  %2454 = vmatprep.mubr.bf16.mxu0 %v5771_v19  ;;  %v1191_v34 = vadd.f32 %v1190_v30, %v5734_v58  ;;  %v1192_v35 = vpop.f32.mrb[10].mxu1 }
 0x188   : > { %1990 = vst [vmem:[%s5554_s13 + $0x130] sm:$0xff] %v4104_v24  ;;  %v1456_v36 = vmax.f32 %v1109_v27, 0.0  ;;  %v1113_v37 = vadd.f32 %v1112_v33, %v5730_v54  ;;  %v1114_v41 = vpop.f32.mrb[11].mxu0  ;;  %2455 = vmatmul.mubr.bf16.gmra.mrb[36].mxu0 %v5766_v9  ;;  %v1520_v46 = vmax.f32 %v1189_v29, 0.0  ;;  %v1193_v47 = vadd.f32 %v1192_v35, %v5730_v54  ;;  %v1194_v52 = vpop.f32.mrb[11].mxu1 }
 0x189   : > { %v1457_v53 = vmax.f32 %v1111_v32, 0.0  ;;  %v1115_v55 = vadd.f32 %v1114_v41, %v5734_v58  ;;  %v1521_v56 = vmax.f32 %v1191_v34, 0.0  ;;  %v1195_v57 = vadd.f32 %v1194_v52, %v5734_v58  ;;  %2610 = vmatpush1.bf16.msra.mxu0 %v4905_v26  ;;  %v4914_v33 = vld [vmem:[#allocation11 + $0x150] ss:$8 sps:$4 sm:$0xff]  }
 0x18a   : > { %v1460_v60 = vmax.f32 %v1113_v37, 0.0  ;;  %v1524_v63 = vmax.f32 %v1193_v47, 0.0  ;;  %2611 = vmatprep.subr.bf16.mxu0 %v4910_v31 }
 0x18b   : > { %v4074_v2 = vpack.c.bf16 %v1457_v53, %v1456_v36  ;;  %v1461_v3 = vmax.f32 %v1115_v55, 0.0  ;;  %v4106_v4 = vpack.c.bf16 %v1521_v56, %v1520_v46  ;;  %v1525_v5 = vmax.f32 %v1195_v57, 0.0 }
 0x18c   : > { %v5788_v6 = vpack.c.bf16 %v1460_v60, %v1456_v36  ;;  %v5790_v10 = vpack.c.bf16 %v1524_v63, %v1520_v46  ;;  %v4919_v36 = vld [vmem:[#allocation11 + $0x164] ss:$8 sps:$4 sm:$0xff]  }
 0x18d   : > { %1960 = vst [vmem:[%s5554_s13 + $0x40] sm:$0xff] %v4074_v2  ;;  %v5793_v11 = vpack.c.bf16 %v1461_v3, %v1457_v53  ;;  %v4076_v13 = vpack.c.bf16 %v1461_v3, %v1460_v60  ;;  %v1118_v14 = vpop.f32.mrb[12].mxu0  ;;  %1992 = vst [vmem:[%s5554_s13 + $0x140] sm:$0xff] %v4106_v4  ;;  %v5796_v15 = vpack.c.bf16 %v1525_v5, %v1521_v56  ;;  %v1198_v16 = vpop.f32.mrb[12].mxu1  ;;  %2612 = vmatpush1.bf16.msra.mxu0 %v4908_v59 }
 0x18e   : > { %v4108_v17 = vpack.c.bf16 %v1525_v5, %v1524_v63  ;;  %v1119_v38 = vadd.f32 %v1118_v14, %v5730_v54  ;;  %v1120_v39 = vpop.f32.mrb[13].mxu0  ;;  %v1199_v49 = vadd.f32 %v1198_v16, %v5730_v54  ;;  %v1200_v61 = vpop.f32.mrb[13].mxu1  ;;  %2613 = vmatprep.subr.bf16.mxu0 %v4913_v0  ;;  %v4917_v0 = vld [vmem:[#allocation11 + $0x160] ss:$8 sps:$4 sm:$0xff]  }
 0x18f   : > { %1962 = vst [vmem:[%s5554_s13 + $0x50] sm:$0xff] %v4076_v13  ;;  %v1121_v1 = vadd.f32 %v1120_v39, %v5734_v58  ;;  %v1122_v7 = vpop.f32.mrb[14].mxu0  ;;  %2464 = vmatprep.mubr.bf16.mxu0 %v5793_v11  ;;  %v1201_v8 = vadd.f32 %v1200_v61, %v5734_v58  ;;  %v1202_v20 = vpop.f32.mrb[14].mxu1  ;;  %v4922_v13 = vld [vmem:[#allocation11 + $0x174] ss:$8 sps:$4 sm:$0xff]  }
 0x190   : > { %1994 = vst [vmem:[%s5554_s13 + $0x150] sm:$0xff] %v4108_v17  ;;  %v1464_v21 = vmax.f32 %v1119_v38, 0.0  ;;  %v1123_v24 = vadd.f32 %v1122_v7, %v5730_v54  ;;  %v1124_v25 = vpop.f32.mrb[15].mxu0  ;;  %2465 = vmatmul.mubr.bf16.gmra.mrb[40].mxu0 %v5788_v6  ;;  %v1528_v26 = vmax.f32 %v1199_v49, 0.0  ;;  %v1203_v27 = vadd.f32 %v1202_v20, %v5730_v54  ;;  %v1204_v28 = vpop.f32.mrb[15].mxu1 }
 0x191   : > { %v1465_v29 = vmax.f32 %v1121_v1, 0.0  ;;  %v1125_v30 = vadd.f32 %v1124_v25, %v5734_v58  ;;  %v1529_v31 = vmax.f32 %v1201_v8, 0.0  ;;  %v1205_v32 = vadd.f32 %v1204_v28, %v5734_v58  ;;  %2614 = vmatpush1.bf16.msra.mxu0 %v4911_v18 }
 0x192   : > { %v1468_v34 = vmax.f32 %v1123_v24, 0.0  ;;  %v1532_v35 = vmax.f32 %v1203_v27, 0.0  ;;  %2615 = vmatprep.subr.bf16.mxu0 %v4916_v62  ;;  %v4920_v24 = vld [vmem:[#allocation11 + $0x170] ss:$8 sps:$4 sm:$0xff]   ;;  %v4925_v27 = vld [vmem:[#allocation11 + $0x184] ss:$8 sps:$4 sm:$0xff]  }
 0x193   : > { %v4078_v37 = vpack.c.bf16 %v1465_v29, %v1464_v21  ;;  %v1469_v41 = vmax.f32 %v1125_v30, 0.0  ;;  %v4110_v46 = vpack.c.bf16 %v1529_v31, %v1528_v26  ;;  %v1533_v47 = vmax.f32 %v1205_v32, 0.0 }
 0x194   : > { %v5810_v52 = vpack.c.bf16 %v1468_v34, %v1464_v21  ;;  %v5812_v53 = vpack.c.bf16 %v1532_v35, %v1528_v26 }
 0x195   : > { %1964 = vst [vmem:[%s5554_s13 + $0x60] sm:$0xff] %v4078_v37  ;;  %v5815_v55 = vpack.c.bf16 %v1469_v41, %v1465_v29  ;;  %v4080_v56 = vpack.c.bf16 %v1469_v41, %v1468_v34  ;;  %v1128_v57 = vpop.f32.mrb[16].mxu0  ;;  %1996 = vst [vmem:[%s5554_s13 + $0x160] sm:$0xff] %v4110_v46  ;;  %v5818_v59 = vpack.c.bf16 %v1533_v47, %v1529_v31  ;;  %v1208_v63 = vpop.f32.mrb[16].mxu1  ;;  %2616 = vmatpush1.bf16.msra.mxu0 %v4914_v33 }
 0x196   : > { %6776 = vst [vmem:[#allocation28_spill] sm:$0xff] %v5812_v53  ;;  %v4112_v60 = vpack.c.bf16 %v1533_v47, %v1532_v35  ;;  %v1129_v2 = vadd.f32 %v1128_v57, %v5730_v54  ;;  %v1130_v3 = vpop.f32.mrb[17].mxu0  ;;  %v1209_v4 = vadd.f32 %v1208_v63, %v5730_v54  ;;  %v1210_v5 = vpop.f32.mrb[17].mxu1  ;;  %2617 = vmatprep.subr.bf16.mxu0 %v4919_v36  ;;  %v4923_v47 = vld [vmem:[#allocation11 + $0x180] ss:$8 sps:$4 sm:$0xff]  }
 0x197   : > { %6777 = vst [vmem:[#allocation29_spill] sm:$0xff] %v5818_v59  ;;  %1966 = vst [vmem:[%s5554_s13 + $0x70] sm:$0xff] %v4080_v56  ;;  %v1131_v14 = vadd.f32 %v1130_v3, %v5734_v58  ;;  %v1132_v17 = vpop.f32.mrb[18].mxu0  ;;  %2474 = vmatprep.mubr.bf16.mxu0 %v5815_v55  ;;  %v1211_v16 = vadd.f32 %v1210_v5, %v5734_v58  ;;  %v1212_v18 = vpop.f32.mrb[18].mxu1 }
 0x198   : > { %1998 = vst [vmem:[%s5554_s13 + $0x170] sm:$0xff] %v4112_v60  ;;  %v1472_v38 = vmax.f32 %v1129_v2, 0.0  ;;  %v1133_v39 = vadd.f32 %v1132_v17, %v5730_v54  ;;  %v1134_v49 = vpop.f32.mrb[19].mxu0  ;;  %2475 = vmatmul.mubr.bf16.gmra.mrb[44].mxu0 %v5810_v52  ;;  %v1536_v61 = vmax.f32 %v1209_v4, 0.0  ;;  %v1213_v62 = vadd.f32 %v1212_v18, %v5730_v54  ;;  %v1214_v1 = vpop.f32.mrb[19].mxu1 }
 0x199   : > { %v1473_v7 = vmax.f32 %v1131_v14, 0.0  ;;  %v1135_v8 = vadd.f32 %v1134_v49, %v5734_v58  ;;  %v1537_v20 = vmax.f32 %v1211_v16, 0.0  ;;  %v1215_v21 = vadd.f32 %v1214_v1, %v5734_v58  ;;  %2618 = vmatpush1.bf16.msra.mxu0 %v4917_v0  ;;  %v4928_v0 = vld [vmem:[#allocation11 + $0x194] ss:$8 sps:$4 sm:$0xff]   ;;  %v4926_v1 = vld [vmem:[#allocation11 + $0x190] ss:$8 sps:$4 sm:$0xff]  }
 0x19a   : > { %v1476_v25 = vmax.f32 %v1133_v39, 0.0  ;;  %v1540_v26 = vmax.f32 %v1213_v62, 0.0  ;;  %2619 = vmatprep.subr.bf16.mxu0 %v4922_v13 }
 0x19b   : > { %v4082_v28 = vpack.c.bf16 %v1473_v7, %v1472_v38  ;;  %v1477_v29 = vmax.f32 %v1135_v8, 0.0  ;;  %v4114_v30 = vpack.c.bf16 %v1537_v20, %v1536_v61  ;;  %v1541_v31 = vmax.f32 %v1215_v21, 0.0 }
 0x19c   : > { %v5832_v32 = vpack.c.bf16 %v1476_v25, %v1472_v38  ;;  %v5834_v33 = vpack.c.bf16 %v1540_v26, %v1536_v61 }
 0x19d   : > { %1968 = vst [vmem:[%s5554_s13 + $0x80] sm:$0xff] %v4082_v28  ;;  %v5837_v34 = vpack.c.bf16 %v1477_v29, %v1473_v7  ;;  %v4084_v35 = vpack.c.bf16 %v1477_v29, %v1476_v25  ;;  %v1138_v36 = vpop.f32.mrb[20].mxu0  ;;  %2000 = vst [vmem:[%s5554_s13 + $0x180] sm:$0xff] %v4114_v30  ;;  %v5840_v37 = vpack.c.bf16 %v1541_v31, %v1537_v20  ;;  %v1218_v46 = vpop.f32.mrb[20].mxu1  ;;  %2620 = vmatpush1.bf16.msra.mxu0 %v4920_v24  ;;  %v4931_v20 = vld [vmem:[#allocation11 + $0x1a4] ss:$8 sps:$4 sm:$0xff]  }
 0x19e   : > { %6778 = vst [vmem:[#allocation30_spill] sm:$0xff] %v5834_v33  ;;  %v4116_v41 = vpack.c.bf16 %v1541_v31, %v1540_v26  ;;  %v1139_v56 = vadd.f32 %v1138_v36, %v5730_v54  ;;  %v1140_v57 = vpop.f32.mrb[21].mxu0  ;;  %v1219_v60 = vadd.f32 %v1218_v46, %v5730_v54  ;;  %v1220_v63 = vpop.f32.mrb[21].mxu1  ;;  %2621 = vmatprep.subr.bf16.mxu0 %v4925_v27  ;;  %v4929_v46 = vld [vmem:[#allocation11 + $0x1a0] ss:$8 sps:$4 sm:$0xff]  }
 0x19f   : > { %6779 = vst [vmem:[#allocation31_spill] sm:$0xff] %v5840_v37  ;;  %1970 = vst [vmem:[%s5554_s13 + $0x90] sm:$0xff] %v4084_v35  ;;  %v1141_v2 = vadd.f32 %v1140_v57, %v5734_v58  ;;  %v1142_v3 = vpop.f32.mrb[22].mxu0  ;;  %2484 = vmatprep.mubr.bf16.mxu0 %v5837_v34  ;;  %v1221_v4 = vadd.f32 %v1220_v63, %v5734_v58  ;;  %v1222_v5 = vpop.f32.mrb[22].mxu1  ;;  %v4934_v63 = vld [vmem:[#allocation11 + $0x1b4] ss:$8 sps:$4 sm:$0xff]  }
 0x1a0   : > { %2002 = vst [vmem:[%s5554_s13 + $0x190] sm:$0xff] %v4116_v41  ;;  %v1480_v13 = vmax.f32 %v1139_v56, 0.0  ;;  %v1143_v14 = vadd.f32 %v1142_v3, %v5730_v54  ;;  %v1144_v17 = vpop.f32.mrb[23].mxu0  ;;  %2485 = vmatmul.mubr.bf16.gmra.mrb[48].mxu0 %v5832_v32  ;;  %v1544_v16 = vmax.f32 %v1219_v60, 0.0  ;;  %v1223_v18 = vadd.f32 %v1222_v5, %v5730_v54  ;;  %v1224_v38 = vpop.f32.mrb[23].mxu1 }
 0x1a1   : > { %v1481_v39 = vmax.f32 %v1141_v2, 0.0  ;;  %v1145_v49 = vadd.f32 %v1144_v17, %v5734_v58  ;;  %v1545_v61 = vmax.f32 %v1221_v4, 0.0  ;;  %v1225_v62 = vadd.f32 %v1224_v38, %v5734_v58  ;;  %2622 = vmatpush1.bf16.msra.mxu0 %v4923_v47 }
 0x1a2   : > { %v1484_v7 = vmax.f32 %v1143_v14, 0.0  ;;  %v1548_v8 = vmax.f32 %v1223_v18, 0.0  ;;  %2623 = vmatprep.subr.bf16.mxu0 %v4928_v0 }
 0x1a3   : > { %v4086_v21 = vpack.c.bf16 %v1481_v39, %v1480_v13  ;;  %v1485_v24 = vmax.f32 %v1145_v49, 0.0  ;;  %v4118_v25 = vpack.c.bf16 %v1545_v61, %v1544_v16  ;;  %v1549_v26 = vmax.f32 %v1225_v62, 0.0  ;;  %v4932_v62 = vld [vmem:[#allocation11 + $0x1b0] ss:$8 sps:$4 sm:$0xff]  }
 0x1a4   : > { %v5854_v27 = vpack.c.bf16 %v1484_v7, %v1480_v13  ;;  %v5856_v28 = vpack.c.bf16 %v1548_v8, %v1544_v16 }
 0x1a5   : > { %1972 = vst [vmem:[%s5554_s13 + $0xa0] sm:$0xff] %v4086_v21  ;;  %v5859_v29 = vpack.c.bf16 %v1485_v24, %v1481_v39  ;;  %v4088_v30 = vpack.c.bf16 %v1485_v24, %v1484_v7  ;;  %v1148_v31 = vpop.f32.mrb[24].mxu0  ;;  %2004 = vst [vmem:[%s5554_s13 + $0x1a0] sm:$0xff] %v4118_v25  ;;  %v5862_v35 = vpack.c.bf16 %v1549_v26, %v1545_v61  ;;  %v1228_v41 = vpop.f32.mrb[24].mxu1  ;;  %2624 = vmatpush1.bf16.msra.mxu0 %v4926_v1 }
 0x1a6   : > { %6780 = vst [vmem:[#allocation32_spill] sm:$0xff] %v5856_v28  ;;  %v4120_v36 = vpack.c.bf16 %v1549_v26, %v1548_v8  ;;  %v1149_v47 = vadd.f32 %v1148_v31, %v5730_v54  ;;  %v1150_v56 = vpop.f32.mrb[25].mxu0  ;;  %v1229_v57 = vadd.f32 %v1228_v41, %v5730_v54  ;;  %v1230_v60 = vpop.f32.mrb[25].mxu1  ;;  %2625 = vmatprep.subr.bf16.mxu0 %v4931_v20  ;;  %v4937_v8 = vld [vmem:[#allocation11 + $0x1c4] ss:$8 sps:$4 sm:$0xff]  }
 0x1a7   : > { %6781 = vst [vmem:[#allocation33_spill] sm:$0xff] %v5862_v35  ;;  %1974 = vst [vmem:[%s5554_s13 + $0xb0] sm:$0xff] %v4088_v30  ;;  %v1151_v0 = vadd.f32 %v1150_v56, %v5734_v58  ;;  %v1152_v2 = vpop.f32.mrb[26].mxu0  ;;  %2494 = vmatprep.mubr.bf16.mxu0 %v5859_v29  ;;  %v1231_v3 = vadd.f32 %v1230_v60, %v5734_v58  ;;  %v1232_v4 = vpop.f32.mrb[26].mxu1 }
 0x1a8   : > { %2006 = vst [vmem:[%s5554_s13 + $0x1b0] sm:$0xff] %v4120_v36  ;;  %v1488_v5 = vmax.f32 %v1149_v47, 0.0  ;;  %v1153_v13 = vadd.f32 %v1152_v2, %v5730_v54  ;;  %v1154_v14 = vpop.f32.mrb[27].mxu0  ;;  %2495 = vmatmul.mubr.bf16.gmra.mrb[52].mxu0 %v5854_v27  ;;  %v1552_v17 = vmax.f32 %v1229_v57, 0.0  ;;  %v1233_v16 = vadd.f32 %v1232_v4, %v5730_v54  ;;  %v1234_v18 = vpop.f32.mrb[27].mxu1 }
 0x1a9   : > { %v1489_v38 = vmax.f32 %v1151_v0, 0.0  ;;  %v1155_v39 = vadd.f32 %v1154_v14, %v5734_v58  ;;  %v1553_v49 = vmax.f32 %v1231_v3, 0.0  ;;  %v1235_v61 = vadd.f32 %v1234_v18, %v5734_v58  ;;  %2626 = vmatpush1.bf16.msra.mxu0 %v4929_v46  ;;  %v4935_v57 = vld [vmem:[#allocation11 + $0x1c0] ss:$8 sps:$4 sm:$0xff]  }
 0x1aa   : > { %v1492_v1 = vmax.f32 %v1153_v13, 0.0  ;;  %v1556_v7 = vmax.f32 %v1233_v16, 0.0  ;;  %2627 = vmatprep.subr.bf16.mxu0 %v4934_v63  ;;  %v6708_v3 = vsub.s32 2, %v5715_v40  ;;  %v6709_v4 = vsub.s32 3, %v5715_v40 }
 0x1ab   : > { %v4090_v20 = vpack.c.bf16 %v1489_v38, %v1488_v5  ;;  %v1493_v21 = vmax.f32 %v1155_v39, 0.0  ;;  %v4122_v24 = vpack.c.bf16 %v1553_v49, %v1552_v17  ;;  %v1557_v25 = vmax.f32 %v1235_v61, 0.0 }
 0x1ac   : > { %v5876_v26 = vpack.c.bf16 %v1492_v1, %v1488_v5  ;;  %v5878_v30 = vpack.c.bf16 %v1556_v7, %v1552_v17  ;;  %v4940_v5 = vld [vmem:[#allocation11 + $0x1d4] ss:$8 sps:$4 sm:$0xff]  }
 0x1ad   : > { %1976 = vst [vmem:[%s5554_s13 + $0xc0] sm:$0xff] %v4090_v20  ;;  %v5881_v31 = vpack.c.bf16 %v1493_v21, %v1489_v38  ;;  %v4092_v36 = vpack.c.bf16 %v1493_v21, %v1492_v1  ;;  %v1158_v41 = vpop.f32.mrb[28].mxu0  ;;  %2008 = vst [vmem:[%s5554_s13 + $0x1c0] sm:$0xff] %v4122_v24  ;;  %v5884_v46 = vpack.c.bf16 %v1557_v25, %v1553_v49  ;;  %v1238_v56 = vpop.f32.mrb[28].mxu1  ;;  %2628 = vmatpush1.bf16.msra.mxu0 %v4932_v62  ;;  %v4938_v21 = vld [vmem:[#allocation11 + $0x1d0] ss:$8 sps:$4 sm:$0xff]  }
 0x1ae   : > { %6782 = vst [vmem:[#allocation34_spill] sm:$0xff] %v5878_v30  ;;  %v4124_v47 = vpack.c.bf16 %v1557_v25, %v1556_v7  ;;  %v1159_v60 = vadd.f32 %v1158_v41, %v5730_v54  ;;  %v1160_v63 = vpop.f32.mrb[29].mxu0  ;;  %v1239_v0 = vadd.f32 %v1238_v56, %v5730_v54  ;;  %v1240_v2 = vpop.f32.mrb[29].mxu1  ;;  %2629 = vmatprep.subr.bf16.mxu0 %v4937_v8  ;;  %v4943_v41 = vld [vmem:[#allocation11 + $0x1e4] ss:$8 sps:$4 sm:$0xff]  }
 0x1af   : > { %6783 = vst [vmem:[#allocation35_spill] sm:$0xff] %v5884_v46  ;;  %1978 = vst [vmem:[%s5554_s13 + $0xd0] sm:$0xff] %v4092_v36  ;;  %v1161_v13 = vadd.f32 %v1160_v63, %v5734_v58  ;;  %v1162_v14 = vpop.f32.mrb[30].mxu0  ;;  %2504 = vmatprep.mubr.bf16.mxu0 %v5881_v31  ;;  %v1241_v17 = vadd.f32 %v1240_v2, %v5734_v58  ;;  %v1242_v16 = vpop.f32.mrb[30].mxu1  ;;  %v5903_v36 = vrot.slane %v5723_v50, %v6708_v3 }
 0x1b0   : > { %2010 = vst [vmem:[%s5554_s13 + $0x1d0] sm:$0xff] %v4124_v47  ;;  %v1496_v18 = vmax.f32 %v1159_v60, 0.0  ;;  %v1163_v38 = vadd.f32 %v1162_v14, %v5730_v54  ;;  %v1164_v39 = vpop.f32.mrb[31].mxu0  ;;  %2505 = vmatmul.mubr.bf16.gmra.mrb[56].mxu0 %v5876_v26  ;;  %v1560_v49 = vmax.f32 %v1239_v0, 0.0  ;;  %v1243_v61 = vadd.f32 %v1242_v16, %v5730_v54  ;;  %v1244_v62 = vpop.f32.mrb[31].mxu1 }
 0x1b1   : > { %v1497_v1 = vmax.f32 %v1161_v13, 0.0  ;;  %v1165_v7 = vadd.f32 %v1164_v39, %v5734_v58  ;;  %v1561_v8 = vmax.f32 %v1241_v17, 0.0  ;;  %v1245_v20 = vadd.f32 %v1244_v62, %v5734_v58  ;;  %2630 = vmatpush1.bf16.msra.mxu0 %v4935_v57  ;;  %v4941_v14 = vld [vmem:[#allocation11 + $0x1e0] ss:$8 sps:$4 sm:$0xff]  }
 0x1b2   : > { %v1500_v24 = vmax.f32 %v1163_v38, 0.0  ;;  %v1564_v25 = vmax.f32 %v1243_v61, 0.0  ;;  %v5908_v54 = vrot.slane %v5723_v50, %v6709_v4  ;;  %2631 = vmatprep.subr.bf16.mxu0 %v4940_v5 }
 0x1b3   : > { %v4094_v47 = vpack.c.bf16 %v1497_v1, %v1496_v18  ;;  %v1501_v56 = vmax.f32 %v1165_v7, 0.0  ;;  %v4126_v58 = vpack.c.bf16 %v1561_v8, %v1560_v49  ;;  %v1565_v57 = vmax.f32 %v1245_v20, 0.0 }
 0x1b4   : > { %v5910_v60 = vpack.c.bf16 %v1500_v24, %v1496_v18  ;;  %v5912_v63 = vpack.c.bf16 %v1564_v25, %v1560_v49  ;;  %v4946_v18 = vld [vmem:[#allocation11 + $0x1f4] ss:$8 sps:$4 sm:$0xff]  }
 0x1b5   : > { %1980 = vst [vmem:[%s5554_s13 + $0xe0] sm:$0xff] %v4094_v47  ;;  %v5915_v0 = vpack.c.bf16 %v1501_v56, %v1497_v1  ;;  %v4096_v2 = vpack.c.bf16 %v1501_v56, %v1500_v24  ;;  %2012 = vst [vmem:[%s5554_s13 + $0x1e0] sm:$0xff] %v4126_v58  ;;  %v5918_v13 = vpack.c.bf16 %v1565_v57, %v1561_v8  ;;  %v1281_v5 = vpop.f32.mrb[32].mxu1  ;;  %2632 = vmatpush1.bf16.msra.mxu0 %v4938_v21  ;;  %v4944_v8 = vld [vmem:[#allocation11 + $0x1f0] ss:$8 sps:$4 sm:$0xff]  }
 0x1b6   : > { %6784 = vst [vmem:[#allocation36_spill] sm:$0xff] %v5912_v63  ;;  %v4128_v50 = vpack.c.bf16 %v1565_v57, %v1564_v25  ;;  %v1282_v17 = vadd.f32 %v1281_v5, %v5903_v36  ;;  %v1283_v16 = vpop.f32.mrb[33].mxu1  ;;  %2633 = vmatprep.subr.bf16.mxu0 %v4943_v41 }
 0x1b7   : > { %6785 = vst [vmem:[#allocation37_spill] sm:$0xff] %v5918_v13  ;;  %1982 = vst [vmem:[%s5554_s13 + $0xf0] sm:$0xff] %v4096_v2  ;;  %2514 = vmatprep.mubr.bf16.mxu0 %v5915_v0  ;;  %v1284_v38 = vadd.f32 %v1283_v16, %v5908_v54  ;;  %v1285_v39 = vpop.f32.mrb[34].mxu1 }
 0x1b8   : > { %2014 = vst [vmem:[%s5554_s13 + $0x1f0] sm:$0xff] %v4128_v50  ;;  %2515 = vmatmul.mubr.bf16.gmra.mrb[60].mxu0 %v5910_v60  ;;  %v1442_v49 = vmax.f32 %v1282_v17, 0.0  ;;  %v1286_v61 = vadd.f32 %v1285_v39, %v5903_v36  ;;  %v1287_v62 = vpop.f32.mrb[35].mxu1 }
 0x1b9   : > { %2524 = vmatprep.mubr.bf16.mxu0 %v5752_v48  ;;  %v1443_v1 = vmax.f32 %v1284_v38, 0.0  ;;  %v1288_v7 = vadd.f32 %v1287_v62, %v5908_v54  ;;  %2634 = vmatpush1.bf16.msra.mxu0 %v4941_v14 }
 0x1ba   : > { %v1446_v20 = vmax.f32 %v1286_v61, 0.0  ;;  %2635 = vmatprep.subr.bf16.mxu0 %v4946_v18 }
 0x1bb   : > { %v4067_v21 = vpack.c.bf16 %v1443_v1, %v1442_v49  ;;  %v1447_v24 = vmax.f32 %v1288_v7, 0.0 }
 0x1bc   : > { %v5929_v25 = vpack.c.bf16 %v1446_v20, %v1442_v49 }
 0x1bd   : > { %1953 = vst [vmem:[%s5554_s13 + $0x8] sm:$0xff] %v4067_v21  ;;  %v5932_v41 = vpack.c.bf16 %v1447_v24, %v1443_v1  ;;  %v4069_v47 = vpack.c.bf16 %v1447_v24, %v1446_v20  ;;  %v1291_v56 = vpop.f32.mrb[36].mxu1  ;;  %2636 = vmatpush1.bf16.msra.mxu0 %v4944_v8 }
 0x1be   : > { %6786 = vst [vmem:[#allocation38_spill] sm:$0xff] %v5929_v25  ;;  %v1292_v58 = vadd.f32 %v1291_v56, %v5903_v36  ;;  %v1293_v57 = vpop.f32.mrb[37].mxu1 }
 0x1bf   : > { %6787 = vst [vmem:[#allocation39_spill] sm:$0xff] %v5932_v41  ;;  %1955 = vst [vmem:[%s5554_s13 + $0x18] sm:$0xff] %v4069_v47  ;;  %v1294_v2 = vadd.f32 %v1293_v57, %v5908_v54  ;;  %v1295_v50 = vpop.f32.mrb[38].mxu1 }
 0x1c0   : > { %2525 = vmatmul.mubr.bf16.gmra.mrb[64].mxu0 %v5746_v44  ;;  %v1450_v5 = vmax.f32 %v1292_v58, 0.0  ;;  %v1296_v14 = vadd.f32 %v1295_v50, %v5903_v36  ;;  %v1297_v17 = vpop.f32.mrb[39].mxu1 }
 0x1c1   : > { %2534 = vmatprep.mubr.bf16.mxu0 %v5774_v22  ;;  %v1451_v16 = vmax.f32 %v1294_v2, 0.0  ;;  %v1298_v18 = vadd.f32 %v1297_v17, %v5908_v54 }
 0x1c2   : > { %v1454_v38 = vmax.f32 %v1296_v14, 0.0 }
 0x1c3   : > { %v4071_v39 = vpack.c.bf16 %v1451_v16, %v1450_v5  ;;  %v1455_v49 = vmax.f32 %v1298_v18, 0.0 }
 0x1c4   : > { %v5941_v61 = vpack.c.bf16 %v1454_v38, %v1450_v5 }
 0x1c5   : > { %1957 = vst [vmem:[%s5554_s13 + $0x28] sm:$0xff] %v4071_v39  ;;  %v5944_v62 = vpack.c.bf16 %v1455_v49, %v1451_v16  ;;  %v4073_v1 = vpack.c.bf16 %v1455_v49, %v1454_v38  ;;  %v1301_v7 = vpop.f32.mrb[40].mxu1 }
 0x1c6   : > { %6788 = vst [vmem:[#allocation40_spill] sm:$0xff] %v5941_v61  ;;  %v1302_v8 = vadd.f32 %v1301_v7, %v5903_v36  ;;  %v1303_v20 = vpop.f32.mrb[41].mxu1 }
 0x1c7   : > { %6789 = vst [vmem:[#allocation41_spill] sm:$0xff] %v5944_v62  ;;  %1959 = vst [vmem:[%s5554_s13 + $0x38] sm:$0xff] %v4073_v1  ;;  %v1304_v21 = vadd.f32 %v1303_v20, %v5908_v54  ;;  %v1305_v24 = vpop.f32.mrb[42].mxu1 }
 0x1c8   : > { %2535 = vmatmul.mubr.bf16.gmra.mrb[68].mxu0 %v5768_v12  ;;  %v1458_v47 = vmax.f32 %v1302_v8, 0.0  ;;  %v1306_v56 = vadd.f32 %v1305_v24, %v5903_v36  ;;  %v1307_v58 = vpop.f32.mrb[43].mxu1 }
 0x1c9   : > { %2544 = vmatprep.mubr.bf16.mxu0 %v5796_v15  ;;  %v1459_v57 = vmax.f32 %v1304_v21, 0.0  ;;  %v1308_v2 = vadd.f32 %v1307_v58, %v5908_v54 }
 0x1ca   : > { %v1462_v50 = vmax.f32 %v1306_v56, 0.0 }
 0x1cb   : > { %v4075_v5 = vpack.c.bf16 %v1459_v57, %v1458_v47  ;;  %v1463_v14 = vmax.f32 %v1308_v2, 0.0 }
 0x1cc   : > { %v5953_v17 = vpack.c.bf16 %v1462_v50, %v1458_v47 }
 0x1cd   : > { %1961 = vst [vmem:[%s5554_s13 + $0x48] sm:$0xff] %v4075_v5  ;;  %v5956_v16 = vpack.c.bf16 %v1463_v14, %v1459_v57  ;;  %v4077_v18 = vpack.c.bf16 %v1463_v14, %v1462_v50  ;;  %v1311_v38 = vpop.f32.mrb[44].mxu1 }
 0x1ce   : > { %6790 = vst [vmem:[#allocation42_spill] sm:$0xff] %v5953_v17  ;;  %v1312_v39 = vadd.f32 %v1311_v38, %v5903_v36  ;;  %v1313_v49 = vpop.f32.mrb[45].mxu1 }
 0x1cf   : > { %6791 = vst [vmem:[#allocation43_spill] sm:$0xff] %v5956_v16  ;;  %1963 = vst [vmem:[%s5554_s13 + $0x58] sm:$0xff] %v4077_v18  ;;  %v1314_v1 = vadd.f32 %v1313_v49, %v5908_v54  ;;  %v1315_v7 = vpop.f32.mrb[46].mxu1 }
 0x1d0   : > { %2545 = vmatmul.mubr.bf16.gmra.mrb[72].mxu0 %v5790_v10  ;;  %v1466_v8 = vmax.f32 %v1312_v39, 0.0  ;;  %v1316_v20 = vadd.f32 %v1315_v7, %v5903_v36  ;;  %v1317_v21 = vpop.f32.mrb[47].mxu1 }
 0x1d1   : > { %2554 = vmatprep.mubr.bf16.mxu0 %v5818_v59  ;;  %v1467_v24 = vmax.f32 %v1314_v1, 0.0  ;;  %v1318_v47 = vadd.f32 %v1317_v21, %v5908_v54 }
 0x1d2   : > { %v1470_v56 = vmax.f32 %v1316_v20, 0.0 }
 0x1d3   : > { %v4079_v58 = vpack.c.bf16 %v1467_v24, %v1466_v8  ;;  %v1471_v57 = vmax.f32 %v1318_v47, 0.0 }
 0x1d4   : > { %v5965_v2 = vpack.c.bf16 %v1470_v56, %v1466_v8 }
 0x1d5   : > { %1965 = vst [vmem:[%s5554_s13 + $0x68] sm:$0xff] %v4079_v58  ;;  %v5968_v50 = vpack.c.bf16 %v1471_v57, %v1467_v24  ;;  %v4081_v5 = vpack.c.bf16 %v1471_v57, %v1470_v56  ;;  %v1321_v14 = vpop.f32.mrb[48].mxu1 }
 0x1d6   : > { %6792 = vst [vmem:[#allocation44_spill] sm:$0xff] %v5965_v2  ;;  %v1322_v18 = vadd.f32 %v1321_v14, %v5903_v36  ;;  %v1323_v38 = vpop.f32.mrb[49].mxu1 }
 0x1d7   : > { %6793 = vst [vmem:[#allocation45_spill] sm:$0xff] %v5968_v50  ;;  %1967 = vst [vmem:[%s5554_s13 + $0x78] sm:$0xff] %v4081_v5  ;;  %v1324_v39 = vadd.f32 %v1323_v38, %v5908_v54  ;;  %v1325_v49 = vpop.f32.mrb[50].mxu1 }
 0x1d8   : > { %2555 = vmatmul.mubr.bf16.gmra.mrb[76].mxu0 %v5812_v53  ;;  %v1474_v1 = vmax.f32 %v1322_v18, 0.0  ;;  %v1326_v7 = vadd.f32 %v1325_v49, %v5903_v36  ;;  %v1327_v8 = vpop.f32.mrb[51].mxu1 }
 0x1d9   : > { %2564 = vmatprep.mubr.bf16.mxu0 %v5840_v37  ;;  %v1475_v20 = vmax.f32 %v1324_v39, 0.0  ;;  %v1328_v21 = vadd.f32 %v1327_v8, %v5908_v54 }
 0x1da   : > { %v1478_v24 = vmax.f32 %v1326_v7, 0.0 }
 0x1db   : > { %v4083_v47 = vpack.c.bf16 %v1475_v20, %v1474_v1  ;;  %v1479_v56 = vmax.f32 %v1328_v21, 0.0 }
 0x1dc   : > { %v5977_v58 = vpack.c.bf16 %v1478_v24, %v1474_v1 }
 0x1dd   : > { %1969 = vst [vmem:[%s5554_s13 + $0x88] sm:$0xff] %v4083_v47  ;;  %v5980_v57 = vpack.c.bf16 %v1479_v56, %v1475_v20  ;;  %v4085_v5 = vpack.c.bf16 %v1479_v56, %v1478_v24  ;;  %v1331_v14 = vpop.f32.mrb[52].mxu1 }
 0x1de   : > { %6794 = vst [vmem:[#allocation46_spill] sm:$0xff] %v5977_v58  ;;  %v1332_v18 = vadd.f32 %v1331_v14, %v5903_v36  ;;  %v1333_v38 = vpop.f32.mrb[53].mxu1 }
 0x1df   : > { %6795 = vst [vmem:[#allocation47_spill] sm:$0xff] %v5980_v57  ;;  %1971 = vst [vmem:[%s5554_s13 + $0x98] sm:$0xff] %v4085_v5  ;;  %v1334_v49 = vadd.f32 %v1333_v38, %v5908_v54  ;;  %v1335_v39 = vpop.f32.mrb[54].mxu1 }
 0x1e0   : > { %2565 = vmatmul.mubr.bf16.gmra.mrb[80].mxu0 %v5834_v33  ;;  %v1482_v7 = vmax.f32 %v1332_v18, 0.0  ;;  %v1336_v1 = vadd.f32 %v1335_v39, %v5903_v36  ;;  %v1337_v8 = vpop.f32.mrb[55].mxu1 }
 0x1e1   : > { %2574 = vmatprep.mubr.bf16.mxu0 %v5862_v35  ;;  %v1483_v20 = vmax.f32 %v1334_v49, 0.0  ;;  %v1338_v21 = vadd.f32 %v1337_v8, %v5908_v54 }
 0x1e2   : > { %v1486_v24 = vmax.f32 %v1336_v1, 0.0 }
 0x1e3   : > { %v4087_v47 = vpack.c.bf16 %v1483_v20, %v1482_v7  ;;  %v1487_v56 = vmax.f32 %v1338_v21, 0.0 }
 0x1e4   : > { %v5989_v14 = vpack.c.bf16 %v1486_v24, %v1482_v7 }
 0x1e5   : > { %1973 = vst [vmem:[%s5554_s13 + $0xa8] sm:$0xff] %v4087_v47  ;;  %v5992_v5 = vpack.c.bf16 %v1487_v56, %v1483_v20  ;;  %v4089_v38 = vpack.c.bf16 %v1487_v56, %v1486_v24  ;;  %v1341_v3 = vpop.f32.mrb[56].mxu1 }
 0x1e6   : > { %6796 = vst [vmem:[#allocation48_spill] sm:$0xff] %v5989_v14  ;;  %v1342_v18 = vadd.f32 %v1341_v3, %v5903_v36  ;;  %v1343_v39 = vpop.f32.mrb[57].mxu1 }
 0x1e7   : > { %6797 = vst [vmem:[#allocation49_spill] sm:$0xff] %v5992_v5  ;;  %1975 = vst [vmem:[%s5554_s13 + $0xb8] sm:$0xff] %v4089_v38  ;;  %v1344_v4 = vadd.f32 %v1343_v39, %v5908_v54  ;;  %v1345_v49 = vpop.f32.mrb[58].mxu1 }
 0x1e8   : > { %2575 = vmatmul.mubr.bf16.gmra.mrb[84].mxu0 %v5856_v28  ;;  %v1490_v1 = vmax.f32 %v1342_v18, 0.0  ;;  %v1346_v7 = vadd.f32 %v1345_v49, %v5903_v36  ;;  %v1347_v8 = vpop.f32.mrb[59].mxu1 }
 0x1e9   : > { %2584 = vmatprep.mubr.bf16.mxu0 %v5884_v46  ;;  %v1491_v20 = vmax.f32 %v1344_v4, 0.0  ;;  %v1348_v21 = vadd.f32 %v1347_v8, %v5908_v54 }
 0x1ea   : > { %v1494_v24 = vmax.f32 %v1346_v7, 0.0 }
 0x1eb   : > { %v4091_v3 = vpack.c.bf16 %v1491_v20, %v1490_v1  ;;  %v1495_v47 = vmax.f32 %v1348_v21, 0.0 }
 0x1ec   : > { %v6001_v56 = vpack.c.bf16 %v1494_v24, %v1490_v1 }
 0x1ed   : > { %1977 = vst [vmem:[%s5554_s13 + $0xc8] sm:$0xff] %v4091_v3  ;;  %v6004_v38 = vpack.c.bf16 %v1495_v47, %v1491_v20  ;;  %v4093_v39 = vpack.c.bf16 %v1495_v47, %v1494_v24  ;;  %v1351_v23 = vpop.f32.mrb[60].mxu1 }
 0x1ee   : > { %6798 = vst [vmem:[#allocation50_spill] sm:$0xff] %v6001_v56  ;;  %v1352_v18 = vadd.f32 %v1351_v23, %v5903_v36  ;;  %v1353_v49 = vpop.f32.mrb[61].mxu1 }
 0x1ef   : > { %6799 = vst [vmem:[#allocation51_spill] sm:$0xff] %v6004_v38  ;;  %1979 = vst [vmem:[%s5554_s13 + $0xd8] sm:$0xff] %v4093_v39  ;;  %v1354_v40 = vadd.f32 %v1353_v49, %v5908_v54  ;;  %v1355_v4 = vpop.f32.mrb[62].mxu1 }
 0x1f0   : > { %2585 = vmatmul.mubr.bf16.gmra.mrb[88].mxu0 %v5878_v30  ;;  %v1498_v7 = vmax.f32 %v1352_v18, 0.0  ;;  %v1356_v1 = vadd.f32 %v1355_v4, %v5903_v36  ;;  %v1357_v8 = vpop.f32.mrb[63].mxu1 }
 0x1f1   : > { %2594 = vmatprep.mubr.bf16.mxu0 %v5918_v13  ;;  %v1499_v20 = vmax.f32 %v1354_v40, 0.0  ;;  %v1358_v21 = vadd.f32 %v1357_v8, %v5908_v54 }
 0x1f2   : > { %v1502_v24 = vmax.f32 %v1356_v1, 0.0 }
 0x1f3   : > { %v4095_v23 = vpack.c.bf16 %v1499_v20, %v1498_v7  ;;  %v1503_v3 = vmax.f32 %v1358_v21, 0.0 }
 0x1f4   : > { %v6013_v47 = vpack.c.bf16 %v1502_v24, %v1498_v7 }
 0x1f5   : > { %1981 = vst [vmem:[%s5554_s13 + $0xe8] sm:$0xff] %v4095_v23  ;;  %v6016_v39 = vpack.c.bf16 %v1503_v3, %v1499_v20  ;;  %v4097_v49 = vpack.c.bf16 %v1503_v3, %v1502_v24  ;;  %v1361_v30 = vpop.f32.mrb[64].mxu1 }
 0x1f6   : > { %6800 = vst [vmem:[#allocation52_spill] sm:$0xff] %v6013_v47  ;;  %v1362_v18 = vadd.f32 %v1361_v30, %v5903_v36  ;;  %v1363_v4 = vpop.f32.mrb[65].mxu1 }
 0x1f7   : > { %6801 = vst [vmem:[#allocation53_spill] sm:$0xff] %v6016_v39  ;;  %1983 = vst [vmem:[%s5554_s13 + $0xf8] sm:$0xff] %v4097_v49  ;;  %v1364_v13 = vadd.f32 %v1363_v4, %v5908_v54  ;;  %v1365_v40 = vpop.f32.mrb[66].mxu1 }
 0x1f8   : > { %2595 = vmatmul.mubr.bf16.gmra.mrb[92].mxu0 %v5912_v63  ;;  %v1506_v1 = vmax.f32 %v1362_v18, 0.0  ;;  %v1366_v7 = vadd.f32 %v1365_v40, %v5903_v36  ;;  %v1367_v8 = vpop.f32.mrb[67].mxu1 }
 0x1f9   : > { %2637 = vmatprep.mubr.bf16.mxu0 %v5932_v41  ;;  %v1507_v20 = vmax.f32 %v1364_v13, 0.0  ;;  %v1368_v21 = vadd.f32 %v1367_v8, %v5908_v54 }
 0x1fa   : > { %v1510_v24 = vmax.f32 %v1366_v7, 0.0 }
 0x1fb   : > { %v4099_v30 = vpack.c.bf16 %v1507_v20, %v1506_v1  ;;  %v1511_v23 = vmax.f32 %v1368_v21, 0.0 }
 0x1fc   : > { %v6025_v3 = vpack.c.bf16 %v1510_v24, %v1506_v1 }
 0x1fd   : > { %1985 = vst [vmem:[%s5554_s13 + $0x108] sm:$0xff] %v4099_v30  ;;  %v6028_v49 = vpack.c.bf16 %v1511_v23, %v1507_v20  ;;  %v4101_v4 = vpack.c.bf16 %v1511_v23, %v1510_v24  ;;  %v1371_v63 = vpop.f32.mrb[68].mxu1 }
 0x1fe   : > { %6802 = vst [vmem:[#allocation54_spill] sm:$0xff] %v6025_v3  ;;  %v1372_v18 = vadd.f32 %v1371_v63, %v5903_v36  ;;  %v1373_v40 = vpop.f32.mrb[69].mxu1 }
 0x1ff   : > { %6803 = vst [vmem:[#allocation55_spill] sm:$0xff] %v6028_v49  ;;  %1987 = vst [vmem:[%s5554_s13 + $0x118] sm:$0xff] %v4101_v4  ;;  %v1374_v41 = vadd.f32 %v1373_v40, %v5908_v54  ;;  %v1375_v13 = vpop.f32.mrb[70].mxu1 }
 0x200   : > { %2638 = vmatmul.mubr.bf16.vlgmr.msra.gmra.mrb[32].mxu0 %v5929_v25  ;;  %v1514_v7 = vmax.f32 %v1372_v18, 0.0  ;;  %v1376_v1 = vadd.f32 %v1375_v13, %v5903_v36  ;;  %v1377_v8 = vpop.f32.mrb[71].mxu1 }
 0x201   : > { %2647 = vmatprep.mubr.bf16.mxu0 %v5944_v62  ;;  %v1515_v20 = vmax.f32 %v1374_v41, 0.0  ;;  %v1378_v21 = vadd.f32 %v1377_v8, %v5908_v54 }
 0x202   : > { %v1518_v24 = vmax.f32 %v1376_v1, 0.0 }
 0x203   : > { %v4103_v63 = vpack.c.bf16 %v1515_v20, %v1514_v7  ;;  %v1519_v30 = vmax.f32 %v1378_v21, 0.0 }
 0x204   : > { %v6037_v23 = vpack.c.bf16 %v1518_v24, %v1514_v7 }
 0x205   : > { %1989 = vst [vmem:[%s5554_s13 + $0x128] sm:$0xff] %v4103_v63  ;;  %v6040_v4 = vpack.c.bf16 %v1519_v30, %v1515_v20  ;;  %v4105_v40 = vpack.c.bf16 %v1519_v30, %v1518_v24  ;;  %v1381_v25 = vpop.f32.mrb[72].mxu1 }
 0x206   : > { %6804 = vst [vmem:[#allocation56_spill] sm:$0xff] %v6037_v23  ;;  %v1382_v18 = vadd.f32 %v1381_v25, %v5903_v36  ;;  %v1383_v13 = vpop.f32.mrb[73].mxu1 }
 0x207   : > { %6805 = vst [vmem:[#allocation57_spill] sm:$0xff] %v6040_v4  ;;  %1991 = vst [vmem:[%s5554_s13 + $0x138] sm:$0xff] %v4105_v40  ;;  %v1384_v62 = vadd.f32 %v1383_v13, %v5908_v54  ;;  %v1385_v41 = vpop.f32.mrb[74].mxu1 }
 0x208   : > { %2648 = vmatmul.mubr.bf16.gmra.mrb[36].mxu0 %v5941_v61  ;;  %v1522_v1 = vmax.f32 %v1382_v18, 0.0  ;;  %v1386_v7 = vadd.f32 %v1385_v41, %v5903_v36  ;;  %v1387_v8 = vpop.f32.mrb[75].mxu1 }
 0x209   : > { %2657 = vmatprep.mubr.bf16.mxu0 %v5956_v16  ;;  %v1523_v20 = vmax.f32 %v1384_v62, 0.0  ;;  %v1388_v21 = vadd.f32 %v1387_v8, %v5908_v54 }
 0x20a   : > { %v1526_v24 = vmax.f32 %v1386_v7, 0.0 }
 0x20b   : > { %v4107_v25 = vpack.c.bf16 %v1523_v20, %v1522_v1  ;;  %v1527_v63 = vmax.f32 %v1388_v21, 0.0 }
 0x20c   : > { %v6049_v30 = vpack.c.bf16 %v1526_v24, %v1522_v1 }
 0x20d   : > { %1993 = vst [vmem:[%s5554_s13 + $0x148] sm:$0xff] %v4107_v25  ;;  %v6052_v40 = vpack.c.bf16 %v1527_v63, %v1523_v20  ;;  %v4109_v13 = vpack.c.bf16 %v1527_v63, %v1526_v24  ;;  %v1391_v61 = vpop.f32.mrb[76].mxu1 }
 0x20e   : > { %6806 = vst [vmem:[#allocation58_spill] sm:$0xff] %v6049_v30  ;;  %v1392_v18 = vadd.f32 %v1391_v61, %v5903_v36  ;;  %v1393_v41 = vpop.f32.mrb[77].mxu1 }
 0x20f   : > { %6807 = vst [vmem:[#allocation59_spill] sm:$0xff] %v6052_v40  ;;  %1995 = vst [vmem:[%s5554_s13 + $0x158] sm:$0xff] %v4109_v13  ;;  %v1394_v16 = vadd.f32 %v1393_v41, %v5908_v54  ;;  %v1395_v62 = vpop.f32.mrb[78].mxu1 }
 0x210   : > { %2658 = vmatmul.mubr.bf16.gmra.mrb[40].mxu0 %v5953_v17  ;;  %v1530_v7 = vmax.f32 %v1392_v18, 0.0  ;;  %v1396_v1 = vadd.f32 %v1395_v62, %v5903_v36  ;;  %v1397_v8 = vpop.f32.mrb[79].mxu1 }
 0x211   : > { %2667 = vmatprep.mubr.bf16.mxu0 %v5968_v50  ;;  %v1531_v20 = vmax.f32 %v1394_v16, 0.0  ;;  %v1398_v21 = vadd.f32 %v1397_v8, %v5908_v54 }
 0x212   : > { %v1534_v24 = vmax.f32 %v1396_v1, 0.0 }
 0x213   : > { %v4111_v61 = vpack.c.bf16 %v1531_v20, %v1530_v7  ;;  %v1535_v25 = vmax.f32 %v1398_v21, 0.0 }
 0x214   : > { %v6061_v63 = vpack.c.bf16 %v1534_v24, %v1530_v7 }
 0x215   : > { %1997 = vst [vmem:[%s5554_s13 + $0x168] sm:$0xff] %v4111_v61  ;;  %v6064_v13 = vpack.c.bf16 %v1535_v25, %v1531_v20  ;;  %v4113_v41 = vpack.c.bf16 %v1535_v25, %v1534_v24  ;;  %v1401_v17 = vpop.f32.mrb[80].mxu1 }
 0x216   : > { %6808 = vst [vmem:[#allocation60_spill] sm:$0xff] %v6061_v63  ;;  %v1402_v18 = vadd.f32 %v1401_v17, %v5903_v36  ;;  %v1403_v62 = vpop.f32.mrb[81].mxu1 }
 0x217   : > { %6809 = vst [vmem:[#allocation61_spill] sm:$0xff] %v6064_v13  ;;  %1999 = vst [vmem:[%s5554_s13 + $0x178] sm:$0xff] %v4113_v41  ;;  %v1404_v50 = vadd.f32 %v1403_v62, %v5908_v54  ;;  %v1405_v16 = vpop.f32.mrb[82].mxu1 }
 0x218   : > { %2668 = vmatmul.mubr.bf16.gmra.mrb[44].mxu0 %v5965_v2  ;;  %v1538_v1 = vmax.f32 %v1402_v18, 0.0  ;;  %v1406_v7 = vadd.f32 %v1405_v16, %v5903_v36  ;;  %v1407_v8 = vpop.f32.mrb[83].mxu1 }
 0x219   : > { %2677 = vmatprep.mubr.bf16.mxu0 %v5980_v57  ;;  %v1539_v20 = vmax.f32 %v1404_v50, 0.0  ;;  %v1408_v21 = vadd.f32 %v1407_v8, %v5908_v54 }
 0x21a   : > { %v1542_v24 = vmax.f32 %v1406_v7, 0.0 }
 0x21b   : > { %v4115_v17 = vpack.c.bf16 %v1539_v20, %v1538_v1  ;;  %v1543_v61 = vmax.f32 %v1408_v21, 0.0 }
 0x21c   : > { %v6073_v25 = vpack.c.bf16 %v1542_v24, %v1538_v1 }
 0x21d   : > { %2001 = vst [vmem:[%s5554_s13 + $0x188] sm:$0xff] %v4115_v17  ;;  %v6076_v41 = vpack.c.bf16 %v1543_v61, %v1539_v20  ;;  %v4117_v62 = vpack.c.bf16 %v1543_v61, %v1542_v24  ;;  %v1411_v2 = vpop.f32.mrb[84].mxu1 }
 0x21e   : > { %6810 = vst [vmem:[#allocation62_spill] sm:$0xff] %v6073_v25  ;;  %v1412_v18 = vadd.f32 %v1411_v2, %v5903_v36  ;;  %v1413_v16 = vpop.f32.mrb[85].mxu1 }
 0x21f   : > { %6811 = vst [vmem:[#allocation63_spill] sm:$0xff] %v6076_v41  ;;  %2003 = vst [vmem:[%s5554_s13 + $0x198] sm:$0xff] %v4117_v62  ;;  %v1414_v57 = vadd.f32 %v1413_v16, %v5908_v54  ;;  %v1415_v50 = vpop.f32.mrb[86].mxu1 }
 0x220   : > { %2678 = vmatmul.mubr.bf16.gmra.mrb[48].mxu0 %v5977_v58  ;;  %v1546_v7 = vmax.f32 %v1412_v18, 0.0  ;;  %v1416_v1 = vadd.f32 %v1415_v50, %v5903_v36  ;;  %v1417_v8 = vpop.f32.mrb[87].mxu1 }
 0x221   : > { %2687 = vmatprep.mubr.bf16.mxu0 %v5992_v5  ;;  %v1547_v20 = vmax.f32 %v1414_v57, 0.0  ;;  %v1418_v21 = vadd.f32 %v1417_v8, %v5908_v54 }
 0x222   : > { %v1550_v24 = vmax.f32 %v1416_v1, 0.0 }
 0x223   : > { %v4119_v2 = vpack.c.bf16 %v1547_v20, %v1546_v7  ;;  %v1551_v17 = vmax.f32 %v1418_v21, 0.0 }
 0x224   : > { %v6085_v61 = vpack.c.bf16 %v1550_v24, %v1546_v7 }
 0x225   : > { %2005 = vst [vmem:[%s5554_s13 + $0x1a8] sm:$0xff] %v4119_v2  ;;  %v6088_v62 = vpack.c.bf16 %v1551_v17, %v1547_v20  ;;  %v4121_v16 = vpack.c.bf16 %v1551_v17, %v1550_v24  ;;  %v1421_v58 = vpop.f32.mrb[88].mxu1 }
 0x226   : > { %6812 = vst [vmem:[#allocation64_spill] sm:$0xff] %v6085_v61  ;;  %v1422_v18 = vadd.f32 %v1421_v58, %v5903_v36  ;;  %v1423_v50 = vpop.f32.mrb[89].mxu1 }
 0x227   : > { %6813 = vst [vmem:[#allocation65_spill] sm:$0xff] %v6088_v62  ;;  %2007 = vst [vmem:[%s5554_s13 + $0x1b8] sm:$0xff] %v4121_v16  ;;  %v1424_v5 = vadd.f32 %v1423_v50, %v5908_v54  ;;  %v1425_v57 = vpop.f32.mrb[90].mxu1 }
 0x228   : > { %2688 = vmatmul.mubr.bf16.gmra.mrb[52].mxu0 %v5989_v14  ;;  %v1554_v1 = vmax.f32 %v1422_v18, 0.0  ;;  %v1426_v7 = vadd.f32 %v1425_v57, %v5903_v36  ;;  %v1427_v8 = vpop.f32.mrb[91].mxu1 }
 0x229   : > { %2697 = vmatprep.mubr.bf16.mxu0 %v6004_v38  ;;  %v1555_v20 = vmax.f32 %v1424_v5, 0.0  ;;  %v1428_v21 = vadd.f32 %v1427_v8, %v5908_v54 }
 0x22a   : > { %v1558_v24 = vmax.f32 %v1426_v7, 0.0 }
 0x22b   : > { %v4123_v58 = vpack.c.bf16 %v1555_v20, %v1554_v1  ;;  %v1559_v2 = vmax.f32 %v1428_v21, 0.0 }
 0x22c   : > { %v6097_v17 = vpack.c.bf16 %v1558_v24, %v1554_v1 }
 0x22d   : > { %2009 = vst [vmem:[%s5554_s13 + $0x1c8] sm:$0xff] %v4123_v58  ;;  %v6100_v16 = vpack.c.bf16 %v1559_v2, %v1555_v20  ;;  %v4125_v50 = vpack.c.bf16 %v1559_v2, %v1558_v24  ;;  %v1431_v14 = vpop.f32.mrb[92].mxu1 }
 0x22e   : > { %6814 = vst [vmem:[#allocation66_spill] sm:$0xff] %v6097_v17  ;;  %v1432_v18 = vadd.f32 %v1431_v14, %v5903_v36  ;;  %v1433_v57 = vpop.f32.mrb[93].mxu1 }
 0x22f   : > { %6815 = vst [vmem:[#allocation67_spill] sm:$0xff] %v6100_v16  ;;  %2011 = vst [vmem:[%s5554_s13 + $0x1d8] sm:$0xff] %v4125_v50  ;;  %v1434_v38 = vadd.f32 %v1433_v57, %v5908_v54  ;;  %v1435_v5 = vpop.f32.mrb[94].mxu1 }
 0x230   : > { %2698 = vmatmul.mubr.bf16.gmra.mrb[56].mxu0 %v6001_v56  ;;  %v1562_v7 = vmax.f32 %v1432_v18, 0.0  ;;  %v1436_v1 = vadd.f32 %v1435_v5, %v5903_v36  ;;  %v1437_v8 = vpop.f32.mrb[95].mxu1  ;;  %v2080_v36 = vld [vmem:[%s6693_s6] sm:$0x3] }
 0x231   : > { %2707 = vmatprep.mubr.bf16.mxu0 %v6016_v39  ;;  %v1563_v20 = vmax.f32 %v1434_v38, 0.0  ;;  %v1438_v21 = vadd.f32 %v1437_v8, %v5908_v54  ;;  %v6136_v54 = vrot.slane %v2080_v36, %v5726_v51 }
 0x232   : > { %v1566_v24 = vmax.f32 %v1436_v1, 0.0 }
 0x233   : > { %v4127_v14 = vpack.c.bf16 %v1563_v20, %v1562_v7  ;;  %v1567_v58 = vmax.f32 %v1438_v21, 0.0 }
 0x234   : > { %v6109_v2 = vpack.c.bf16 %v1566_v24, %v1562_v7 }
 0x235   : > { %2013 = vst [vmem:[%s5554_s13 + $0x1e8] sm:$0xff] %v4127_v14  ;;  %v6112_v50 = vpack.c.bf16 %v1567_v58, %v1563_v20  ;;  %v4129_v57 = vpack.c.bf16 %v1567_v58, %v1566_v24  ;;  %v6141_v58 = vrot.slane %v2080_v36, %v5718_v43 }
 0x236   : > { %6816 = vst [vmem:[#allocation68_spill] sm:$0xff] %v6109_v2 }
 0x237   : > { %6817 = vst [vmem:[#allocation69_spill] sm:$0xff] %v6112_v50  ;;  %2015 = vst [vmem:[%s5554_s13 + $0x1f8] sm:$0xff] %v4129_v57 }
 0x238   : > { %2708 = vmatmul.mubr.bf16.gmra.mrb[60].mxu0 %v6013_v47 }
 0x239   : > { %2717 = vmatprep.mubr.bf16.mxu0 %v6028_v49 }
 0x240   : > { %2718 = vmatmul.mubr.bf16.gmra.mrb[64].mxu0 %v6025_v3 }
 0x241   : > { %2727 = vmatprep.mubr.bf16.mxu0 %v6040_v4 }
 0x248   : > { %2728 = vmatmul.mubr.bf16.gmra.mrb[68].mxu0 %v6037_v23 }
 0x249   : > { %2737 = vmatprep.mubr.bf16.mxu0 %v6052_v40 }
 0x250   : > { %2738 = vmatmul.mubr.bf16.gmra.mrb[72].mxu0 %v6049_v30 }
 0x251   : > { %2747 = vmatprep.mubr.bf16.mxu0 %v6064_v13 }
 0x258   : > { %2748 = vmatmul.mubr.bf16.gmra.mrb[76].mxu0 %v6061_v63 }
 0x259   : > { %2757 = vmatprep.mubr.bf16.mxu0 %v6076_v41 }
 0x260   : > { %2758 = vmatmul.mubr.bf16.gmra.mrb[80].mxu0 %v6073_v25 }
 0x261   : > { %2767 = vmatprep.mubr.bf16.mxu0 %v6088_v62 }
 0x268   : > { %2768 = vmatmul.mubr.bf16.gmra.mrb[84].mxu0 %v6085_v61 }
 0x269   : > { %2777 = vmatprep.mubr.bf16.mxu0 %v6100_v16 }
 0x270   : > { %2778 = vmatmul.mubr.bf16.gmra.mrb[88].mxu0 %v6097_v17 }
 0x271   : > { %2787 = vmatprep.mubr.bf16.mxu0 %v6112_v50 }
 0x278   : > { %2788 = vmatmul.mubr.bf16.gmra.mrb[92].mxu0 %v6109_v2 }
 0x2d3   : > { %v2639_v38 = vpop.f32.mrb[32].mxu0 }
 0x2d4   : > { %v2641_v18 = vpop.f32.mrb[33].mxu0  ;;  %v4492_v17 = vadd.f32 %v2639_v38, %v6141_v58 }
 0x2d5   : > { %v4493_v5 = vadd.f32 %v2641_v18, %v6136_v54  ;;  %v2643_v7 = vpop.f32.mrb[34].mxu0 }
 0x2d6   : > { %v2645_v1 = vpop.f32.mrb[35].mxu0 }
 0x2d7   : > { %v4021_v8 = vmul.f32 -1.442695, %v4493_v5  ;;  %v4495_v20 = vadd.f32 %v2645_v1, %v6136_v54 }
 0x2d9   : > { %4947 = vpow2.f32 %v4021_v8  ;;  %v4022_v21 = vmul.f32 -1.442695, %v4495_v20  ;;  %v4494_v8 = vadd.f32 %v2643_v7, %v6141_v58 }
 0x2db   : > { %4949 = vpow2.f32 %v4022_v21  ;;  %v2649_v24 = vpop.f32.mrb[36].mxu0 }
 0x2dc   : > { %v2651_v14 = vpop.f32.mrb[37].mxu0  ;;  %v4496_v38 = vadd.f32 %v2649_v24, %v6141_v58 }
 0x2dd   : > { %v4497_v57 = vadd.f32 %v2651_v14, %v6136_v54  ;;  %v2653_v51 = vpop.f32.mrb[38].mxu0 }
 0x2de   : > { %v2655_v2 = vpop.f32.mrb[39].mxu0 }
 0x2df   : > { %v4023_v50 = vmul.f32 -1.442695, %v4497_v57  ;;  %v4499_v18 = vadd.f32 %v2655_v2, %v6136_v54 }
 0x2e1   : > { %4951 = vpow2.f32 %v4023_v50  ;;  %v4024_v5 = vmul.f32 -1.442695, %v4499_v18 }
 0x2e3   : > { %v4948_v1 = vpop.eup %4947  ;;  %4953 = vpow2.f32 %v4024_v5  ;;  %v2659_v20 = vpop.f32.mrb[40].mxu0  ;;  %v4498_v5 = vadd.f32 %v2653_v51, %v6141_v58 }
 0x2e4   : > { %v2926_v21 = vadd.f32 1.0, %v4948_v1  ;;  %v2661_v16 = vpop.f32.mrb[41].mxu0  ;;  %4955 = vtanh.f32 %v4492_v17 }
 0x2e5   : > { %v4950_v36 = vpop.eup %4949  ;;  %v4501_v14 = vadd.f32 %v2661_v16, %v6136_v54  ;;  %v2663_v61 = vpop.f32.mrb[42].mxu0 }
 0x2e6   : > { %4957 = vrcp.f32 %v2926_v21  ;;  %v2927_v57 = vadd.f32 1.0, %v4950_v36  ;;  %v2665_v62 = vpop.f32.mrb[43].mxu0 }
 0x2e7   : > { %4959 = vtanh.f32 %v4494_v8  ;;  %v4025_v2 = vmul.f32 -1.442695, %v4501_v14  ;;  %v4503_v50 = vadd.f32 %v2665_v62, %v6136_v54 }
 0x2e8   : > { %4961 = vrcp.f32 %v2927_v57 }
 0x2e9   : > { %4963 = vpow2.f32 %v4025_v2  ;;  %v4026_v7 = vmul.f32 -1.442695, %v4503_v50  ;;  %v4500_v50 = vadd.f32 %v2659_v20, %v6141_v58 }
 0x2eb   : > { %v4952_v18 = vpop.eup %4951  ;;  %4965 = vpow2.f32 %v4026_v7  ;;  %v2669_v17 = vpop.f32.mrb[44].mxu0 }
 0x2ec   : > { %v2928_v1 = vadd.f32 1.0, %v4952_v18  ;;  %v2671_v16 = vpop.f32.mrb[45].mxu0  ;;  %4967 = vtanh.f32 %v4496_v38  ;;  %v6159_v38 = vld [vmem:[%s6694_s7] sm:$0x1] }
 0x2ed   : > { %v4954_v25 = vpop.eup %4953  ;;  %v4505_v21 = vadd.f32 %v2671_v16, %v6136_v54  ;;  %v2673_v8 = vpop.f32.mrb[46].mxu0  ;;  %4164 = vmatprep.mubr.f32.mxu1 %v6159_v38 }
 0x2ee   : > { %4969 = vrcp.f32 %v2928_v1  ;;  %v2929_v36 = vadd.f32 1.0, %v4954_v25  ;;  %v2675_v62 = vpop.f32.mrb[47].mxu0  ;;  %v4956_v14 = vpop.eup %4955  ;;  %v4502_v1 = vadd.f32 %v2663_v61, %v6141_v58 }
 0x2ef   : > { %4971 = vtanh.f32 %v4498_v5  ;;  %v4027_v24 = vmul.f32 -1.442695, %v4505_v21  ;;  %v4507_v57 = vadd.f32 %v2675_v62, %v6136_v54 }
 0x2f0   : > { %v4958_v2 = vpop.eup %4957  ;;  %4973 = vrcp.f32 %v2929_v36 }
 0x2f1   : > { %v4960_v51 = vpop.eup %4959  ;;  %4975 = vpow2.f32 %v4027_v24  ;;  %v4028_v7 = vmul.f32 -1.442695, %v4507_v57  ;;  %v6154_v18 = vmul.f32 %v4958_v2, %v4956_v14 }
 0x2f2   : > { %v4962_v25 = vpop.eup %4961 }
 0x2f3   : > { %v4964_v5 = vpop.eup %4963  ;;  %4977 = vpow2.f32 %v4028_v7  ;;  %v2679_v16 = vpop.f32.mrb[48].mxu0  ;;  %v6163_v21 = vmul.f32 %v4962_v25, %v4960_v51 }
 0x2f4   : > { %v2930_v20 = vadd.f32 1.0, %v4964_v5  ;;  %v2681_v36 = vpop.f32.mrb[49].mxu0  ;;  %4979 = vtanh.f32 %v4500_v50  ;;  %v4504_v5 = vadd.f32 %v2669_v17, %v6141_v58 }
 0x2f5   : > { %v4966_v62 = vpop.eup %4965  ;;  %v4509_v14 = vadd.f32 %v2681_v36, %v6136_v54  ;;  %v2683_v24 = vpop.f32.mrb[50].mxu0 }
 0x2f6   : > { %4981 = vrcp.f32 %v2930_v20  ;;  %v2931_v2 = vadd.f32 1.0, %v4966_v62  ;;  %v2685_v41 = vpop.f32.mrb[51].mxu0  ;;  %v4968_v63 = vpop.eup %4967  ;;  %v4506_v20 = vadd.f32 %v2673_v8, %v6141_v58 }
 0x2f7   : > { %4983 = vtanh.f32 %v4502_v1  ;;  %v4029_v61 = vmul.f32 -1.442695, %v4509_v14  ;;  %v4511_v7 = vadd.f32 %v2685_v41, %v6136_v54 }
 0x2f8   : > { %v4970_v51 = vpop.eup %4969  ;;  %4985 = vrcp.f32 %v2931_v2 }
 0x2f9   : > { %v4972_v25 = vpop.eup %4971  ;;  %4987 = vpow2.f32 %v4029_v61  ;;  %v4030_v50 = vmul.f32 -1.442695, %v4511_v7  ;;  %v6170_v36 = vmul.f32 %v4970_v51, %v4968_v63 }
 0x2fa   : > { %v4974_v13 = vpop.eup %4973 }
 0x2fb   : > { %v4976_v30 = vpop.eup %4975  ;;  %4989 = vpow2.f32 %v4030_v50  ;;  %v2689_v62 = vpop.f32.mrb[52].mxu0  ;;  %v6173_v57 = vmul.f32 %v4974_v13, %v4972_v25  ;;  %v4508_v25 = vadd.f32 %v2679_v16, %v6141_v58 }
 0x2fc   : > { %v2932_v1 = vadd.f32 1.0, %v4976_v30  ;;  %v2691_v14 = vpop.f32.mrb[53].mxu0  ;;  %4991 = vtanh.f32 %v4504_v5 }
 0x2fd   : > { %v4978_v41 = vpop.eup %4977  ;;  %v4513_v2 = vadd.f32 %v2691_v14, %v6136_v54  ;;  %v2693_v40 = vpop.f32.mrb[54].mxu0 }
 0x2fe   : > { %4993 = vrcp.f32 %v2932_v1  ;;  %v2933_v63 = vadd.f32 1.0, %v4978_v41  ;;  %v2695_v61 = vpop.f32.mrb[55].mxu0  ;;  %v4980_v7 = vpop.eup %4979  ;;  %v4510_v1 = vadd.f32 %v2683_v24, %v6141_v58 }
 0x2ff   : > { %4995 = vtanh.f32 %v4506_v20  ;;  %v4031_v8 = vmul.f32 -1.442695, %v4513_v2  ;;  %v4515_v51 = vadd.f32 %v2695_v61, %v6136_v54 }
 0x300   : > { %v4982_v13 = vpop.eup %4981  ;;  %4997 = vrcp.f32 %v2933_v63 }
 0x301   : > { %v4984_v30 = vpop.eup %4983  ;;  %4999 = vpow2.f32 %v4031_v8  ;;  %v4032_v5 = vmul.f32 -1.442695, %v4515_v51  ;;  %v6180_v50 = vmul.f32 %v4982_v13, %v4980_v7 }
 0x302   : > { %v4986_v14 = vpop.eup %4985 }
 0x303   : > { %v4988_v23 = vpop.eup %4987  ;;  %5001 = vpow2.f32 %v4032_v5  ;;  %v2699_v41 = vpop.f32.mrb[56].mxu0  ;;  %v6183_v17 = vmul.f32 %v4986_v14, %v4984_v30  ;;  %v4512_v5 = vadd.f32 %v2689_v62, %v6141_v58 }
 0x304   : > { %v2934_v20 = vadd.f32 1.0, %v4988_v23  ;;  %v2701_v2 = vpop.f32.mrb[57].mxu0  ;;  %5003 = vtanh.f32 %v4508_v25 }
 0x305   : > { %v4990_v61 = vpop.eup %4989  ;;  %v4517_v63 = vadd.f32 %v2701_v2, %v6136_v54  ;;  %v2703_v4 = vpop.f32.mrb[58].mxu0 }
 0x306   : > { %5005 = vrcp.f32 %v2934_v20  ;;  %v2935_v7 = vadd.f32 1.0, %v4990_v61  ;;  %v2705_v8 = vpop.f32.mrb[59].mxu0  ;;  %v4992_v51 = vpop.eup %4991  ;;  %v4514_v20 = vadd.f32 %v2693_v40, %v6141_v58 }
 0x307   : > { %5007 = vtanh.f32 %v4510_v1  ;;  %v4033_v24 = vmul.f32 -1.442695, %v4517_v63  ;;  %v4519_v13 = vadd.f32 %v2705_v8, %v6136_v54 }
 0x308   : > { %v4994_v30 = vpop.eup %4993  ;;  %5009 = vrcp.f32 %v2935_v7 }
 0x309   : > { %v4996_v23 = vpop.eup %4995  ;;  %5011 = vpow2.f32 %v4033_v24  ;;  %v4034_v25 = vmul.f32 -1.442695, %v4519_v13  ;;  %v6190_v14 = vmul.f32 %v4994_v30, %v4992_v51 }
 0x30a   : > { %v4998_v2 = vpop.eup %4997 }
 0x30b   : > { %v5000_v3 = vpop.eup %4999  ;;  %5013 = vpow2.f32 %v4034_v25  ;;  %v2709_v61 = vpop.f32.mrb[60].mxu0  ;;  %v6193_v16 = vmul.f32 %v4998_v2, %v4996_v23  ;;  %v4516_v25 = vadd.f32 %v2699_v41, %v6141_v58 }
 0x30c   : > { %v2936_v1 = vadd.f32 1.0, %v5000_v3  ;;  %v2711_v63 = vpop.f32.mrb[61].mxu0  ;;  %5015 = vtanh.f32 %v4512_v5 }
 0x30d   : > { %v5002_v8 = vpop.eup %5001  ;;  %v4521_v7 = vadd.f32 %v2711_v63, %v6136_v54  ;;  %v2713_v49 = vpop.f32.mrb[62].mxu0 }
 0x30e   : > { %5017 = vrcp.f32 %v2936_v1  ;;  %v2937_v51 = vadd.f32 1.0, %v5002_v8  ;;  %v2715_v24 = vpop.f32.mrb[63].mxu0  ;;  %v5004_v13 = vpop.eup %5003  ;;  %v4518_v1 = vadd.f32 %v2703_v4, %v6141_v58 }
 0x30f   : > { %5019 = vtanh.f32 %v4514_v20  ;;  %v4035_v40 = vmul.f32 -1.442695, %v4521_v7  ;;  %v4523_v30 = vadd.f32 %v2715_v24, %v6136_v54 }
 0x310   : > { %v5006_v23 = vpop.eup %5005  ;;  %5021 = vrcp.f32 %v2937_v51 }
 0x311   : > { %v5008_v3 = vpop.eup %5007  ;;  %5023 = vpow2.f32 %v4035_v40  ;;  %v4036_v5 = vmul.f32 -1.442695, %v4523_v30  ;;  %v6200_v2 = vmul.f32 %v5006_v23, %v5004_v13 }
 0x312   : > { %v5010_v63 = vpop.eup %5009 }
 0x313   : > { %v5012_v47 = vpop.eup %5011  ;;  %5025 = vpow2.f32 %v4036_v5  ;;  %v2719_v8 = vpop.f32.mrb[64].mxu0  ;;  %v6203_v62 = vmul.f32 %v5010_v63, %v5008_v3  ;;  %v4520_v5 = vadd.f32 %v2709_v61, %v6141_v58 }
 0x314   : > { %v2938_v20 = vadd.f32 1.0, %v5012_v47  ;;  %v2721_v7 = vpop.f32.mrb[65].mxu0  ;;  %5027 = vtanh.f32 %v4516_v25 }
 0x315   : > { %v5014_v24 = vpop.eup %5013  ;;  %v4525_v51 = vadd.f32 %v2721_v7, %v6136_v54  ;;  %v2723_v39 = vpop.f32.mrb[66].mxu0 }
 0x316   : > { %5029 = vrcp.f32 %v2938_v20  ;;  %v2939_v13 = vadd.f32 1.0, %v5014_v24  ;;  %v2725_v40 = vpop.f32.mrb[67].mxu0  ;;  %v5016_v30 = vpop.eup %5015  ;;  %v4522_v20 = vadd.f32 %v2713_v49, %v6141_v58 }
 0x317   : > { %5031 = vtanh.f32 %v4518_v1  ;;  %v4037_v4 = vmul.f32 -1.442695, %v4525_v51  ;;  %v4527_v23 = vadd.f32 %v2725_v40, %v6136_v54 }
 0x318   : > { %v5018_v3 = vpop.eup %5017  ;;  %5033 = vrcp.f32 %v2939_v13 }
 0x319   : > { %v5020_v47 = vpop.eup %5019  ;;  %5035 = vpow2.f32 %v4037_v4  ;;  %v4038_v25 = vmul.f32 -1.442695, %v4527_v23  ;;  %v6210_v63 = vmul.f32 %v5018_v3, %v5016_v30 }
 0x31a   : > { %v5022_v7 = vpop.eup %5021 }
 0x31b   : > { %v5024_v56 = vpop.eup %5023  ;;  %5037 = vpow2.f32 %v4038_v25  ;;  %v2729_v24 = vpop.f32.mrb[68].mxu0  ;;  %v6213_v41 = vmul.f32 %v5022_v7, %v5020_v47  ;;  %v4524_v25 = vadd.f32 %v2719_v8, %v6141_v58 }
 0x31c   : > { %v2940_v1 = vadd.f32 1.0, %v5024_v56  ;;  %v2731_v51 = vpop.f32.mrb[69].mxu0  ;;  %5039 = vtanh.f32 %v4520_v5 }
 0x31d   : > { %v5026_v40 = vpop.eup %5025  ;;  %v4529_v13 = vadd.f32 %v2731_v51, %v6136_v54  ;;  %v2733_v43 = vpop.f32.mrb[70].mxu0 }
 0x31e   : > { %5041 = vrcp.f32 %v2940_v1  ;;  %v2941_v30 = vadd.f32 1.0, %v5026_v40  ;;  %v2735_v4 = vpop.f32.mrb[71].mxu0  ;;  %v5028_v23 = vpop.eup %5027  ;;  %v4526_v1 = vadd.f32 %v2723_v39, %v6141_v58 }
 0x31f   : > { %5043 = vtanh.f32 %v4522_v20  ;;  %v4039_v49 = vmul.f32 -1.442695, %v4529_v13  ;;  %v4531_v3 = vadd.f32 %v2735_v4, %v6136_v54 }
 0x320   : > { %v5030_v47 = vpop.eup %5029  ;;  %5045 = vrcp.f32 %v2941_v30 }
 0x321   : > { %v5032_v56 = vpop.eup %5031  ;;  %5047 = vpow2.f32 %v4039_v49  ;;  %v4040_v5 = vmul.f32 -1.442695, %v4531_v3  ;;  %v6220_v7 = vmul.f32 %v5030_v47, %v5028_v23 }
 0x322   : > { %v5034_v51 = vpop.eup %5033 }
 0x323   : > { %v5036_v46 = vpop.eup %5035  ;;  %5049 = vpow2.f32 %v4040_v5  ;;  %v2739_v40 = vpop.f32.mrb[72].mxu0  ;;  %v6223_v61 = vmul.f32 %v5034_v51, %v5032_v56  ;;  %v4528_v5 = vadd.f32 %v2729_v24, %v6141_v58 }
 0x324   : > { %v2942_v20 = vadd.f32 1.0, %v5036_v46  ;;  %v2741_v13 = vpop.f32.mrb[73].mxu0  ;;  %5051 = vtanh.f32 %v4524_v25 }
 0x325   : > { %v5038_v4 = vpop.eup %5037  ;;  %v4533_v30 = vadd.f32 %v2741_v13, %v6136_v54  ;;  %v2743_v28 = vpop.f32.mrb[74].mxu0 }
 0x326   : > { %5053 = vrcp.f32 %v2942_v20  ;;  %v2943_v23 = vadd.f32 1.0, %v5038_v4  ;;  %v2745_v49 = vpop.f32.mrb[75].mxu0  ;;  %v5040_v3 = vpop.eup %5039  ;;  %v4530_v20 = vadd.f32 %v2733_v43, %v6141_v58  ;;  %v4534_v24 = vadd.f32 %v2743_v28, %v6141_v58 }
 0x327   : > { %5055 = vtanh.f32 %v4526_v1  ;;  %v4041_v39 = vmul.f32 -1.442695, %v4533_v30  ;;  %v4535_v47 = vadd.f32 %v2745_v49, %v6136_v54 }
 0x328   : > { %v5042_v56 = vpop.eup %5041  ;;  %5057 = vrcp.f32 %v2943_v23 }
 0x329   : > { %v5044_v46 = vpop.eup %5043  ;;  %5059 = vpow2.f32 %v4041_v39  ;;  %v4042_v25 = vmul.f32 -1.442695, %v4535_v47  ;;  %v6230_v51 = vmul.f32 %v5042_v56, %v5040_v3 }
 0x32a   : > { %v5046_v13 = vpop.eup %5045 }
 0x32b   : > { %v5048_v35 = vpop.eup %5047  ;;  %5061 = vpow2.f32 %v4042_v25  ;;  %v2749_v4 = vpop.f32.mrb[76].mxu0  ;;  %v6233_v8 = vmul.f32 %v5046_v13, %v5044_v46  ;;  %v4532_v25 = vadd.f32 %v2739_v40, %v6141_v58 }
 0x32c   : > { %v2944_v1 = vadd.f32 1.0, %v5048_v35  ;;  %v2751_v30 = vpop.f32.mrb[77].mxu0  ;;  %5063 = vtanh.f32 %v4528_v5 }
 0x32d   : > { %v5050_v49 = vpop.eup %5049  ;;  %v4537_v23 = vadd.f32 %v2751_v30, %v6136_v54  ;;  %v2753_v33 = vpop.f32.mrb[78].mxu0 }
 0x32e   : > { %5065 = vrcp.f32 %v2944_v1  ;;  %v2945_v3 = vadd.f32 1.0, %v5050_v49  ;;  %v2755_v39 = vpop.f32.mrb[79].mxu0  ;;  %v5052_v47 = vpop.eup %5051 }
 0x32f   : > { %5067 = vtanh.f32 %v4530_v20  ;;  %v4043_v43 = vmul.f32 -1.442695, %v4537_v23  ;;  %v4539_v56 = vadd.f32 %v2755_v39, %v6136_v54 }
 0x330   : > { %v5054_v46 = vpop.eup %5053  ;;  %5069 = vrcp.f32 %v2945_v3 }
 0x331   : > { %v5056_v35 = vpop.eup %5055  ;;  %5071 = vpow2.f32 %v4043_v43  ;;  %v4044_v5 = vmul.f32 -1.442695, %v4539_v56  ;;  %v3038_v13 = vmul.f32 %v5054_v46, %v5052_v47 }
 0x332   : > { %v5058_v30 = vpop.eup %5057 }
 0x333   : > { %v5060_v37 = vpop.eup %5059  ;;  %5073 = vpow2.f32 %v4044_v5  ;;  %v2759_v1 = vpop.f32.mrb[80].mxu0  ;;  %v3039_v49 = vmul.f32 %v5058_v30, %v5056_v35 }
 0x334   : > { %v2946_v53 = vadd.f32 1.0, %v5060_v37  ;;  %v2761_v20 = vpop.f32.mrb[81].mxu0  ;;  %5075 = vtanh.f32 %v4532_v25  ;;  %v6818_v37 = vpack.c.bf16 %v6163_v21, %v6154_v18  ;;  %v4536_v25 = vadd.f32 %v2749_v4, %v6141_v58 }
 0x335   : > { %v5062_v23 = vpop.eup %5061  ;;  %v4541_v39 = vadd.f32 %v2761_v20, %v6136_v54  ;;  %v2763_v3 = vpop.f32.mrb[82].mxu0  ;;  %v4236_v59 = vpack.c.bf16 %v3039_v49, %v3038_v13 }
 0x336   : > { %5077 = vrcp.f32 %v2946_v53  ;;  %v2947_v40 = vadd.f32 1.0, %v5062_v23  ;;  %v2765_v43 = vpop.f32.mrb[83].mxu0  ;;  %v5064_v56 = vpop.eup %5063 }
 0x337   : > { %5079 = vtanh.f32 %v4534_v24  ;;  %v4045_v47 = vmul.f32 -1.442695, %v4541_v39  ;;  %v4543_v46 = vadd.f32 %v2765_v43, %v6136_v54  ;;  %4237 = vmatprep.subr.bf16.mxu1 %v4236_v59  ;;  %v4538_v24 = vadd.f32 %v2753_v33, %v6141_v58 }
 0x338   : > { %v5066_v28 = vpop.eup %5065  ;;  %5081 = vrcp.f32 %v2947_v40  ;;  %4239 = vmatpush3.bf16.xpose.msra.mxu1 %v6818_v37 }
 0x339   : > { %v5068_v35 = vpop.eup %5067  ;;  %5083 = vpow2.f32 %v4045_v47  ;;  %v4046_v5 = vmul.f32 -1.442695, %v4543_v46  ;;  %v3040_v53 = vmul.f32 %v5066_v28, %v5064_v56  ;;  %v6819_v28 = vpack.c.bf16 %v6173_v57, %v6170_v36 }
 0x33a   : > { %v5070_v13 = vpop.eup %5069 }
 0x33b   : > { %v5072_v30 = vpop.eup %5071  ;;  %5085 = vpow2.f32 %v4046_v5  ;;  %v2769_v49 = vpop.f32.mrb[84].mxu0  ;;  %v3041_v20 = vmul.f32 %v5070_v13, %v5068_v35  ;;  %v4540_v35 = vadd.f32 %v2759_v1, %v6141_v58 }
 0x33c   : > { %v2948_v59 = vadd.f32 1.0, %v5072_v30  ;;  %v2771_v23 = vpop.f32.mrb[85].mxu0  ;;  %5087 = vtanh.f32 %v4536_v25  ;;  %v4542_v30 = vadd.f32 %v2763_v3, %v6141_v58 }
 0x33d   : > { %v5074_v39 = vpop.eup %5073  ;;  %v4545_v18 = vadd.f32 %v2771_v23, %v6136_v54  ;;  %v2773_v21 = vpop.f32.mrb[86].mxu0  ;;  %v4240_v40 = vpack.c.bf16 %v3041_v20, %v3040_v53 }
 0x33e   : > { %5089 = vrcp.f32 %v2948_v59  ;;  %v2949_v4 = vadd.f32 1.0, %v5074_v39  ;;  %v2775_v43 = vpop.f32.mrb[87].mxu0  ;;  %v5076_v47 = vpop.eup %5075 }
 0x33f   : > { %5091 = vtanh.f32 %v4538_v24  ;;  %v4047_v56 = vmul.f32 -1.442695, %v4545_v18  ;;  %v4547_v46 = vadd.f32 %v2775_v43, %v6136_v54  ;;  %4241 = vmatprep.subr.bf16.mxu1 %v4240_v40 }
 0x340   : > { %v5078_v33 = vpop.eup %5077  ;;  %5093 = vrcp.f32 %v2949_v4  ;;  %4243 = vmatpush3.bf16.xpose.msra.mxu1 %v6819_v28 }
 0x341   : > { %v5080_v37 = vpop.eup %5079  ;;  %5095 = vpow2.f32 %v4047_v56  ;;  %v4048_v25 = vmul.f32 -1.442695, %v4547_v46  ;;  %v3042_v5 = vmul.f32 %v5078_v33, %v5076_v47  ;;  %v6820_v56 = vpack.c.bf16 %v6183_v17, %v6180_v50 }
 0x342   : > { %v5082_v53 = vpop.eup %5081  ;;  %v4544_v33 = vadd.f32 %v2769_v49, %v6141_v58 }
 0x343   : > { %v5084_v13 = vpop.eup %5083  ;;  %5097 = vpow2.f32 %v4048_v25  ;;  %v2779_v24 = vpop.f32.mrb[88].mxu0  ;;  %v3043_v20 = vmul.f32 %v5082_v53, %v5080_v37 }
 0x344   : > { %v2950_v59 = vadd.f32 1.0, %v5084_v13  ;;  %v2781_v23 = vpop.f32.mrb[89].mxu0  ;;  %5099 = vtanh.f32 %v4540_v35 }
 0x345   : > { %v5086_v39 = vpop.eup %5085  ;;  %v4549_v57 = vadd.f32 %v2781_v23, %v6136_v54  ;;  %v2783_v36 = vpop.f32.mrb[90].mxu0  ;;  %v4244_v18 = vpack.c.bf16 %v3043_v20, %v3042_v5  ;;  %v4546_v5 = vadd.f32 %v2773_v21, %v6141_v58 }
 0x346   : > { %5101 = vrcp.f32 %v2950_v59  ;;  %v2951_v1 = vadd.f32 1.0, %v5086_v39  ;;  %v2785_v40 = vpop.f32.mrb[91].mxu0  ;;  %v5088_v4 = vpop.eup %5087 }
 0x347   : > { %5103 = vtanh.f32 %v4542_v30  ;;  %v4049_v43 = vmul.f32 -1.442695, %v4549_v57  ;;  %v4551_v47 = vadd.f32 %v2785_v40, %v6136_v54  ;;  %4245 = vmatprep.subr.bf16.mxu1 %v4244_v18  ;;  %v6821_v40 = vpack.c.bf16 %v6193_v16, %v6190_v14 }
 0x348   : > { %v5090_v3 = vpop.eup %5089  ;;  %5105 = vrcp.f32 %v2951_v1  ;;  %4247 = vmatpush3.bf16.xpose.msra.mxu1 %v6820_v56 }
 0x349   : > { %v5092_v46 = vpop.eup %5091  ;;  %5107 = vpow2.f32 %v4049_v43  ;;  %v4050_v28 = vmul.f32 -1.442695, %v4551_v47  ;;  %v3044_v37 = vmul.f32 %v5090_v3, %v5088_v4  ;;  %v4548_v43 = vadd.f32 %v2779_v24, %v6141_v58 }
 0x34a   : > { %v5094_v35 = vpop.eup %5093  ;;  %v6822_v24 = vpack.c.bf16 %v6203_v62, %v6200_v2  ;;  %v6823_v2 = vpack.c.bf16 %v6213_v41, %v6210_v63  ;;  %v6825_v41 = vpack.c.bf16 %v6233_v8, %v6230_v51  ;;  %v6838_v51 = vld [vmem:[#allocation25_spill] sm:$0xff] }
 0x34b   : > { %v5096_v25 = vpop.eup %5095  ;;  %5109 = vpow2.f32 %v4050_v28  ;;  %v2789_v53 = vpop.f32.mrb[92].mxu0  ;;  %v3045_v13 = vmul.f32 %v5094_v35, %v5092_v46 }
 0x34c   : > { %v2952_v30 = vadd.f32 1.0, %v5096_v25  ;;  %v2791_v20 = vpop.f32.mrb[93].mxu0  ;;  %5111 = vtanh.f32 %v4544_v33  ;;  %v4550_v33 = vadd.f32 %v2783_v36, %v6141_v58  ;;  %v4552_v36 = vadd.f32 %v2789_v53, %v6141_v58 }
 0x34d   : > { %v5098_v59 = vpop.eup %5097  ;;  %v4553_v17 = vadd.f32 %v2791_v20, %v6136_v54  ;;  %v2793_v50 = vpop.f32.mrb[94].mxu0  ;;  %v4248_v23 = vpack.c.bf16 %v3045_v13, %v3044_v37 }
 0x34e   : > { %5113 = vrcp.f32 %v2952_v30  ;;  %v2953_v49 = vadd.f32 1.0, %v5098_v59  ;;  %v2795_v39 = vpop.f32.mrb[95].mxu0  ;;  %v5100_v57 = vpop.eup %5099  ;;  %v4554_v59 = vadd.f32 %v2793_v50, %v6141_v58 }
 0x34f   : > { %5115 = vtanh.f32 %v4546_v5  ;;  %v4051_v18 = vmul.f32 -1.442695, %v4553_v17  ;;  %v4555_v1 = vadd.f32 %v2795_v39, %v6136_v54  ;;  %4249 = vmatprep.subr.bf16.mxu1 %v4248_v23 }
 0x350   : > { %v5102_v21 = vpop.eup %5101  ;;  %5117 = vrcp.f32 %v2953_v49  ;;  %4251 = vmatpush3.bf16.xpose.msra.mxu1 %v6821_v40 }
 0x351   : > { %v5104_v4 = vpop.eup %5103  ;;  %5119 = vpow2.f32 %v4051_v18  ;;  %v4052_v47 = vmul.f32 -1.442695, %v4555_v1  ;;  %v3046_v3 = vmul.f32 %v5102_v21, %v5100_v57 }
 0x352   : > { %v5106_v56 = vpop.eup %5105 }
 0x353   : > { %v5108_v46 = vpop.eup %5107  ;;  %5121 = vpow2.f32 %v4052_v47  ;;  %v3047_v28 = vmul.f32 %v5106_v56, %v5104_v4 }
 0x354   : > { %v2954_v54 = vadd.f32 1.0, %v5108_v46  ;;  %5123 = vtanh.f32 %v4548_v43  ;;  %v6824_v43 = vpack.c.bf16 %v6223_v61, %v6220_v7 }
 0x355   : > { %v5110_v37 = vpop.eup %5109  ;;  %v4252_v35 = vpack.c.bf16 %v3047_v28, %v3046_v3 }
 0x356   : > { %5125 = vrcp.f32 %v2954_v54  ;;  %v2955_v25 = vadd.f32 1.0, %v5110_v37  ;;  %v5112_v16 = vpop.eup %5111 }
 0x357   : > { %5127 = vtanh.f32 %v4550_v33  ;;  %4253 = vmatprep.subr.bf16.mxu1 %v4252_v35 }
 0x358   : > { %v5114_v14 = vpop.eup %5113  ;;  %5129 = vrcp.f32 %v2955_v25  ;;  %4255 = vmatpush3.bf16.xpose.msra.mxu1 %v6822_v24 }
 0x359   : > { %v5116_v5 = vpop.eup %5115  ;;  %v3048_v13 = vmul.f32 %v5114_v14, %v5112_v16  ;;  %5131 = vtanh.f32 %v4552_v36  ;;  %v3141_v36 = vld [vmem:[#allocation2] sm:$0x1] }
 0x35a   : > { %v5118_v30 = vpop.eup %5117 }
 0x35b   : > { %v5120_v20 = vpop.eup %5119  ;;  %v3049_v17 = vmul.f32 %v5118_v30, %v5116_v5  ;;  %v5347_v5 = vmov 0  }
 0x35c   : > { %v2956_v23 = vadd.f32 1.0, %v5120_v20  ;;  %4705 = vset.pattern.permute.xlu0 %v5347_v5  ;;  %4706 = vset.pattern.permute.xlu1 %v5347_v5 }
 0x35d   : > { %v5122_v49 = vpop.eup %5121  ;;  %v4256_v39 = vpack.c.bf16 %v3049_v17, %v3048_v13  ;;  %v6839_v17 = vld [vmem:[#allocation26_spill] sm:$0xff] }
 0x35e   : > { %5133 = vrcp.f32 %v2956_v23  ;;  %v2957_v57 = vadd.f32 1.0, %v5122_v49  ;;  %v5124_v18 = vpop.eup %5123 }
 0x35f   : > { %5135 = vtanh.f32 %v4554_v59  ;;  %4257 = vmatprep.subr.bf16.mxu1 %v4256_v39 }
 0x360   : > { %v5126_v62 = vpop.eup %5125  ;;  %5137 = vrcp.f32 %v2957_v57  ;;  %4259 = vmatpush3.bf16.xpose.msra.mxu1 %v6823_v2 }
 0x361   : > { %v5128_v53 = vpop.eup %5127  ;;  %v3050_v1 = vmul.f32 %v5126_v62, %v5124_v18 }
 0x362   : > { %v5130_v21 = vpop.eup %5129 }
 0x363   : > { %v3051_v58 = vmul.f32 %v5130_v21, %v5128_v53  ;;  %v5132_v40 = vpop.eup %5131 }
 0x365   : > { %v4260_v50 = vpack.c.bf16 %v3051_v58, %v3050_v1  ;;  %v6840_v58 = vld [vmem:[#allocation38_spill] sm:$0xff] }
 0x367   : > { %4261 = vmatprep.subr.bf16.mxu1 %v4260_v50  ;;  %v6841_v50 = vld [vmem:[#allocation41_spill] sm:$0xff] }
 0x368   : > { %v5134_v4 = vpop.eup %5133  ;;  %4263 = vmatpush3.bf16.xpose.msra.mxu1 %v6824_v43  ;;  %v6843_v43 = vld [vmem:[#allocation43_spill] sm:$0xff] }
 0x369   : > { %v5136_v47 = vpop.eup %5135  ;;  %v3052_v3 = vmul.f32 %v5134_v4, %v5132_v40  ;;  %v6842_v4 = vld [vmem:[#allocation40_spill] sm:$0xff] }
 0x36a   : > { %v5138_v56 = vpop.eup %5137 }
 0x36b   : > { %v3053_v46 = vmul.f32 %v5138_v56, %v5136_v47  ;;  %v6844_v47 = vld [vmem:[#allocation42_spill] sm:$0xff]  ;;  %v6846_v56 = vld [vmem:[#allocation44_spill] sm:$0xff] }
 0x36d   : > { %v4264_v33 = vpack.c.bf16 %v3053_v46, %v3052_v3  ;;  %v6845_v3 = vld [vmem:[#allocation45_spill] sm:$0xff]  ;;  %v6847_v46 = vld [vmem:[#allocation47_spill] sm:$0xff] }
 0x36f   : > { %4265 = vmatprep.subr.bf16.mxu1 %v4264_v33  ;;  %v6848_v33 = vld [vmem:[#allocation46_spill] sm:$0xff] }
 0x370   : > { %4267 = vmatpush3.bf16.xpose.msra.mxu1 %v6825_v41 }
 0x371   : > { %4269 = vmatprep.subr.bf16.mxu1 %v5749_v45  ;;  %v6827_v45 = vld [vmem:[#allocation28_spill] sm:$0xff] }
 0x377   : > { %4165 = vmatmul.mubr.f32.vlgmr.msra.gmra.mrb[96].mxu1 %v6159_v38 }
 0x378   : > { %4271 = vmatpush1.bf16.msra.mxu1 %v5744_v42  ;;  %v6826_v42 = vld [vmem:[#allocation29_spill] sm:$0xff] }
 0x379   : > { %4273 = vmatprep.subr.bf16.mxu1 %v5771_v19  ;;  %v6829_v19 = vld [vmem:[#allocation30_spill] sm:$0xff] }
 0x37c   : > { %4275 = vmatpush1.bf16.msra.mxu1 %v5766_v9  ;;  %v6828_v9 = vld [vmem:[#allocation31_spill] sm:$0xff] }
 0x37d   : > { %4277 = vmatprep.subr.bf16.mxu1 %v5793_v11  ;;  %v6835_v11 = vld [vmem:[#allocation36_spill] sm:$0xff] }
 0x380   : > { %4279 = vmatpush1.bf16.msra.mxu1 %v5788_v6  ;;  %v6834_v6 = vld [vmem:[#allocation37_spill] sm:$0xff] }
 0x381   : > { %4281 = vmatprep.subr.bf16.mxu1 %v5815_v55  ;;  %v3132_v55 = vstv %s4053_s24 }
 0x384   : > { %4283 = vmatpush1.bf16.msra.mxu1 %v5810_v52 }
 0x385   : > { %4285 = vmatprep.subr.bf16.mxu1 %v5837_v34  ;;  %v5346_v34 = vmov 1966171168  }
 0x388   : > { %4287 = vmatpush1.bf16.msra.mxu1 %v5832_v32 }
 0x389   : > { %4289 = vmatprep.subr.bf16.mxu1 %v5859_v29 }
 0x38c   : > { %4291 = vmatpush1.bf16.msra.mxu1 %v5854_v27  ;;  %v3335_v27 = vunpack.c.l.s4 %v5346_v34  ;;  %v6863_v34 = vld [vmem:[#allocation63_spill] sm:$0xff] }
 0x38d   : > { %4293 = vmatprep.subr.bf16.mxu1 %v5881_v31 }
 0x390   : > { %4295 = vmatpush1.bf16.msra.mxu1 %v5876_v26  ;;  %v3136_v26 = vstv %s3135_s23 }
 0x391   : > { %4297 = vmatprep.subr.bf16.mxu1 %v5915_v0  ;;  %v3336_v0 = vunpack.c.0.s8 %v3335_v27  ;;  %v6864_v27 = vld [vmem:[#allocation62_spill] sm:$0xff] }
 0x393   : > { %v6320_v28 = vsub.s32 %v3336_v0, %v6838_v51  ;;  %v6869_v0 = vld [vmem:[#allocation69_spill] sm:$0xff] }
 0x394   : > { %4299 = vmatpush1.bf16.msra.mxu1 %v5910_v60  ;;  %v3056_v60 = vstv %s3055_s20 }
 0x395   : > { %4301 = vmatprep.subr.bf16.mxu1 %v5752_v48  ;;  %v6830_v48 = vld [vmem:[#allocation33_spill] sm:$0xff] }
 0x398   : > { %4303 = vmatpush1.bf16.msra.mxu1 %v5746_v44  ;;  %v6831_v44 = vld [vmem:[#allocation32_spill] sm:$0xff] }
 0x399   : > { %4305 = vmatprep.subr.bf16.mxu1 %v5774_v22  ;;  %v6832_v22 = vld [vmem:[#allocation35_spill] sm:$0xff] }
 0x39c   : > { %4307 = vmatpush1.bf16.msra.mxu1 %v5768_v12  ;;  %v6833_v12 = vld [vmem:[#allocation34_spill] sm:$0xff] }
 0x39d   : > { %4309 = vmatprep.subr.bf16.mxu1 %v5796_v15  ;;  %v6837_v15 = vlaneseq }
 0x39f   : > { %v3129_v52 = vand.u32 127, %v6837_v15  ;;  %vm3387_vm5 = vcmp.lt.s32.totalorder %v6837_v15, 256  ;;  %vm6372_vm7 = vcmp.lt.s32.totalorder %v6837_v15, 512  ;;  %v3461_v15 = vld [vmem:[%s6695_s8 + $0x180] sm:$0xff] (!%p4054_p11) }
 0x3a0   : > { %4311 = vmatpush1.bf16.msra.mxu1 %v5790_v10  ;;  %v6836_v10 = vld [vmem:[#allocation39_spill] sm:$0xff] }
 0x3a1   : > { %4313 = vmatprep.subr.bf16.mxu1 %v6826_v42  ;;  %v3130_v32 = vadd.s32 128, %v3129_v52  ;;  %v3133_v29 = vadd.s32 %v3132_v55, %v3129_v52  ;;  %v6849_v42 = vld [vmem:[#allocation49_spill] sm:$0xff]  ;;  %v6860_v52 = vld [vmem:[#allocation58_spill] sm:$0xff] }
 0x3a3   : > { %v3134_v31 = vadd.s32 %v3132_v55, %v3130_v32  ;;  %vm3137_vm2 = vcmp.lt.s32.totalorder %v3133_v29, %v3136_v26  ;;  %v6861_v55 = vld [vmem:[#allocation61_spill] sm:$0xff]  ;;  %v6862_v32 = vld [vmem:[#allocation60_spill] sm:$0xff] }
 0x3a4   : > { %4315 = vmatpush1.bf16.msra.mxu1 %v6827_v45  ;;  %v6850_v45 = vld [vmem:[#allocation48_spill] sm:$0xff]  ;;  %v6865_v29 = vld [vmem:[#allocation65_spill] sm:$0xff] }
 0x3a5   : > { %4317 = vmatprep.subr.bf16.mxu1 %v6828_v9  ;;  %vm3138_vm3 = vcmp.lt.s32.totalorder %v3134_v31, %v3136_v26  ;;  %v6851_v9 = vld [vmem:[#allocation51_spill] sm:$0xff]  ;;  %v6866_v26 = vld [vmem:[#allocation64_spill] sm:$0xff] }
 0x3a6   : > { %v6867_v31 = vld [vmem:[#allocation67_spill] sm:$0xff] }
 0x3a8   : > { %4319 = vmatpush1.bf16.msra.mxu1 %v6829_v19  ;;  %v6852_v19 = vld [vmem:[#allocation50_spill] sm:$0xff] }
 0x3a9   : > { %4321 = vmatprep.subr.bf16.mxu1 %v6830_v48  ;;  %v6853_v48 = vld [vmem:[#allocation53_spill] sm:$0xff] }
 0x3ac   : > { %4323 = vmatpush1.bf16.msra.mxu1 %v6831_v44  ;;  %v6854_v44 = vld [vmem:[#allocation52_spill] sm:$0xff] }
 0x3ad   : > { %4325 = vmatprep.subr.bf16.mxu1 %v6832_v22  ;;  %v6855_v22 = vld [vmem:[#allocation55_spill] sm:$0xff] }
 0x3b0   : > { %4327 = vmatpush1.bf16.msra.mxu1 %v6833_v12  ;;  %v6856_v12 = vld [vmem:[#allocation54_spill] sm:$0xff] }
 0x3b1   : > { %4329 = vmatprep.subr.bf16.mxu1 %v6834_v6  ;;  %v6857_v6 = vld [vmem:[#allocation57_spill] sm:$0xff] }
 0x3b4   : > { %4331 = vmatpush1.bf16.msra.mxu1 %v6835_v11  ;;  %v6858_v11 = vld [vmem:[#allocation56_spill] sm:$0xff] }
 0x3b5   : > { %4333 = vmatprep.subr.bf16.mxu1 %v6836_v10  ;;  %v6859_v10 = vld [vmem:[#allocation59_spill] sm:$0xff] }
 0x44a   : > { %v3123_v38 = vpop.f32.mrb[96].mxu1 }
 0x44b   : > { %v3124_v63 = vadd.f32 %v3123_v38, %v3056_v60  ;;  %v3125_v61 = vpop.f32.mrb[97].mxu1  ;;  %v6870_v38 = vld [vmem:[#allocation68_spill] sm:$0xff] }
 0x44c   : > { %v3126_v7 = vadd.f32 %v3125_v61, %v3056_v60  ;;  %v6868_v60 = vld [vmem:[#allocation66_spill] sm:$0xff] }
 0x44d   : > { %v3139_v8 = vsel %vm3137_vm2, %v3124_v63, -inf  ;;  %v3167_v63 = vld [vmem:[#allocation3] sm:$0x1] }
 0x44e   : > { %v3140_v54 = vsel %vm3138_vm3, %v3126_v7, -inf  ;;  %v3143_v37 = vsel %vm3142_vm4, %v3139_v8, -inf }
 0x44f   : > { %v3368_v35 = vcombine.low %v3139_v8, %v3140_v54  ;;  %v3144_v25 = vsel %vm3142_vm4, %v3140_v54, -inf }
 0x450   : > { %v3145_v16 = vmax.f32 %v3143_v37, %v3144_v25 }
 0x451   : > { %v3375_v14 = vrot.slane %v3368_v35, %v6320_v28 }
 0x452   : > { %3146 = vmax.xlane.f32.xlu0 %v3145_v16 }
 0x453   : > { %v3382_v24 = vrot.slane %v3375_v14, %v6320_v28 }
 0x455   : > { %3389 = vst.msk [vmem:[%s3386_s17] sm:$0x3] %vm3387_vm5, %v3382_v24 }
 0x4df   : > { %v3147_v13 = vpop.xlane.xlu0 %3146 }
 0x4e0   : > { %v3148_v30 = vmax.f32 %v3141_v36, %v3147_v13  ;;  %v3175_v13 = vld [vmem:[#allocation4] sm:$0xf] }
 0x4e2   : > { %v3149_v20 = vsub.f32 %v3141_v36, %v3148_v30  ;;  %3364 = vst.msk [vmem:[#allocation2] sm:$0x1] %vm3363_vm6, %v3148_v30  ;;  %3154 = vperm.xlu0 %4705, %v3148_v30  }
 0x4e4   : > { %v3150_v40 = vmul.f32 1.442695, %v3149_v20 }
 0x561   : > { %v3155_v59 = vpop.permute.xlu0 %3154 }
 0x562   : > { %v6329_v23 = vrot.slane %v3155_v59, %v6839_v17 }
 0x564   : > { %v3161_v49 = vsub.f32 %v3139_v8, %v6329_v23  ;;  %v3162_v39 = vsub.f32 %v3140_v54, %v6329_v23 }
 0x566   : > { %v3163_v57 = vmul.f32 1.442695, %v3161_v49  ;;  %v3165_v18 = vmul.f32 1.442695, %v3162_v39  ;;  %v3477_v49 = vld [vmem:[%s6696_s9] sm:$0x1] (!%p4054_p11) }
 0x568   : > { %5139 = vpow2.f32 %v3163_v57  ;;  %v5348_v57 = vmov (!%p4054_p11), 0  }
 0x569   : > { %5141 = vpow2.f32 %v3165_v18  ;;  %5145 = vset.pattern.permute.xlu0 (!%p4054_p11), %v5348_v57 }
 0x56a   : > { %5143 = vpow2.f32 %v3150_v40  ;;  %v3431_v40 = vld [vmem:[%s6695_s8 + $0x90] sm:$0xff] (!%p4054_p11) }
 0x572   : > { %v5140_v62 = vpop.eup %5139 }
 0x573   : > { %v5142_v2 = vpop.eup %5141  ;;  %v3169_v53 = vsel %vm3142_vm4, %v5140_v62, 0.0 }
 0x574   : > { %3250 = vmatprep.mubr.f32.mxu1 %v5142_v2  ;;  %v3170_v1 = vsel %vm3142_vm4, %v5142_v2, 0.0  ;;  %v5144_v41 = vpop.eup %5143 }
 0x575   : > { %3251 = vmatmul.mubr.f32.vlgmr.msra.gmra.mrb[98].mxu1 %v5140_v62  ;;  %v3171_v21 = vadd.f32 %v3170_v1, %v3169_v53  ;;  %v3168_v61 = vmul.f32 %v5144_v41, %v3167_v63  ;;  %v3414_v53 = vld [vmem:[%s6695_s8 + $0x8] sm:$0xff] (!%p4054_p11)  ;;  %v3420_v63 = vld [vmem:[%s6695_s8 + $0x38] sm:$0xff] (!%p4054_p11) }
 0x576   : > { %4335 = vmatpush1.bf16.msra.mxu1 %v6840_v58  ;;  %3321 = vmatprep.mubr.f32.mxu1 %v5142_v2  ;;  %v3413_v2 = vld [vmem:[%s6695_s8] sm:$0xff] (!%p4054_p11) }
 0x577   : > { %4337 = vmatprep.subr.bf16.mxu1 %v6841_v50  ;;  %3172 = vadd.xlane.f32.xlu1 %v3171_v21  ;;  %v4398_v21 = vpack.c.bf16 (!%p4054_p11), %v3414_v53, %v3413_v2  ;;  %v3445_v58 = vld [vmem:[%s6695_s8 + $0x100] sm:$0xff] (!%p4054_p11)  ;;  %v3446_v50 = vld [vmem:[%s6695_s8 + $0x108] sm:$0xff] (!%p4054_p11)  ;;  %v3424_v2 = vld [vmem:[%s6695_s8 + $0x58] sm:$0xff] (!%p4054_p11) }
 0x578   : > { %v3455_v53 = vld [vmem:[%s6695_s8 + $0x150] sm:$0xff] (!%p4054_p11) }
 0x57a   : > { %4339 = vmatpush1.bf16.msra.mxu1 %v6842_v4  ;;  %v4430_v4 = vpack.c.bf16 (!%p4054_p11), %v3446_v50, %v3445_v58  ;;  %v3441_v58 = vld [vmem:[%s6695_s8 + $0xe0] sm:$0xff] (!%p4054_p11)  ;;  %v3442_v50 = vld [vmem:[%s6695_s8 + $0xe8] sm:$0xff] (!%p4054_p11) }
 0x57b   : > { %4341 = vmatprep.subr.bf16.mxu1 %v6843_v43  ;;  %v3432_v43 = vld [vmem:[%s6695_s8 + $0x98] sm:$0xff] (!%p4054_p11) }
 0x57e   : > { %4343 = vmatpush1.bf16.msra.mxu1 %v6844_v47  ;;  %v3463_v47 = vld [vmem:[%s6695_s8 + $0x190] sm:$0xff] (!%p4054_p11) }
 0x57f   : > { %4345 = vmatprep.subr.bf16.mxu1 %v6845_v3  ;;  %v3464_v3 = vld [vmem:[%s6695_s8 + $0x198] sm:$0xff] (!%p4054_p11) }
 0x582   : > { %4347 = vmatpush1.bf16.msra.mxu1 %v6846_v56  ;;  %v4400_v56 = vpack.c.bf16 (!%p4054_p11), %v3432_v43, %v3431_v40  ;;  %v3473_v40 = vld [vmem:[%s6695_s8 + $0x1e0] sm:$0xff] (!%p4054_p11) }
 0x583   : > { %4349 = vmatprep.subr.bf16.mxu1 %v6847_v46  ;;  %v4432_v46 = vpack.c.bf16 (!%p4054_p11), %v3464_v3, %v3463_v47  ;;  %v4420_v3 = vpack.c.bf16 (!%p4054_p11), %v3442_v50, %v3441_v58 }
 0x586   : > { %4351 = vmatpush1.bf16.msra.mxu1 %v6848_v33  ;;  %v3415_v33 = vld [vmem:[%s6695_s8 + $0x10] sm:$0xff] (!%p4054_p11) }
 0x587   : > { %4353 = vmatprep.subr.bf16.mxu1 %v6849_v42  ;;  %v3447_v42 = vld [vmem:[%s6695_s8 + $0x110] sm:$0xff] (!%p4054_p11) }
 0x588   : > { %3178 = vperm.xlu1 %4706, %v5144_v41   ;;  %v3416_v41 = vld [vmem:[%s6695_s8 + $0x18] sm:$0xff] (!%p4054_p11) }
 0x58a   : > { %4355 = vmatpush1.bf16.msra.mxu1 %v6850_v45  ;;  %v4402_v45 = vpack.c.bf16 (!%p4054_p11), %v3416_v41, %v3415_v33  ;;  %v3457_v33 = vld [vmem:[%s6695_s8 + $0x160] sm:$0xff] (!%p4054_p11) }
 0x58b   : > { %4357 = vmatprep.subr.bf16.mxu1 %v6851_v9  ;;  %v3448_v9 = vld [vmem:[%s6695_s8 + $0x118] sm:$0xff] (!%p4054_p11) }
 0x58e   : > { %4359 = vmatpush1.bf16.msra.mxu1 %v6852_v19  ;;  %v3433_v19 = vld [vmem:[%s6695_s8 + $0xa0] sm:$0xff] (!%p4054_p11) }
 0x58f   : > { %4361 = vmatprep.subr.bf16.mxu1 %v6853_v48  ;;  %v3434_v48 = vld [vmem:[%s6695_s8 + $0xa8] sm:$0xff] (!%p4054_p11) }
 0x592   : > { %4363 = vmatpush1.bf16.msra.mxu1 %v6854_v44  ;;  %v4434_v44 = vpack.c.bf16 (!%p4054_p11), %v3448_v9, %v3447_v42  ;;  %v3458_v42 = vld [vmem:[%s6695_s8 + $0x168] sm:$0xff] (!%p4054_p11)  ;;  %v3444_v9 = vld [vmem:[%s6695_s8 + $0xf8] sm:$0xff] (!%p4054_p11) }
 0x593   : > { %4365 = vmatprep.subr.bf16.mxu1 %v6855_v22  ;;  %v4404_v22 = vpack.c.bf16 (!%p4054_p11), %v3434_v48, %v3433_v19  ;;  %v3475_v19 = vld [vmem:[%s6695_s8 + $0x1f0] sm:$0xff] (!%p4054_p11)  ;;  %v3476_v48 = vld [vmem:[%s6695_s8 + $0x1f8] sm:$0xff] (!%p4054_p11) }
 0x596   : > { %4367 = vmatpush1.bf16.msra.mxu1 %v6856_v12  ;;  %v3465_v12 = vld [vmem:[%s6695_s8 + $0x1a0] sm:$0xff] (!%p4054_p11) }
 0x597   : > { %4369 = vmatprep.subr.bf16.mxu1 %v6857_v6  ;;  %v3466_v6 = vld [vmem:[%s6695_s8 + $0x1a8] sm:$0xff] (!%p4054_p11) }
 0x59a   : > { %4371 = vmatpush1.bf16.msra.mxu1 %v6858_v11  ;;  %v3417_v11 = vld [vmem:[%s6695_s8 + $0x20] sm:$0xff] (!%p4054_p11) }
 0x59b   : > { %4373 = vmatprep.subr.bf16.mxu1 %v6859_v10  ;;  %v4436_v10 = vpack.c.bf16 (!%p4054_p11), %v3466_v6, %v3465_v12  ;;  %v3427_v6 = vld [vmem:[%s6695_s8 + $0x70] sm:$0xff] (!%p4054_p11) }
 0x59e   : > { %4375 = vmatpush1.bf16.msra.mxu1 %v6860_v52  ;;  %v3418_v52 = vld [vmem:[%s6695_s8 + $0x28] sm:$0xff] (!%p4054_p11) }
 0x59f   : > { %4377 = vmatprep.subr.bf16.mxu1 %v6861_v55  ;;  %v3449_v55 = vld [vmem:[%s6695_s8 + $0x120] sm:$0xff] (!%p4054_p11) }
 0x5a2   : > { %4379 = vmatpush1.bf16.msra.mxu1 %v6862_v32  ;;  %v3450_v32 = vld [vmem:[%s6695_s8 + $0x128] sm:$0xff] (!%p4054_p11) }
 0x5a3   : > { %4381 = vmatprep.subr.bf16.mxu1 %v6863_v34  ;;  %v4406_v34 = vpack.c.bf16 (!%p4054_p11), %v3418_v52, %v3417_v11  ;;  %v3428_v11 = vld [vmem:[%s6695_s8 + $0x78] sm:$0xff] (!%p4054_p11)  ;;  %v3459_v52 = vld [vmem:[%s6695_s8 + $0x170] sm:$0xff] (!%p4054_p11) }
 0x5a6   : > { %4383 = vmatpush1.bf16.msra.mxu1 %v6864_v27  ;;  %v3435_v27 = vld [vmem:[%s6695_s8 + $0xb0] sm:$0xff] (!%p4054_p11) }
 0x5a7   : > { %4385 = vmatprep.subr.bf16.mxu1 %v6865_v29  ;;  %v3436_v29 = vld [vmem:[%s6695_s8 + $0xb8] sm:$0xff] (!%p4054_p11) }
 0x5aa   : > { %4387 = vmatpush1.bf16.msra.mxu1 %v6866_v26  ;;  %v3467_v26 = vld [vmem:[%s6695_s8 + $0x1b0] sm:$0xff] (!%p4054_p11) }
 0x5ab   : > { %4389 = vmatprep.subr.bf16.mxu1 %v6867_v31  ;;  %v4438_v31 = vpack.c.bf16 (!%p4054_p11), %v3450_v32, %v3449_v55  ;;  %v3460_v55 = vld [vmem:[%s6695_s8 + $0x178] sm:$0xff] (!%p4054_p11)  ;;  %v4426_v32 = vpack.c.bf16 (!%p4054_p11), %v3428_v11, %v3427_v6 }
 0x5ae   : > { %4391 = vmatpush1.bf16.msra.mxu1 %v6868_v60  ;;  %v4408_v60 = vpack.c.bf16 (!%p4054_p11), %v3436_v29, %v3435_v27  ;;  %v3396_v27 = vld [vmem:[#allocation5] sm:$0xf] (!%p4054_p11) }
 0x5af   : > { %4393 = vmatprep.subr.bf16.mxu1 %v6869_v0  ;;  %v3468_v0 = vld [vmem:[%s6695_s8 + $0x1b8] sm:$0xff] (!%p4054_p11)  ;;  %v3397_v29 = vsub.f32 (!%p4054_p11), %v3396_v27, %v6329_v23 }
 0x5b2   : > { %4395 = vmatpush1.bf16.msra.mxu1 %v6870_v38  ;;  %v3419_v38 = vld [vmem:[%s6695_s8 + $0x30] sm:$0xff] (!%p4054_p11) }
 0x5b5   : > { %3322 = vmatmul.mubr.f32.vlgmr.msra.gmra.mrb[100].mxu1 %v5140_v62  ;;  %v3462_v62 = vld [vmem:[%s6695_s8 + $0x188] sm:$0xff] (!%p4054_p11) }
 0x5b6   : > { %v4428_v1 = vpack.c.bf16 (!%p4054_p11), %v3462_v62, %v3461_v15  ;;  %v3423_v62 = vld [vmem:[%s6695_s8 + $0x50] sm:$0xff] (!%p4054_p11) }
 0x5b7   : > { %v4418_v43 = vpack.c.bf16 (!%p4054_p11), %v3424_v2, %v3423_v62 }
 0x5b8   : > { %4429 = vmatprep.subr.bf16.mxu1 (!%p4054_p11), %v4428_v1 }
 0x5b9   : > { %4431 = vmatpush3.bf16.msra.mxu1 (!%p4054_p11), %v4430_v4  ;;  %v3474_v4 = vld [vmem:[%s6695_s8 + $0x1e8] sm:$0xff] (!%p4054_p11) }
 0x5ba   : > { %4433 = vmatprep.subr.bf16.mxu1 (!%p4054_p11), %v4432_v46  ;;  %v3426_v46 = vld [vmem:[%s6695_s8 + $0x68] sm:$0xff] (!%p4054_p11)  ;;  %v4452_v41 = vpack.c.bf16 (!%p4054_p11), %v3474_v4, %v3473_v40 }
 0x5bd   : > { %4435 = vmatpush3.bf16.msra.mxu1 (!%p4054_p11), %v4434_v44 }
 0x5be   : > { %4437 = vmatprep.subr.bf16.mxu1 (!%p4054_p11), %v4436_v10  ;;  %v4456_v10 = vpack.c.bf16 (!%p4054_p11), %v3476_v48, %v3475_v19 }
 0x5c1   : > { %4439 = vmatpush3.bf16.msra.mxu1 (!%p4054_p11), %v4438_v31 }
 0x604   : > { %v3173_v7 = vpop.xlane.xlu1 %3172 }
 0x605   : > { %v3174_v8 = vadd.f32 %v3173_v7, %v3168_v61  ;;  %v4440_v7 = vpack.c.bf16 (!%p4054_p11), %v3468_v0, %v3467_v26  ;;  %v3398_v26 = vmul.f32 (!%p4054_p11), 1.442695, %v3397_v29 }
 0x607   : > { %3365 = vst.msk [vmem:[#allocation3] sm:$0x1] %vm3363_vm6, %v3174_v8  ;;  %5146 = vrcp.f32 (!%p4054_p11), %v3174_v8  ;;  %v3451_v8 = vld [vmem:[%s6695_s8 + $0x130] sm:$0xff] (!%p4054_p11)  ;;  %4441 = vmatprep.subr.bf16.mxu1 (!%p4054_p11), %v4440_v7 }
 0x608   : > { %v3179_v25 = vpop.permute.xlu1 %3178  ;;  %5148 = vpow2.f32 (!%p4054_p11), %v3398_v26 }
 0x609   : > { %v3184_v24 = vrot.slane %v3179_v25, %v6839_v17  ;;  %v3429_v17 = vld [vmem:[%s6695_s8 + $0x80] sm:$0xff] (!%p4054_p11)  ;;  %v3470_v25 = vld [vmem:[%s6695_s8 + $0x1c8] sm:$0xff] (!%p4054_p11) }
 0x60b   : > { %v3185_v20 = vmul.f32 %v3184_v24, %v3175_v13  ;;  %v3453_v13 = vld [vmem:[%s6695_s8 + $0x140] sm:$0xff] (!%p4054_p11) }
 0x611   : > { %v5147_v61 = vpop.eup (!%p4054_p11), %5146 }
 0x612   : > { %3402 = vperm.xlu0 (!%p4054_p11), %5145, %v5147_v61   ;;  %v5149_v31 = vpop.eup (!%p4054_p11), %5148 }
 0x648   : > { %v3252_v51 = vpop.f32.mrb[98].mxu1 }
 0x649   : > { %v3254_v54 = vpop.f32.mrb[99].mxu1 }
 0x64a   : > { %v3332_v37 = vcombine.low %v3252_v51, %v3254_v54  ;;  %v3452_v51 = vld [vmem:[%s6695_s8 + $0x138] sm:$0xff] (!%p4054_p11)  ;;  %v3437_v54 = vld [vmem:[%s6695_s8 + $0xc0] sm:$0xff] (!%p4054_p11) }
 0x64c   : > { %v3340_v5 = vrot.slane %v3332_v37, %v6320_v28  ;;  %v3438_v37 = vld [vmem:[%s6695_s8 + $0xc8] sm:$0xff] (!%p4054_p11) }
 0x64d   : > { %v4412_v24 = vpack.c.bf16 (!%p4054_p11), %v3438_v37, %v3437_v54  ;;  %v6875_v54 = vld [vmem:[#allocation25_spill] sm:$0xff] (!%p4054_p11) }
 0x64e   : > { %v6876_v37 = vsub.s32 (!%p4054_p11), 3, %v6875_v54  ;;  %v6877_v23 = vsub.s32 (!%p4054_p11), 2, %v6875_v54 }
 0x688   : > { %v3323_v35 = vpop.f32.mrb[100].mxu1 }
 0x689   : > { %v3325_v16 = vpop.f32.mrb[101].mxu1 }
 0x68a   : > { %v3333_v14 = vcombine.low %v3323_v35, %v3325_v16  ;;  %v3469_v35 = vld [vmem:[%s6695_s8 + $0x1c0] sm:$0xff] (!%p4054_p11)  ;;  %v4410_v16 = vpack.c.bf16 (!%p4054_p11), %v3420_v63, %v3419_v38  ;;  %v6873_v38 = vld [vmem:[#allocation26_spill] sm:$0xff] (!%p4054_p11) }
 0x68c   : > { %v3347_v36 = vrot.slane %v3333_v14, %v6320_v28  ;;  %v4442_v14 = vpack.c.bf16 (!%p4054_p11), %v3452_v51, %v3451_v8  ;;  %v6874_v8 = vld [vmem:[#allocation27_spill] sm:$0xff] (!%p4054_p11) }
 0x68e   : > { %v3348_v30 = vcombine.low %v3340_v5, %v3347_v36  ;;  %3393 = sbr.rel (%p4054_p11) target bundleno = 1935 (0x78f), region = 76  ;;  %v3421_v5 = vld [vmem:[%s6695_s8 + $0x40] sm:$0xff] (!%p4054_p11)  ;;  %v3422_v36 = vld [vmem:[%s6695_s8 + $0x48] sm:$0xff] (!%p4054_p11)  ;;  %4443 = vmatpush3.bf16.msra.mxu1 (!%p4054_p11), %v4442_v14 }
 0x68f   : > { %v4414_v15 = vpack.c.bf16 (!%p4054_p11), %v3422_v36, %v3421_v5 }
 0x690   : > { %v3355_v59 = vrot.slane %v3348_v30, %v6320_v28  ;;  %v3430_v28 = vld [vmem:[%s6695_s8 + $0x88] sm:$0xff] (!%p4054_p11)  ;;  %v4444_v30 = vpack.c.bf16 (!%p4054_p11), %v3470_v25, %v3469_v35 }
 0x691   : > { %v4396_v18 = vpack.c.bf16 (!%p4054_p11), %v3430_v28, %v3429_v17  ;;  %v3471_v17 = vld [vmem:[%s6695_s8 + $0x1d0] sm:$0xff] (!%p4054_p11)  ;;  %v3472_v28 = vld [vmem:[%s6695_s8 + $0x1d8] sm:$0xff] (!%p4054_p11)  ;;  %v3403_v0 = vpop.permute.xlu0 (!%p4054_p11), %3402 }
 0x692   : > { %v3357_v39 = vadd.f32 %v3355_v59, %v3185_v20  ;;  %v3454_v20 = vld [vmem:[%s6695_s8 + $0x148] sm:$0xff] (!%p4054_p11)  ;;  %v3439_v59 = vld [vmem:[%s6695_s8 + $0xd0] sm:$0xff] (!%p4054_p11)  ;;  %4445 = vmatprep.subr.bf16.mxu1 (!%p4054_p11), %v4444_v30  ;;  %v4448_v1 = vpack.c.bf16 (!%p4054_p11), %v3472_v28, %v3471_v17  ;;  %v3408_v63 = vrot.slane (!%p4054_p11), %v3403_v0, %v6873_v38 }
 0x693   : > { %4397 = vmatprep.subr.bf16.mxu0 (!%p4054_p11), %v4396_v18  ;;  %v4446_v57 = vpack.c.bf16 (!%p4054_p11), %v3454_v20, %v3453_v13 }
 0x694   : > { %3362 = vst.msk [vmem:[#allocation4] sm:$0xf] %vm6372_vm7, %v3357_v39  ;;  %4399 = vmatpush3.bf16.msra.mxu0 (!%p4054_p11), %v4398_v21  ;;  %v3440_v39 = vld [vmem:[%s6695_s8 + $0xd8] sm:$0xff] (!%p4054_p11)  ;;  %v3409_v61 = vmul.f32 (!%p4054_p11), %v5149_v31, %v3408_v63 }
 0x695   : > { %4401 = vmatprep.subr.bf16.mxu0 %v4400_v56  ;;  %v4416_v18 = vpack.c.bf16 %v3440_v39, %v3439_v59  ;;  %v3456_v21 = vld [vmem:[%s6695_s8 + $0x158] sm:$0xff]  ;;  %4447 = vmatpush3.bf16.msra.mxu1 %v4446_v57  ;;  %v3425_v56 = vld [vmem:[%s6695_s8 + $0x60] sm:$0xff] }
 0x696   : > { %v4450_v47 = vpack.c.bf16 %v3456_v21, %v3455_v53  ;;  %4449 = vmatprep.subr.bf16.mxu1 %v4448_v1  ;;  %v4422_v44 = vpack.c.bf16 %v3426_v46, %v3425_v56  ;;  %3410 = vst.msk [vmem:[#allocation14] sm:$0xf] %vm6372_vm7, %v3409_v61 }
 0x698   : > { %4403 = vmatpush3.bf16.msra.mxu0 %v4402_v45  ;;  %v3443_v45 = vld [vmem:[%s6695_s8 + $0xf0] sm:$0xff] }
 0x699   : > { %4405 = vmatprep.subr.bf16.mxu0 %v4404_v22  ;;  %4451 = vmatpush3.bf16.msra.mxu1 %v4450_v47  ;;  %v4454_v22 = vpack.c.bf16 %v3458_v42, %v3457_v33  ;;  %v4424_v12 = vpack.c.bf16 %v3444_v9, %v3443_v45 }
 0x69a   : > { %4453 = vmatprep.subr.bf16.mxu1 %v4452_v41 }
 0x69c   : > { %4407 = vmatpush3.bf16.msra.mxu0 %v4406_v34  ;;  %v4458_v34 = vpack.c.bf16 %v3460_v55, %v3459_v52 }
 0x69d   : > { %4409 = vmatprep.subr.bf16.mxu0 %v4408_v60  ;;  %4455 = vmatpush3.bf16.msra.mxu1 %v4454_v22  ;;  %v3411_v60 = vld [vmem:[#allocation4] sm:$0xf] }
 0x69e   : > { %4457 = vmatprep.subr.bf16.mxu1 %v4456_v10  ;;  %v3412_v7 = vmul.f32 %v3411_v60, %v3408_v63 }
 0x6a0   : > { %4411 = vmatpush3.bf16.msra.mxu0 %v4410_v16  ;;  %v3486_v51 = vrot.slane %v3412_v7, %v6874_v8  ;;  %v3494_v35 = vrot.slane %v3412_v7, %v6876_v37  ;;  %v3482_v25 = vrot.slane %v3412_v7, %v6873_v38  ;;  %v3490_v16 = vrot.slane %v3412_v7, %v6877_v23 }
 0x6a1   : > { %4413 = vmatprep.subr.bf16.mxu0 %v4412_v24  ;;  %4459 = vmatpush3.bf16.msra.mxu1 %v4458_v34 }
 0x6a2   : > { %3563 = vmatprep.mubr.f32.mxu0 %v3486_v51  ;;  %3633 = vmatprep.mubr.f32.mxu1 %v3494_v35 }
 0x6a4   : > { %4415 = vmatpush3.bf16.msra.mxu0 %v4414_v15  ;;  %3634 = vmatmul.mubr.f32.vlgmr.msra.gmra.mrb[0].mxu1 %v3490_v16 }
 0x6a5   : > { %4417 = vmatprep.subr.bf16.mxu0 %v4416_v18 }
 0x6a8   : > { %4419 = vmatpush3.bf16.msra.mxu0 %v4418_v43 }
 0x6a9   : > { %4421 = vmatprep.subr.bf16.mxu0 %v4420_v3 }
 0x6ac   : > { %4423 = vmatpush3.bf16.msra.mxu0 %v4422_v44 }
 0x6ad   : > { %4425 = vmatprep.subr.bf16.mxu0 %v4424_v12 }
 0x6b0   : > { %4427 = vmatpush3.bf16.msra.mxu0 %v4426_v32 }
 0x6b3   : > { %3564 = vmatmul.mubr.f32.vlgmr.msra.gmra.mrb[0].mxu0 %v3482_v25 }
 0x777   : > { %v4233_v24 = vpop.f32.mrb[0].mxu1 }
 0x778   : > { %v4234_v36 = vpop.f32.mrb[1].mxu1 }
 0x779   : > { %v4235_v30 = vadd.f32 %v4234_v36, %v4233_v24 }
 0x786   : > { %v4198_v14 = vpop.f32.mrb[0].mxu0 }
 0x787   : > { %v4199_v5 = vpop.f32.mrb[1].mxu0 }
 0x788   : > { %v4200_v13 = vadd.f32 %v4199_v5, %v4198_v14 }
 0x78a   : > { %v3566_v20 = vadd.f32 %v4200_v13, %v3477_v49 }
 0x78c   : > { %v3636_v59 = vadd.f32 %v4235_v30, %v3566_v20 }
 0x78e   : > { %3640 = vst.msk [vmem:[#allocation13] sm:$0x1] %vm3639_vm8, %v3636_v59 }
 0x78f PF: > { %s5349_s21 = smov [#allocation13]   ;;  %s5350_s27 = smov [#allocation14]  }
 0x790   : > { %s3653_s19 = sshll.u32 %s5349_s21, 4  ;;  %s3664_s29 = sshll.u32 %s5350_s27, 4  ;;  %s3654_s19 = int_to_ptr.vmem [resolvable:$true] %s3653_s19  ;;  %s6584_s29 = int_to_ptr.vmem [resolvable:$true] %s3664_s29 }
 0x791   : > { %s5206_s14 = scalar_lea.vmem %s3654_s19, 16  ;;  %p6878_p3 = scmp.eq.s32.totalorder %s5444_s0, 1 }
 0x792   : > { %p5207_p0 = scmp.ne.s32.totalorder %s3654_s19, %s5206_s14  ;;  %s5212_s23 = scalar_lea.vmem %s3654_s19, 32 }
 0x793   : > { %p5213_p8 = scmp.lt.s32.totalorder %s3654_s19, %s3654_s19  ;;  %p5214_p12 = scmp.lt.s32.totalorder %s5212_s23, %s5206_s14 }
 0x794   : > { %p5208_p4 = pnand %p5207_p0, %p6878_p3 }
 0x795   : > { %p5215_p2 = por %p5214_p12, %p5213_p8 }
 0x796   : > { %p5209_p7 = pneg %p5208_p4 }
 0x798   : > { %p5216_p1 = pnand %p5215_p2, %p5209_p7 }
 0x79a   : > { %5219 = shalt.err (!%p5216_p1)
}
 0x79b   : > { %s5220_s22 = scalar_lea.hbm %s6697_s10, 16  ;;  %p6879_p6 = pmov %p6878_p3 }
 0x79c   : > { %p5221_p5 = scmp.ne.s32.totalorder %s6697_s10, %s5220_s22  ;;  %p5226_p10 = scmp.lt.u32.totalorder %s5220_s22, %s6697_s10 }
 0x79e   : > { %p5222_p9 = pnand %p5221_p5, %p6879_p6 }
 0x7a0   : > { %p5223_p13 = pneg %p5222_p9 }
 0x7a2   : > { %p5228_p11 = pnand %p5226_p10, %p5223_p13 }
 0x7a4   : > { %5231 = shalt.err (!%p5228_p11)
}
 0x7a5   : > { %p6880_p0 = pmov %p6878_p3  ;;  %s5232_s27 = scalar_lea.vmem %s6584_s29, 64 }
 0x7a6   : > { %p5233_p3 = scmp.ne.s32.totalorder %s6584_s29, %s5232_s27  ;;  %p5239_p12 = scmp.lt.s32.totalorder %s6584_s29, %s6584_s29 }
 0x7a7   : > { %4629 = dma.vmem_to_hbm [thread:$0]  (%p6880_p0), %s3654_s19, 16, %s6697_s10, [#allocation10]  }
 0x7a8   : > { %p6881_p4 = pmov %p6880_p0  ;;  %p5240_p2 = scmp.lt.s32.totalorder %s5232_s27, %s5232_s27 }
 0x7aa   : > { %p5234_p7 = pnand %p5233_p3, %p6881_p4  ;;  %p5241_p1 = por %p5240_p2, %p5239_p12 }
 0x7ac   : > { %p5235_p8 = pneg %p5234_p7 }
 0x7ae   : > { %p5242_p5 = pnand %p5241_p1, %p5235_p8 }
 0x7b0   : > { %5245 = shalt.err (!%p5242_p5)
}
 0x7b1   : > { %s5246_s20 = scalar_lea.hbm %s6698_s11, 64  ;;  %p6882_p9 = pmov %p6880_p0 }
 0x7b2   : > { %p5247_p6 = scmp.ne.s32.totalorder %s6698_s11, %s5246_s20  ;;  %p5252_p11 = scmp.lt.u32.totalorder %s5246_s20, %s6698_s11 }
 0x7b4   : > { %p5248_p13 = pnand %p5247_p6, %p6882_p9 }
 0x7b6   : > { %p5249_p10 = pneg %p5248_p13 }
 0x7b8   : > { %p5254_p0 = pnand %p5252_p11, %p5249_p10 }
 0x7ba   : > { %5257 = shalt.err (!%p5254_p0)
}
 0x7bb   : > { %p6883_p3 = pmov %p6881_p4  ;;  %s3641_s30 = sand.u32 1, %s5444_s0  }
 0x7bc   : > { %s4131_s18 = sshll.u32 %s5444_s0, 13  ;;  %s3678_s23 = sshll.u32 %s5554_s13, 4  ;;  %s6635_s23 = int_to_ptr.vmem [resolvable:$true] %s3678_s23 }
 0x7bd   : > { %4631 = dma.vmem_to_hbm [thread:$0]  (%p6883_p3), %s6584_s29, 64, %s6698_s11, [#allocation15]  }
 0x7be   : > { %s6632_s14 = scalar_lea.hbm %s6699_s12, %s4131_s18  ;;  %s6637_s20 = scalar_lea.sflag [#allocation10], %s3641_s30 }
 0x7bf   : > { %s5258_s24 = scalar_lea.vmem %s6635_s23, 8192  ;;  %p6884_p7 = scmp.ne.s32.totalorder %s6763_s15, 0 }
 0x7c0   : > { %p5259_p4 = scmp.ne.s32.totalorder %s6635_s23, %s5258_s24  ;;  %s5351_s29 = smov [#allocation16]  }
 0x7c1   : > { %s5262_s22 = sshll.u32 %s5351_s29, 4  ;;  %s5263_s22 = int_to_ptr.vmem [resolvable:$false] %s5262_s22 }
 0x7c2   : > { %p5260_p8 = pnand %p5259_p4, %p6884_p7  ;;  %s5264_s19 = scalar_lea.vmem %s5263_s22, 16384 }
 0x7c3   : > { %p5265_p2 = scmp.lt.s32.totalorder %s6635_s23, %s5263_s22  ;;  %p5266_p1 = scmp.lt.s32.totalorder %s5264_s19, %s5258_s24 }
 0x7c4   : > { %p5261_p12 = pneg %p5260_p8 }
 0x7c5   : > { %p5267_p5 = por %p5266_p1, %p5265_p2 }
 0x7c7   : > { %p5268_p6 = pnand %p5267_p5, %p5261_p12 }
 0x7c9   : > { %5271 = shalt.err (!%p5268_p6)
}
 0x7ca   : > { %s5272_s13 = scalar_lea.hbm %s6632_s14, 8192  ;;  %s5276_s25 = scalar_lea.hbm %s6699_s12, 16384 }
 0x7cb   : > { %p5273_p9 = scmp.ne.s32.totalorder %s6632_s14, %s5272_s13  ;;  %p5277_p11 = scmp.lt.u32.totalorder %s6632_s14, %s6699_s12 }
 0x7cc   : > { %p5278_p0 = scmp.lt.u32.totalorder %s5276_s25, %s5272_s13  ;;  %p5280_p4 = scmp.lt.u32.totalorder %s5272_s13, %s6632_s14 }
 0x7cd   : > { %p5274_p13 = pnand %p5273_p9, %p6884_p7 }
 0x7ce   : > { %p5279_p3 = por %p5278_p0, %p5277_p11 }
 0x7cf   : > { %p5275_p10 = pneg %p5274_p13 }
 0x7d0   : > { %p5281_p8 = por %p5280_p4, %p5279_p3 }
 0x7d2   : > { %p5282_p12 = pnand %p5281_p8, %p5275_p10 }
 0x7d4   : > { %5285 = shalt.err (!%p5282_p12)
}
 0x7d5   : > { %s5352_s21 = smov 256   ;;  %s5353_s27 = smov 16  }
 0x7d6   : > { %4632 = dma.vmem_to_hbm [thread:$0]  (%p6884_p7), %s6635_s23, 8192, %s6632_s14, %s6637_s20, %s5352_s21, %s5352_s21, %s5353_s27  }
 0x7d7   : > { %p6885_p2 = scmp.eq.s32.totalorder %s5444_s0, 1 }
 0x7d9   : > { %5311 = dma.done.wait (%p6885_p2), [#allocation10], 16   ;;  %p6886_p1 = pmov %p6885_p2 }
 0x7db   : > { %5313 = vsyncadd (%p6886_p1), [#allocation10], 4294967280  ;;  %p6887_p5 = pmov %p6886_p1 }
 0x7dc   : > { %p6888_p6 = pmov %p6886_p1 }
 0x7dd   : > { %5315 = dma.done.wait (%p6887_p5), [#allocation15], 64  }
 0x7de   : > { %5317 = vsyncadd (%p6888_p6), [#allocation15], 4294967232 }
 0x7df PF: > { %p4657_p9 = scmp.ge.s32.totalorder %s5336_s28, 2  ;;  %s6889_s24 = sadd.s32 4294967294, %s5336_s28  }
 0x7e0   : > { %s3701_s29 = sand.u32 1, %s6889_s24   ;;  %p6890_p13 = scmp.ne.s32.totalorder %s6764_s16, 0 }
 0x7e1   : > { %s3702_s15 = scalar_lea.sflag [#allocation10], %s3701_s29 }
 0x7e2   : > { %p4646_p7 = pnand %p4657_p9, %p6890_p13 }
 0x7e4   : > { %5319 = dma.done.wait (!%p4646_p7), %s3702_s15, 8192  }
 0x7e5   : > { %5321 = vsyncadd (!%p4646_p7), %s3702_s15, 4294959104  ;;  %s6891_s28 = sld [smem:[#allocation23_spill]]  ;;  %s6892_s14 = sld [smem:[#allocation22_spill]] }
 0x7e6   : > { %s6893_s27 = sld [smem:[#allocation24_spill]]  ;;  %s6894_s25 = smov %s5328_s26 }
 0x7eb   : > { %p26_p10 = scmp.ge.s32.totalorder %s6891_s28, 4   ;;  %s6895_s26 = smov %s6892_s14 }
 0x7ed   :  { %28 = sbr.rel (!%p26_p10) target bundleno = 8 (0x8), region = 128 }
 0x7f4   :  { %3707 = vsyncpa [#allocation9], 1 }
 0x7f5   :  { %3709 = vsyncpa [#allocation9 + $0x1], 1 }
 0x7f6   :  { %3710 = vsyncpa [#allocation12], 1 }
 0x7f7   :  { %3711 = vsyncpa [#allocation10], 1 }
 0x7f8   :  { %3713 = vsyncpa [#allocation10 + $0x1], 1 }
 0x7f9   :  { %3714 = vsyncpa [#allocation15], 1 }

</bundles_post_ra>
